<compile_context>
chip_gen: v5e
topology: v5e:2x2
jax: 0.10.0
libtpu: 0.0.40
codegen_flags: <defaults>
</compile_context>

<pallas_src>
import jax
import jax.numpy as jnp
from jax.experimental import pallas as pl
from jax.experimental.pallas import tpu as pltpu

BN_EPS = 1e-5
K = 8  # kernel_size of every conv / conv-transpose in the module


# ----------------------------------------------------------------------------
# In-kernel helpers (operate on channel-last (L, C) values)
# ----------------------------------------------------------------------------

def _conv_bn_relu(x, w_ref, shift_ref, pad):
    """Conv1d(stride=1, no bias) + folded BN(eval) + ReLU as one im2col matmul.

    x:         (L_in, C_in) f32, channel-last
    w_ref:     (K*C_in, C_out) bf16, BN scale already folded in
    shift_ref: (1, C_out) f32  (beta - mean * scale)
    returns    (L_out, C_out) f32
    """
    L_in, C_in = x.shape
    L_out = L_in + 2 * pad - K + 1
    xb = x.astype(jnp.bfloat16)
    z = jnp.zeros((pad, C_in), jnp.bfloat16)
    xp = jnp.concatenate([z, xb, z], axis=0)                                # (L_in + 2*pad, C_in)
    cols = jnp.concatenate([xp[t:t + L_out] for t in range(K)], axis=1)     # im2col (L_out, K*C_in)
    y = jnp.dot(cols, w_ref[...], preferred_element_type=jnp.float32)
    return jnp.maximum(y + shift_ref[...], 0.0)


def _maxpool_k2s2p1(x, buf):
    """MaxPool1d(kernel=2, stride=2, padding=1) along the sublane (L) axis.

    x:   (L, C) f32 -- a ReLU output (>= 0), so 0-padding is equivalent to -inf padding.
    buf: (2*Lo, C) f32 VMEM scratch used to deinterleave even/odd positions via strided reads.
    Returns (vals (Lo, C) f32, right_sel (Lo, C) bool): window w covers input positions 2w-1, 2w;
    right_sel records whether position 2w won (ties go to the earlier position, PyTorch-style).
    """
    L = x.shape[0]
    Lo = buf.shape[0] // 2
    buf[...] = jnp.zeros(buf.shape, buf.dtype)
    buf[pl.ds(1, L), :] = x
    left = buf[pl.ds(0, Lo, stride=2), :]     # input positions 2w-1 (w=0 -> padding)
    right = buf[pl.ds(1, Lo, stride=2), :]    # input positions 2w
    vals = jnp.maximum(left, right)
    right_sel = right > left
    return vals, right_sel


def _maxunpool_k2s2p1(x, right_sel, p_ref):
    """MaxUnpool1d(kernel=2, stride=2, padding=1) as a 0/1 placement matmul (no scatter).

    x, right_sel: (Lo, C); p_ref: (2*(Lo-1), 2*Lo) bf16 placement matrix.
    Output position 2w gets x[w] if right-selected, position 2w-1 gets x[w] if left-selected;
    everything else is 0.  Out-of-range placements are dropped (see TODO at top).
    """
    stacked = jnp.concatenate(
        [jnp.where(right_sel, x, 0.0), jnp.where(right_sel, 0.0, x)], axis=0)   # (2*Lo, C)
    return jnp.dot(p_ref[...], stacked.astype(jnp.bfloat16),
                   preferred_element_type=jnp.float32)


# ----------------------------------------------------------------------------
# Fused forward kernel (one batch element per grid step)
# ----------------------------------------------------------------------------

def cnn_ae_kernel(x_ref,
                  w_e1, s_e1, w_e2, s_e2, w_e3, s_e3,
                  w_d1, s_d1, l1w_ref, l1b_ref,
                  w_d2, s_d2, w_d3, s_d3, l2w_ref, l2b_ref,
                  up1_ref, up2_ref, up3_ref,
                  dec_ref, enc_ref,
                  pbuf1, pbuf2, pbuf3):
    x = x_ref[0]                                            # (128, 9) channel-last

    # ---------------- encoder ----------------
    h = _conv_bn_relu(x, w_e1, s_e1, pad=4)                 # (129, 32)
    v1, sel1 = _maxpool_k2s2p1(h, pbuf1)                    # (65, 32)
    # Dropout(0.35): identity in eval/inference mode.
    h = _conv_bn_relu(v1, w_e2, s_e2, pad=4)                # (66, 64)
    v2, sel2 = _maxpool_k2s2p1(h, pbuf2)                    # (34, 64)
    h = _conv_bn_relu(v2, w_e3, s_e3, pad=4)                # (35, 128)
    enc, sel3 = _maxpool_k2s2p1(h, pbuf3)                   # (18, 128)
    enc_ref[0] = enc                                        # lane-dense (18, 128) store

    # ---------------- decoder ----------------
    # ConvTranspose1d(s=1, p=4, k=8) == Conv1d with flipped/transposed weights and pad = 3.
    h = _maxunpool_k2s2p1(enc, sel3, up1_ref)               # (34, 128)
    h = _conv_bn_relu(h, w_d1, s_d1, pad=3)                 # (33, 64)
    h = jnp.dot(l1w_ref[...], h.astype(jnp.bfloat16),       # lin1 over the L dimension
                preferred_element_type=jnp.float32) + l1b_ref[...]          # (34, 64)
    h = _maxunpool_k2s2p1(h, sel2, up2_ref)                 # (66, 64)
    h = _conv_bn_relu(h, w_d2, s_d2, pad=3)                 # (65, 32)
    h = _maxunpool_k2s2p1(h, sel1, up3_ref)                 # (128, 32)
    h = _conv_bn_relu(h, w_d3, s_d3, pad=3)                 # (127, 9)
    dec_ref[0] = (jnp.dot(l2w_ref[...], h.astype(jnp.bfloat16),             # lin2 over L
                          preferred_element_type=jnp.float32) + l2b_ref[...])  # (128, 9)


@jax.jit
def cnn_ae_forward(weights, x_blc):
    """x_blc: (B, L=128, C=9) as in the PyTorch module. Returns (x_decoded, x_encoded)."""
    B, L, C = x_blc.shape
    assert (L, C) == (128, 9), "this fused kernel instantiates the n_channels == 9, L == 128 branch"

    dec, enc = pl.pallas_call(
        cnn_ae_kernel,
        out_shape=(jax.ShapeDtypeStruct((B, 128, 9), jnp.float32),    # decoded, (B, L, C)
                   jax.ShapeDtypeStruct((B, 18, 128), jnp.float32)),  # encoded, channel-last
        grid=(B,),
        in_specs=[pl.BlockSpec((1, L, C), lambda b: (b, 0, 0))]
                 + [pl.BlockSpec(w.shape, lambda b: (0, 0)) for w in weights],
        out_specs=(pl.BlockSpec((1, 128, 9), lambda b: (b, 0, 0)),
                   pl.BlockSpec((1, 18, 128), lambda b: (b, 0, 0))),
        scratch_shapes=[pltpu.VMEM((130, 32), jnp.float32),   # pool1 even/odd staging
                        pltpu.VMEM((68, 64), jnp.float32),    # pool2
                        pltpu.VMEM((36, 128), jnp.float32)],  # pool3
        compiler_params=pltpu.CompilerParams(dimension_semantics=("parallel",)),
    )(x_blc, *weights)

    x_decoded = dec                                           # already (B, L, C) == permute output
    x_encoded = jnp.transpose(enc, (0, 2, 1)).reshape(B, -1)  # PyTorch (B, C, L).reshape order
    return x_decoded, x_encoded


# ----------------------------------------------------------------------------
# Parameter construction (PyTorch layouts) and conversion to kernel layout
# ----------------------------------------------------------------------------

def init_params(key, n_channels=9, out_channels=128):
    """Deterministic synthetic parameters in PyTorch layouts."""
    assert n_channels == 9, "this script instantiates the n_channels == 9 branch"
    keys = iter(jax.random.split(key, 40))

    def conv_w(co, ci):       # Conv1d weight (C_out, C_in, K)
        return jax.random.normal(next(keys), (co, ci, K), jnp.float32) / jnp.sqrt(ci * K)

    def convT_w(ci, co):      # ConvTranspose1d weight (C_in, C_out, K)
        return jax.random.normal(next(keys), (ci, co, K), jnp.float32) / jnp.sqrt(ci * K)

    def bn(c):
        return dict(gamma=jax.random.uniform(next(keys), (c,), minval=0.5, maxval=1.5),
                    beta=0.1 * jax.random.normal(next(keys), (c,)),
                    mean=0.1 * jax.random.normal(next(keys), (c,)),
                    var=jax.random.uniform(next(keys), (c,), minval=0.5, maxval=1.5))

    def linear(o, i):
        return (jax.random.normal(next(keys), (o, i), jnp.float32) / jnp.sqrt(i),
                0.1 * jax.random.normal(next(keys), (o,)))

    p = {}
    p["e1_w"] = conv_w(32, n_channels);          p["e1_bn"] = bn(32)
    p["e2_w"] = conv_w(64, 32);                  p["e2_bn"] = bn(64)
    p["e3_w"] = conv_w(out_channels, 64);        p["e3_bn"] = bn(out_channels)
    p["d1_w"] = convT_w(out_channels, 64);       p["d1_bn"] = bn(64)
    p["d2_w"] = convT_w(64, 32);                 p["d2_bn"] = bn(32)
    p["d3_w"] = convT_w(32, n_channels);         p["d3_bn"] = bn(n_channels)
    p["lin1_w"], p["lin1_b"] = linear(34, 33)
    p["lin2_w"], p["lin2_b"] = linear(128, 127)
    return p


def _fold_bn(bn):
    scale = bn["gamma"] / jnp.sqrt(bn["var"] + BN_EPS)
    shift = bn["beta"] - bn["mean"] * scale
    return scale, shift


def _conv_weight(w_oik, scale):
    # Conv1d (C_out, C_in, K) -> im2col weight (K*C_in, C_out), BN scale folded, bf16.
    wk = jnp.transpose(w_oik, (2, 1, 0)) * scale[None, None, :]
    return wk.reshape(-1, wk.shape[-1]).astype(jnp.bfloat16)


def _convT_weight(w_iok, scale):
    # ConvTranspose1d (C_in, C_out, K), stride=1 -> equivalent correlation weight with the
    # tap axis flipped: (K, C_in, C_out) -> (K*C_in, C_out), BN scale folded, bf16.
    wk = jnp.transpose(jnp.flip(w_iok, axis=-1), (2, 0, 1)) * scale[None, None, :]
    return wk.reshape(-1, wk.shape[-1]).astype(jnp.bfloat16)


def _unpool_matrix(Lo):
    # 0/1 placement matrix for MaxUnpool1d(k=2, s=2, p=1): rows = Lu output positions,
    # cols = [right-selected pooled values | left-selected pooled values] (2*Lo).
    Lu = 2 * (Lo - 1)
    p = jnp.arange(Lu)[:, None]
    j = jnp.arange(2 * Lo)[None, :]
    even = (p % 2 == 0) & (j == p // 2)              # position 2w  <- right-selected x[w]
    odd = (p % 2 == 1) & (j == Lo + (p + 1) // 2)    # position 2w-1 <- left-selected x[w]
    return (even | odd).astype(jnp.bfloat16)


def prepare_params(p):
    """Flatten PyTorch-layout params into the kernel weight list (BN folded, bf16 MXU operands)."""
    weights = []

    def add_conv(w, bn, transposed):
        scale, shift = _fold_bn(bn)
        weights.append(_convT_weight(w, scale) if transposed else _conv_weight(w, scale))
        weights.append(shift.reshape(1, -1).astype(jnp.float32))

    add_conv(p["e1_w"], p["e1_bn"], False)
    add_conv(p["e2_w"], p["e2_bn"], False)
    add_conv(p["e3_w"], p["e3_bn"], False)
    add_conv(p["d1_w"], p["d1_bn"], True)
    weights.append(p["lin1_w"].astype(jnp.bfloat16))
    weights.append(p["lin1_b"].reshape(-1, 1).astype(jnp.float32))
    add_conv(p["d2_w"], p["d2_bn"], True)
    add_conv(p["d3_w"], p["d3_bn"], True)
    weights.append(p["lin2_w"].astype(jnp.bfloat16))
    weights.append(p["lin2_b"].reshape(-1, 1).astype(jnp.float32))
    weights.append(_unpool_matrix(18))   # unpool1 (indices from pool3, Lo=18 -> Lu=34)
    weights.append(_unpool_matrix(34))   # unpool2 (indices from pool2, Lo=34 -> Lu=66)
    weights.append(_unpool_matrix(65))   # unpool3 (indices from pool1, Lo=65 -> Lu=128)
    return weights


if __name__ == "__main__":
    B, L, C = 2, 128, 9          # n_channels == 9 branch (L = 128 as the Linear dims imply)
    key = jax.random.PRNGKey(0)
    kx, kp = jax.random.split(key)
    x = jax.random.normal(kx, (B, L, C), jnp.float32)

    params = init_params(kp, n_channels=C, out_channels=128)
    weights = prepare_params(params)

    x_decoded, x_encoded = cnn_ae_forward(weights, x)
    jax.block_until_ready((x_decoded, x_encoded))

    assert x_decoded.shape == (B, L, C), x_decoded.shape
    assert x_encoded.shape == (B, 18 * 128), x_encoded.shape
    assert bool(jnp.all(jnp.isfinite(x_decoded))) and bool(jnp.all(jnp.isfinite(x_encoded)))
    print("KERNEL_OK")
</pallas_src>

<mosaic_0001>
module attributes {stable_mosaic.version = 11 : i64} {
  func.func @cnn_ae_kernel(%arg0: i32, %arg1: memref<1x128x9xf32, #tpu.memory_space<vmem>>, %arg2: memref<72x32xbf16, #tpu.memory_space<vmem>>, %arg3: memref<1x32xf32, #tpu.memory_space<vmem>>, %arg4: memref<256x64xbf16, #tpu.memory_space<vmem>>, %arg5: memref<1x64xf32, #tpu.memory_space<vmem>>, %arg6: memref<512x128xbf16, #tpu.memory_space<vmem>>, %arg7: memref<1x128xf32, #tpu.memory_space<vmem>>, %arg8: memref<1024x64xbf16, #tpu.memory_space<vmem>>, %arg9: memref<1x64xf32, #tpu.memory_space<vmem>>, %arg10: memref<34x33xbf16, #tpu.memory_space<vmem>>, %arg11: memref<34x1xf32, #tpu.memory_space<vmem>>, %arg12: memref<512x32xbf16, #tpu.memory_space<vmem>>, %arg13: memref<1x32xf32, #tpu.memory_space<vmem>>, %arg14: memref<256x9xbf16, #tpu.memory_space<vmem>>, %arg15: memref<1x9xf32, #tpu.memory_space<vmem>>, %arg16: memref<128x127xbf16, #tpu.memory_space<vmem>>, %arg17: memref<128x1xf32, #tpu.memory_space<vmem>>, %arg18: memref<34x36xbf16, #tpu.memory_space<vmem>>, %arg19: memref<66x68xbf16, #tpu.memory_space<vmem>>, %arg20: memref<128x130xbf16, #tpu.memory_space<vmem>>, %arg21: memref<1x128x9xf32, #tpu.memory_space<vmem>>, %arg22: memref<1x18x128xf32, #tpu.memory_space<vmem>>, %arg23: memref<130x32xf32, #tpu.memory_space<vmem>>, %arg24: memref<68x64xf32, #tpu.memory_space<vmem>>, %arg25: memref<36x128xf32, #tpu.memory_space<vmem>>) attributes {dimension_semantics = [#tpu.dimension_semantics<parallel>], iteration_bounds = array<i64: 2>, scalar_prefetch = 0 : i64, scratch_operands = 3 : i64, tpu.core_type = #tpu.core_type<tc>, window_params = [{transform_indices = @transform_0, window_bounds = array<i64: 1, 128, 9>}, {pipeline_mode = #tpu.pipeline_mode<synchronous>, transform_indices = @transform_1, window_bounds = array<i64: 72, 32>}, {pipeline_mode = #tpu.pipeline_mode<synchronous>, transform_indices = @transform_2, window_bounds = array<i64: 1, 32>}, {pipeline_mode = #tpu.pipeline_mode<synchronous>, transform_indices = @transform_3, window_bounds = array<i64: 256, 64>}, {pipeline_mode = #tpu.pipeline_mode<synchronous>, transform_indices = @transform_4, window_bounds = array<i64: 1, 64>}, {pipeline_mode = #tpu.pipeline_mode<synchronous>, transform_indices = @transform_5, window_bounds = array<i64: 512, 128>}, {pipeline_mode = #tpu.pipeline_mode<synchronous>, transform_indices = @transform_6, window_bounds = array<i64: 1, 128>}, {pipeline_mode = #tpu.pipeline_mode<synchronous>, transform_indices = @transform_7, window_bounds = array<i64: 1024, 64>}, {pipeline_mode = #tpu.pipeline_mode<synchronous>, transform_indices = @transform_8, window_bounds = array<i64: 1, 64>}, {pipeline_mode = #tpu.pipeline_mode<synchronous>, transform_indices = @transform_9, window_bounds = array<i64: 34, 33>}, {pipeline_mode = #tpu.pipeline_mode<synchronous>, transform_indices = @transform_10, window_bounds = array<i64: 34, 1>}, {pipeline_mode = #tpu.pipeline_mode<synchronous>, transform_indices = @transform_11, window_bounds = array<i64: 512, 32>}, {pipeline_mode = #tpu.pipeline_mode<synchronous>, transform_indices = @transform_12, window_bounds = array<i64: 1, 32>}, {pipeline_mode = #tpu.pipeline_mode<synchronous>, transform_indices = @transform_13, window_bounds = array<i64: 256, 9>}, {pipeline_mode = #tpu.pipeline_mode<synchronous>, transform_indices = @transform_14, window_bounds = array<i64: 1, 9>}, {pipeline_mode = #tpu.pipeline_mode<synchronous>, transform_indices = @transform_15, window_bounds = array<i64: 128, 127>}, {pipeline_mode = #tpu.pipeline_mode<synchronous>, transform_indices = @transform_16, window_bounds = array<i64: 128, 1>}, {pipeline_mode = #tpu.pipeline_mode<synchronous>, transform_indices = @transform_17, window_bounds = array<i64: 34, 36>}, {pipeline_mode = #tpu.pipeline_mode<synchronous>, transform_indices = @transform_18, window_bounds = array<i64: 66, 68>}, {pipeline_mode = #tpu.pipeline_mode<synchronous>, transform_indices = @transform_19, window_bounds = array<i64: 128, 130>}, {transform_indices = @transform_20, window_bounds = array<i64: 1, 128, 9>}, {transform_indices = @transform_21, window_bounds = array<i64: 1, 18, 128>}]} {
    %c0 = arith.constant 0 : index
    %c0_0 = arith.constant 0 : index
    %c0_1 = arith.constant 0 : index
    %0 = vector.load %arg1[%c0, %c0_0, %c0_1] : memref<1x128x9xf32, #tpu.memory_space<vmem>>, vector<1x128x9xf32>
    %1 = vector.shape_cast %0 : vector<1x128x9xf32> to vector<128x9xf32>
    %2 = arith.truncf %1 : vector<128x9xf32> to vector<128x9xbf16>
    %cst = arith.constant 0.000000e+00 : bf16
    %3 = vector.broadcast %cst : bf16 to vector<4x9xbf16>
    %4 = tpu.concatenate %3, %2, %3 in 0 : vector<4x9xbf16>, vector<128x9xbf16>, vector<4x9xbf16> -> vector<136x9xbf16>
    %5 = vector.extract_strided_slice %4 {offsets = [0, 0], sizes = [129, 9], strides = [1, 1]} : vector<136x9xbf16> to vector<129x9xbf16>
    %6 = vector.extract_strided_slice %4 {offsets = [1, 0], sizes = [129, 9], strides = [1, 1]} : vector<136x9xbf16> to vector<129x9xbf16>
    %7 = vector.extract_strided_slice %4 {offsets = [2, 0], sizes = [129, 9], strides = [1, 1]} : vector<136x9xbf16> to vector<129x9xbf16>
    %8 = vector.extract_strided_slice %4 {offsets = [3, 0], sizes = [129, 9], strides = [1, 1]} : vector<136x9xbf16> to vector<129x9xbf16>
    %9 = vector.extract_strided_slice %4 {offsets = [4, 0], sizes = [129, 9], strides = [1, 1]} : vector<136x9xbf16> to vector<129x9xbf16>
    %10 = vector.extract_strided_slice %4 {offsets = [5, 0], sizes = [129, 9], strides = [1, 1]} : vector<136x9xbf16> to vector<129x9xbf16>
    %11 = vector.extract_strided_slice %4 {offsets = [6, 0], sizes = [129, 9], strides = [1, 1]} : vector<136x9xbf16> to vector<129x9xbf16>
    %12 = vector.extract_strided_slice %4 {offsets = [7, 0], sizes = [129, 9], strides = [1, 1]} : vector<136x9xbf16> to vector<129x9xbf16>
    %13 = tpu.concatenate %5, %6, %7, %8, %9, %10, %11, %12 in 1 : vector<129x9xbf16>, vector<129x9xbf16>, vector<129x9xbf16>, vector<129x9xbf16>, vector<129x9xbf16>, vector<129x9xbf16>, vector<129x9xbf16>, vector<129x9xbf16> -> vector<129x72xbf16>
    %c0_2 = arith.constant 0 : index
    %c0_3 = arith.constant 0 : index
    %14 = vector.load %arg2[%c0_2, %c0_3] : memref<72x32xbf16, #tpu.memory_space<vmem>>, vector<72x32xbf16>
    %cst_4 = arith.constant dense<0.000000e+00> : vector<129x32xf32>
    %15 = tpu.matmul %13, %14, %cst_4 {dimension_numbers = #tpu.dot_dimension_numbers<[1], [0], [0], [1], [0, 0, 1, 1], [], []>} : vector<129x72xbf16>, vector<72x32xbf16>, vector<129x32xf32> -> vector<129x32xf32>
    %c0_5 = arith.constant 0 : index
    %c0_6 = arith.constant 0 : index
    %16 = vector.load %arg3[%c0_5, %c0_6] : memref<1x32xf32, #tpu.memory_space<vmem>>, vector<1x32xf32>
    %17 = vector.broadcast %16 : vector<1x32xf32> to vector<129x32xf32>
    %18 = arith.addf %15, %17 : vector<129x32xf32>
    %cst_7 = arith.constant 0.000000e+00 : f32
    %19 = vector.broadcast %cst_7 : f32 to vector<129x32xf32>
    %20 = arith.maximumf %18, %19 : vector<129x32xf32>
    %cst_8 = arith.constant 0.000000e+00 : f32
    %21 = vector.broadcast %cst_8 : f32 to vector<130x32xf32>
    %c0_9 = arith.constant 0 : index
    %c0_10 = arith.constant 0 : index
    %22 = vector.load %arg23[%c0_9, %c0_10] : memref<130x32xf32, #tpu.memory_space<vmem>>, vector<130x32xf32>
    tpu.vector_store %arg23[%c0_9, %c0_10], %21 {strides = array<i32>} : memref<130x32xf32, #tpu.memory_space<vmem>>, vector<130x32xf32>,
    %c1 = arith.constant 1 : index
    %c0_11 = arith.constant 0 : index
    %23 = vector.load %arg23[%c1, %c0_11] : memref<130x32xf32, #tpu.memory_space<vmem>>, vector<129x32xf32>
    tpu.vector_store %arg23[%c1, %c0_11], %20 {strides = array<i32>} : memref<130x32xf32, #tpu.memory_space<vmem>>, vector<129x32xf32>,
    %c0_12 = arith.constant 0 : index
    %c0_13 = arith.constant 0 : index
    %24 = tpu.strided_load %arg23[%c0_12, %c0_13] {strides = array<i32: 2, 1>} : memref<130x32xf32, #tpu.memory_space<vmem>>, vector<65x32xf32>
    %c1_14 = arith.constant 1 : index
    %c0_15 = arith.constant 0 : index
    %25 = tpu.strided_load %arg23[%c1_14, %c0_15] {strides = array<i32: 2, 1>} : memref<130x32xf32, #tpu.memory_space<vmem>>, vector<65x32xf32>
    %26 = arith.maximumf %24, %25 : vector<65x32xf32>
    %27 = arith.cmpf ogt, %25, %24 : vector<65x32xf32>
    %28 = arith.truncf %26 : vector<65x32xf32> to vector<65x32xbf16>
    %cst_16 = arith.constant 0.000000e+00 : bf16
    %29 = vector.broadcast %cst_16 : bf16 to vector<4x32xbf16>
    %30 = tpu.concatenate %29, %28, %29 in 0 : vector<4x32xbf16>, vector<65x32xbf16>, vector<4x32xbf16> -> vector<73x32xbf16>
    %31 = vector.extract_strided_slice %30 {offsets = [0, 0], sizes = [66, 32], strides = [1, 1]} : vector<73x32xbf16> to vector<66x32xbf16>
    %32 = vector.extract_strided_slice %30 {offsets = [1, 0], sizes = [66, 32], strides = [1, 1]} : vector<73x32xbf16> to vector<66x32xbf16>
    %33 = vector.extract_strided_slice %30 {offsets = [2, 0], sizes = [66, 32], strides = [1, 1]} : vector<73x32xbf16> to vector<66x32xbf16>
    %34 = vector.extract_strided_slice %30 {offsets = [3, 0], sizes = [66, 32], strides = [1, 1]} : vector<73x32xbf16> to vector<66x32xbf16>
    %35 = vector.extract_strided_slice %30 {offsets = [4, 0], sizes = [66, 32], strides = [1, 1]} : vector<73x32xbf16> to vector<66x32xbf16>
    %36 = vector.extract_strided_slice %30 {offsets = [5, 0], sizes = [66, 32], strides = [1, 1]} : vector<73x32xbf16> to vector<66x32xbf16>
    %37 = vector.extract_strided_slice %30 {offsets = [6, 0], sizes = [66, 32], strides = [1, 1]} : vector<73x32xbf16> to vector<66x32xbf16>
    %38 = vector.extract_strided_slice %30 {offsets = [7, 0], sizes = [66, 32], strides = [1, 1]} : vector<73x32xbf16> to vector<66x32xbf16>
    %39 = tpu.concatenate %31, %32, %33, %34, %35, %36, %37, %38 in 1 : vector<66x32xbf16>, vector<66x32xbf16>, vector<66x32xbf16>, vector<66x32xbf16>, vector<66x32xbf16>, vector<66x32xbf16>, vector<66x32xbf16>, vector<66x32xbf16> -> vector<66x256xbf16>
    %c0_17 = arith.constant 0 : index
    %c0_18 = arith.constant 0 : index
    %40 = vector.load %arg4[%c0_17, %c0_18] : memref<256x64xbf16, #tpu.memory_space<vmem>>, vector<256x64xbf16>
    %cst_19 = arith.constant dense<0.000000e+00> : vector<66x64xf32>
    %41 = tpu.matmul %39, %40, %cst_19 {dimension_numbers = #tpu.dot_dimension_numbers<[1], [0], [0], [1], [0, 0, 1, 1], [], []>} : vector<66x256xbf16>, vector<256x64xbf16>, vector<66x64xf32> -> vector<66x64xf32>
    %c0_20 = arith.constant 0 : index
    %c0_21 = arith.constant 0 : index
    %42 = vector.load %arg5[%c0_20, %c0_21] : memref<1x64xf32, #tpu.memory_space<vmem>>, vector<1x64xf32>
    %43 = vector.broadcast %42 : vector<1x64xf32> to vector<66x64xf32>
    %44 = arith.addf %41, %43 : vector<66x64xf32>
    %cst_22 = arith.constant 0.000000e+00 : f32
    %45 = vector.broadcast %cst_22 : f32 to vector<66x64xf32>
    %46 = arith.maximumf %44, %45 : vector<66x64xf32>
    %cst_23 = arith.constant 0.000000e+00 : f32
    %47 = vector.broadcast %cst_23 : f32 to vector<68x64xf32>
    %c0_24 = arith.constant 0 : index
    %c0_25 = arith.constant 0 : index
    %48 = vector.load %arg24[%c0_24, %c0_25] : memref<68x64xf32, #tpu.memory_space<vmem>>, vector<68x64xf32>
    tpu.vector_store %arg24[%c0_24, %c0_25], %47 {strides = array<i32>} : memref<68x64xf32, #tpu.memory_space<vmem>>, vector<68x64xf32>,
    %c1_26 = arith.constant 1 : index
    %c0_27 = arith.constant 0 : index
    %49 = vector.load %arg24[%c1_26, %c0_27] : memref<68x64xf32, #tpu.memory_space<vmem>>, vector<66x64xf32>
    tpu.vector_store %arg24[%c1_26, %c0_27], %46 {strides = array<i32>} : memref<68x64xf32, #tpu.memory_space<vmem>>, vector<66x64xf32>,
    %c0_28 = arith.constant 0 : index
    %c0_29 = arith.constant 0 : index
    %50 = tpu.strided_load %arg24[%c0_28, %c0_29] {strides = array<i32: 2, 1>} : memref<68x64xf32, #tpu.memory_space<vmem>>, vector<34x64xf32>
    %c1_30 = arith.constant 1 : index
    %c0_31 = arith.constant 0 : index
    %51 = tpu.strided_load %arg24[%c1_30, %c0_31] {strides = array<i32: 2, 1>} : memref<68x64xf32, #tpu.memory_space<vmem>>, vector<34x64xf32>
    %52 = arith.maximumf %50, %51 : vector<34x64xf32>
    %53 = arith.cmpf ogt, %51, %50 : vector<34x64xf32>
    %54 = arith.truncf %52 : vector<34x64xf32> to vector<34x64xbf16>
    %cst_32 = arith.constant 0.000000e+00 : bf16
    %55 = vector.broadcast %cst_32 : bf16 to vector<4x64xbf16>
    %56 = tpu.concatenate %55, %54, %55 in 0 : vector<4x64xbf16>, vector<34x64xbf16>, vector<4x64xbf16> -> vector<42x64xbf16>
    %57 = vector.extract_strided_slice %56 {offsets = [0, 0], sizes = [35, 64], strides = [1, 1]} : vector<42x64xbf16> to vector<35x64xbf16>
    %58 = vector.extract_strided_slice %56 {offsets = [1, 0], sizes = [35, 64], strides = [1, 1]} : vector<42x64xbf16> to vector<35x64xbf16>
    %59 = vector.extract_strided_slice %56 {offsets = [2, 0], sizes = [35, 64], strides = [1, 1]} : vector<42x64xbf16> to vector<35x64xbf16>
    %60 = vector.extract_strided_slice %56 {offsets = [3, 0], sizes = [35, 64], strides = [1, 1]} : vector<42x64xbf16> to vector<35x64xbf16>
    %61 = vector.extract_strided_slice %56 {offsets = [4, 0], sizes = [35, 64], strides = [1, 1]} : vector<42x64xbf16> to vector<35x64xbf16>
    %62 = vector.extract_strided_slice %56 {offsets = [5, 0], sizes = [35, 64], strides = [1, 1]} : vector<42x64xbf16> to vector<35x64xbf16>
    %63 = vector.extract_strided_slice %56 {offsets = [6, 0], sizes = [35, 64], strides = [1, 1]} : vector<42x64xbf16> to vector<35x64xbf16>
    %64 = vector.extract_strided_slice %56 {offsets = [7, 0], sizes = [35, 64], strides = [1, 1]} : vector<42x64xbf16> to vector<35x64xbf16>
    %65 = tpu.concatenate %57, %58, %59, %60, %61, %62, %63, %64 in 1 : vector<35x64xbf16>, vector<35x64xbf16>, vector<35x64xbf16>, vector<35x64xbf16>, vector<35x64xbf16>, vector<35x64xbf16>, vector<35x64xbf16>, vector<35x64xbf16> -> vector<35x512xbf16>
    %c0_33 = arith.constant 0 : index
    %c0_34 = arith.constant 0 : index
    %66 = vector.load %arg6[%c0_33, %c0_34] : memref<512x128xbf16, #tpu.memory_space<vmem>>, vector<512x128xbf16>
    %cst_35 = arith.constant dense<0.000000e+00> : vector<35x128xf32>
    %67 = tpu.matmul %65, %66, %cst_35 {dimension_numbers = #tpu.dot_dimension_numbers<[1], [0], [0], [1], [0, 0, 1, 1], [], []>} : vector<35x512xbf16>, vector<512x128xbf16>, vector<35x128xf32> -> vector<35x128xf32>
    %c0_36 = arith.constant 0 : index
    %c0_37 = arith.constant 0 : index
    %68 = vector.load %arg7[%c0_36, %c0_37] : memref<1x128xf32, #tpu.memory_space<vmem>>, vector<1x128xf32>
    %69 = vector.broadcast %68 : vector<1x128xf32> to vector<35x128xf32>
    %70 = arith.addf %67, %69 : vector<35x128xf32>
    %cst_38 = arith.constant 0.000000e+00 : f32
    %71 = vector.broadcast %cst_38 : f32 to vector<35x128xf32>
    %72 = arith.maximumf %70, %71 : vector<35x128xf32>
    %cst_39 = arith.constant 0.000000e+00 : f32
    %73 = vector.broadcast %cst_39 : f32 to vector<36x128xf32>
    %c0_40 = arith.constant 0 : index
    %c0_41 = arith.constant 0 : index
    %74 = vector.load %arg25[%c0_40, %c0_41] : memref<36x128xf32, #tpu.memory_space<vmem>>, vector<36x128xf32>
    tpu.vector_store %arg25[%c0_40, %c0_41], %73 {strides = array<i32>} : memref<36x128xf32, #tpu.memory_space<vmem>>, vector<36x128xf32>,
    %c1_42 = arith.constant 1 : index
    %c0_43 = arith.constant 0 : index
    %75 = vector.load %arg25[%c1_42, %c0_43] : memref<36x128xf32, #tpu.memory_space<vmem>>, vector<35x128xf32>
    tpu.vector_store %arg25[%c1_42, %c0_43], %72 {strides = array<i32>} : memref<36x128xf32, #tpu.memory_space<vmem>>, vector<35x128xf32>,
    %c0_44 = arith.constant 0 : index
    %c0_45 = arith.constant 0 : index
    %76 = tpu.strided_load %arg25[%c0_44, %c0_45] {strides = array<i32: 2, 1>} : memref<36x128xf32, #tpu.memory_space<vmem>>, vector<18x128xf32>
    %c1_46 = arith.constant 1 : index
    %c0_47 = arith.constant 0 : index
    %77 = tpu.strided_load %arg25[%c1_46, %c0_47] {strides = array<i32: 2, 1>} : memref<36x128xf32, #tpu.memory_space<vmem>>, vector<18x128xf32>
    %78 = arith.maximumf %76, %77 : vector<18x128xf32>
    %79 = arith.cmpf ogt, %77, %76 : vector<18x128xf32>
    %c0_48 = arith.constant 0 : index
    %c0_49 = arith.constant 0 : index
    %c0_50 = arith.constant 0 : index
    %80 = vector.load %arg22[%c0_48, %c0_49, %c0_50] : memref<1x18x128xf32, #tpu.memory_space<vmem>>, vector<1x18x128xf32>
    %81 = vector.shape_cast %80 : vector<1x18x128xf32> to vector<18x128xf32>
    %82 = vector.shape_cast %78 : vector<18x128xf32> to vector<1x18x128xf32>
    tpu.vector_store %arg22[%c0_48, %c0_49, %c0_50], %82 {strides = array<i32>} : memref<1x18x128xf32, #tpu.memory_space<vmem>>, vector<1x18x128xf32>,
    %cst_51 = arith.constant 0.000000e+00 : f32
    %83 = vector.broadcast %cst_51 : f32 to vector<18x128xf32>
    %84 = arith.select %79, %78, %83 : vector<18x128xi1>, vector<18x128xf32>
    %cst_52 = arith.constant 0.000000e+00 : f32
    %85 = vector.broadcast %cst_52 : f32 to vector<18x128xf32>
    %86 = arith.select %79, %85, %78 : vector<18x128xi1>, vector<18x128xf32>
    %87 = tpu.concatenate %84, %86 in 0 : vector<18x128xf32>, vector<18x128xf32> -> vector<36x128xf32>
    %c0_53 = arith.constant 0 : index
    %c0_54 = arith.constant 0 : index
    %88 = vector.load %arg18[%c0_53, %c0_54] : memref<34x36xbf16, #tpu.memory_space<vmem>>, vector<34x36xbf16>
    %89 = arith.truncf %87 : vector<36x128xf32> to vector<36x128xbf16>
    %cst_55 = arith.constant dense<0.000000e+00> : vector<34x128xf32>
    %90 = tpu.matmul %88, %89, %cst_55 {dimension_numbers = #tpu.dot_dimension_numbers<[1], [0], [0], [1], [0, 0, 1, 1], [], []>} : vector<34x36xbf16>, vector<36x128xbf16>, vector<34x128xf32> -> vector<34x128xf32>
    %91 = arith.truncf %90 : vector<34x128xf32> to vector<34x128xbf16>
    %cst_56 = arith.constant 0.000000e+00 : bf16
    %92 = vector.broadcast %cst_56 : bf16 to vector<3x128xbf16>
    %93 = tpu.concatenate %92, %91, %92 in 0 : vector<3x128xbf16>, vector<34x128xbf16>, vector<3x128xbf16> -> vector<40x128xbf16>
    %94 = vector.extract_strided_slice %93 {offsets = [0, 0], sizes = [33, 128], strides = [1, 1]} : vector<40x128xbf16> to vector<33x128xbf16>
    %95 = vector.extract_strided_slice %93 {offsets = [1, 0], sizes = [33, 128], strides = [1, 1]} : vector<40x128xbf16> to vector<33x128xbf16>
    %96 = vector.extract_strided_slice %93 {offsets = [2, 0], sizes = [33, 128], strides = [1, 1]} : vector<40x128xbf16> to vector<33x128xbf16>
    %97 = vector.extract_strided_slice %93 {offsets = [3, 0], sizes = [33, 128], strides = [1, 1]} : vector<40x128xbf16> to vector<33x128xbf16>
    %98 = vector.extract_strided_slice %93 {offsets = [4, 0], sizes = [33, 128], strides = [1, 1]} : vector<40x128xbf16> to vector<33x128xbf16>
    %99 = vector.extract_strided_slice %93 {offsets = [5, 0], sizes = [33, 128], strides = [1, 1]} : vector<40x128xbf16> to vector<33x128xbf16>
    %100 = vector.extract_strided_slice %93 {offsets = [6, 0], sizes = [33, 128], strides = [1, 1]} : vector<40x128xbf16> to vector<33x128xbf16>
    %101 = vector.extract_strided_slice %93 {offsets = [7, 0], sizes = [33, 128], strides = [1, 1]} : vector<40x128xbf16> to vector<33x128xbf16>
    %102 = tpu.concatenate %94, %95, %96, %97, %98, %99, %100, %101 in 1 : vector<33x128xbf16>, vector<33x128xbf16>, vector<33x128xbf16>, vector<33x128xbf16>, vector<33x128xbf16>, vector<33x128xbf16>, vector<33x128xbf16>, vector<33x128xbf16> -> vector<33x1024xbf16>
    %c0_57 = arith.constant 0 : index
    %c0_58 = arith.constant 0 : index
    %103 = vector.load %arg8[%c0_57, %c0_58] : memref<1024x64xbf16, #tpu.memory_space<vmem>>, vector<1024x64xbf16>
    %cst_59 = arith.constant dense<0.000000e+00> : vector<33x64xf32>
    %104 = tpu.matmul %102, %103, %cst_59 {dimension_numbers = #tpu.dot_dimension_numbers<[1], [0], [0], [1], [0, 0, 1, 1], [], []>} : vector<33x1024xbf16>, vector<1024x64xbf16>, vector<33x64xf32> -> vector<33x64xf32>
    %c0_60 = arith.constant 0 : index
    %c0_61 = arith.constant 0 : index
    %105 = vector.load %arg9[%c0_60, %c0_61] : memref<1x64xf32, #tpu.memory_space<vmem>>, vector<1x64xf32>
    %106 = vector.broadcast %105 : vector<1x64xf32> to vector<33x64xf32>
    %107 = arith.addf %104, %106 : vector<33x64xf32>
    %cst_62 = arith.constant 0.000000e+00 : f32
    %108 = vector.broadcast %cst_62 : f32 to vector<33x64xf32>
    %109 = arith.maximumf %107, %108 : vector<33x64xf32>
    %c0_63 = arith.constant 0 : index
    %c0_64 = arith.constant 0 : index
    %110 = vector.load %arg10[%c0_63, %c0_64] : memref<34x33xbf16, #tpu.memory_space<vmem>>, vector<34x33xbf16>
    %111 = arith.truncf %109 : vector<33x64xf32> to vector<33x64xbf16>
    %cst_65 = arith.constant dense<0.000000e+00> : vector<34x64xf32>
    %112 = tpu.matmul %110, %111, %cst_65 {dimension_numbers = #tpu.dot_dimension_numbers<[1], [0], [0], [1], [0, 0, 1, 1], [], []>} : vector<34x33xbf16>, vector<33x64xbf16>, vector<34x64xf32> -> vector<34x64xf32>
    %c0_66 = arith.constant 0 : index
    %c0_67 = arith.constant 0 : index
    %113 = vector.load %arg11[%c0_66, %c0_67] : memref<34x1xf32, #tpu.memory_space<vmem>>, vector<34x1xf32>
    %114 = vector.broadcast %113 : vector<34x1xf32> to vector<34x64xf32>
    %115 = arith.addf %112, %114 : vector<34x64xf32>
    %cst_68 = arith.constant 0.000000e+00 : f32
    %116 = vector.broadcast %cst_68 : f32 to vector<34x64xf32>
    %117 = arith.select %53, %115, %116 : vector<34x64xi1>, vector<34x64xf32>
    %cst_69 = arith.constant 0.000000e+00 : f32
    %118 = vector.broadcast %cst_69 : f32 to vector<34x64xf32>
    %119 = arith.select %53, %118, %115 : vector<34x64xi1>, vector<34x64xf32>
    %120 = tpu.concatenate %117, %119 in 0 : vector<34x64xf32>, vector<34x64xf32> -> vector<68x64xf32>
    %c0_70 = arith.constant 0 : index
    %c0_71 = arith.constant 0 : index
    %121 = vector.load %arg19[%c0_70, %c0_71] : memref<66x68xbf16, #tpu.memory_space<vmem>>, vector<66x68xbf16>
    %122 = arith.truncf %120 : vector<68x64xf32> to vector<68x64xbf16>
    %cst_72 = arith.constant dense<0.000000e+00> : vector<66x64xf32>
    %123 = tpu.matmul %121, %122, %cst_72 {dimension_numbers = #tpu.dot_dimension_numbers<[1], [0], [0], [1], [0, 0, 1, 1], [], []>} : vector<66x68xbf16>, vector<68x64xbf16>, vector<66x64xf32> -> vector<66x64xf32>
    %124 = arith.truncf %123 : vector<66x64xf32> to vector<66x64xbf16>
    %cst_73 = arith.constant 0.000000e+00 : bf16
    %125 = vector.broadcast %cst_73 : bf16 to vector<3x64xbf16>
    %126 = tpu.concatenate %125, %124, %125 in 0 : vector<3x64xbf16>, vector<66x64xbf16>, vector<3x64xbf16> -> vector<72x64xbf16>
    %127 = vector.extract_strided_slice %126 {offsets = [0, 0], sizes = [65, 64], strides = [1, 1]} : vector<72x64xbf16> to vector<65x64xbf16>
    %128 = vector.extract_strided_slice %126 {offsets = [1, 0], sizes = [65, 64], strides = [1, 1]} : vector<72x64xbf16> to vector<65x64xbf16>
    %129 = vector.extract_strided_slice %126 {offsets = [2, 0], sizes = [65, 64], strides = [1, 1]} : vector<72x64xbf16> to vector<65x64xbf16>
    %130 = vector.extract_strided_slice %126 {offsets = [3, 0], sizes = [65, 64], strides = [1, 1]} : vector<72x64xbf16> to vector<65x64xbf16>
    %131 = vector.extract_strided_slice %126 {offsets = [4, 0], sizes = [65, 64], strides = [1, 1]} : vector<72x64xbf16> to vector<65x64xbf16>
    %132 = vector.extract_strided_slice %126 {offsets = [5, 0], sizes = [65, 64], strides = [1, 1]} : vector<72x64xbf16> to vector<65x64xbf16>
    %133 = vector.extract_strided_slice %126 {offsets = [6, 0], sizes = [65, 64], strides = [1, 1]} : vector<72x64xbf16> to vector<65x64xbf16>
    %134 = vector.extract_strided_slice %126 {offsets = [7, 0], sizes = [65, 64], strides = [1, 1]} : vector<72x64xbf16> to vector<65x64xbf16>
    %135 = tpu.concatenate %127, %128, %129, %130, %131, %132, %133, %134 in 1 : vector<65x64xbf16>, vector<65x64xbf16>, vector<65x64xbf16>, vector<65x64xbf16>, vector<65x64xbf16>, vector<65x64xbf16>, vector<65x64xbf16>, vector<65x64xbf16> -> vector<65x512xbf16>
    %c0_74 = arith.constant 0 : index
    %c0_75 = arith.constant 0 : index
    %136 = vector.load %arg12[%c0_74, %c0_75] : memref<512x32xbf16, #tpu.memory_space<vmem>>, vector<512x32xbf16>
    %cst_76 = arith.constant dense<0.000000e+00> : vector<65x32xf32>
    %137 = tpu.matmul %135, %136, %cst_76 {dimension_numbers = #tpu.dot_dimension_numbers<[1], [0], [0], [1], [0, 0, 1, 1], [], []>} : vector<65x512xbf16>, vector<512x32xbf16>, vector<65x32xf32> -> vector<65x32xf32>
    %c0_77 = arith.constant 0 : index
    %c0_78 = arith.constant 0 : index
    %138 = vector.load %arg13[%c0_77, %c0_78] : memref<1x32xf32, #tpu.memory_space<vmem>>, vector<1x32xf32>
    %139 = vector.broadcast %138 : vector<1x32xf32> to vector<65x32xf32>
    %140 = arith.addf %137, %139 : vector<65x32xf32>
    %cst_79 = arith.constant 0.000000e+00 : f32
    %141 = vector.broadcast %cst_79 : f32 to vector<65x32xf32>
    %142 = arith.maximumf %140, %141 : vector<65x32xf32>
    %cst_80 = arith.constant 0.000000e+00 : f32
    %143 = vector.broadcast %cst_80 : f32 to vector<65x32xf32>
    %144 = arith.select %27, %142, %143 : vector<65x32xi1>, vector<65x32xf32>
    %cst_81 = arith.constant 0.000000e+00 : f32
    %145 = vector.broadcast %cst_81 : f32 to vector<65x32xf32>
    %146 = arith.select %27, %145, %142 : vector<65x32xi1>, vector<65x32xf32>
    %147 = tpu.concatenate %144, %146 in 0 : vector<65x32xf32>, vector<65x32xf32> -> vector<130x32xf32>
    %c0_82 = arith.constant 0 : index
    %c0_83 = arith.constant 0 : index
    %148 = vector.load %arg20[%c0_82, %c0_83] : memref<128x130xbf16, #tpu.memory_space<vmem>>, vector<128x130xbf16>
    %149 = arith.truncf %147 : vector<130x32xf32> to vector<130x32xbf16>
    %cst_84 = arith.constant dense<0.000000e+00> : vector<128x32xf32>
    %150 = tpu.matmul %148, %149, %cst_84 {dimension_numbers = #tpu.dot_dimension_numbers<[1], [0], [0], [1], [0, 0, 1, 1], [], []>} : vector<128x130xbf16>, vector<130x32xbf16>, vector<128x32xf32> -> vector<128x32xf32>
    %151 = arith.truncf %150 : vector<128x32xf32> to vector<128x32xbf16>
    %cst_85 = arith.constant 0.000000e+00 : bf16
    %152 = vector.broadcast %cst_85 : bf16 to vector<3x32xbf16>
    %153 = tpu.concatenate %152, %151, %152 in 0 : vector<3x32xbf16>, vector<128x32xbf16>, vector<3x32xbf16> -> vector<134x32xbf16>
    %154 = vector.extract_strided_slice %153 {offsets = [0, 0], sizes = [127, 32], strides = [1, 1]} : vector<134x32xbf16> to vector<127x32xbf16>
    %155 = vector.extract_strided_slice %153 {offsets = [1, 0], sizes = [127, 32], strides = [1, 1]} : vector<134x32xbf16> to vector<127x32xbf16>
    %156 = vector.extract_strided_slice %153 {offsets = [2, 0], sizes = [127, 32], strides = [1, 1]} : vector<134x32xbf16> to vector<127x32xbf16>
    %157 = vector.extract_strided_slice %153 {offsets = [3, 0], sizes = [127, 32], strides = [1, 1]} : vector<134x32xbf16> to vector<127x32xbf16>
    %158 = vector.extract_strided_slice %153 {offsets = [4, 0], sizes = [127, 32], strides = [1, 1]} : vector<134x32xbf16> to vector<127x32xbf16>
    %159 = vector.extract_strided_slice %153 {offsets = [5, 0], sizes = [127, 32], strides = [1, 1]} : vector<134x32xbf16> to vector<127x32xbf16>
    %160 = vector.extract_strided_slice %153 {offsets = [6, 0], sizes = [127, 32], strides = [1, 1]} : vector<134x32xbf16> to vector<127x32xbf16>
    %161 = vector.extract_strided_slice %153 {offsets = [7, 0], sizes = [127, 32], strides = [1, 1]} : vector<134x32xbf16> to vector<127x32xbf16>
    %162 = tpu.concatenate %154, %155, %156, %157, %158, %159, %160, %161 in 1 : vector<127x32xbf16>, vector<127x32xbf16>, vector<127x32xbf16>, vector<127x32xbf16>, vector<127x32xbf16>, vector<127x32xbf16>, vector<127x32xbf16>, vector<127x32xbf16> -> vector<127x256xbf16>
    %c0_86 = arith.constant 0 : index
    %c0_87 = arith.constant 0 : index
    %163 = vector.load %arg14[%c0_86, %c0_87] : memref<256x9xbf16, #tpu.memory_space<vmem>>, vector<256x9xbf16>
    %cst_88 = arith.constant dense<0.000000e+00> : vector<127x9xf32>
    %164 = tpu.matmul %162, %163, %cst_88 {dimension_numbers = #tpu.dot_dimension_numbers<[1], [0], [0], [1], [0, 0, 1, 1], [], []>} : vector<127x256xbf16>, vector<256x9xbf16>, vector<127x9xf32> -> vector<127x9xf32>
    %c0_89 = arith.constant 0 : index
    %c0_90 = arith.constant 0 : index
    %165 = vector.load %arg15[%c0_89, %c0_90] : memref<1x9xf32, #tpu.memory_space<vmem>>, vector<1x9xf32>
    %166 = vector.broadcast %165 : vector<1x9xf32> to vector<127x9xf32>
    %167 = arith.addf %164, %166 : vector<127x9xf32>
    %cst_91 = arith.constant 0.000000e+00 : f32
    %168 = vector.broadcast %cst_91 : f32 to vector<127x9xf32>
    %169 = arith.maximumf %167, %168 : vector<127x9xf32>
    %c0_92 = arith.constant 0 : index
    %c0_93 = arith.constant 0 : index
    %170 = vector.load %arg16[%c0_92, %c0_93] : memref<128x127xbf16, #tpu.memory_space<vmem>>, vector<128x127xbf16>
    %171 = arith.truncf %169 : vector<127x9xf32> to vector<127x9xbf16>
    %cst_94 = arith.constant dense<0.000000e+00> : vector<128x9xf32>
    %172 = tpu.matmul %170, %171, %cst_94 {dimension_numbers = #tpu.dot_dimension_numbers<[1], [0], [0], [1], [0, 0, 1, 1], [], []>} : vector<128x127xbf16>, vector<127x9xbf16>, vector<128x9xf32> -> vector<128x9xf32>
    %c0_95 = arith.constant 0 : index
    %c0_96 = arith.constant 0 : index
    %173 = vector.load %arg17[%c0_95, %c0_96] : memref<128x1xf32, #tpu.memory_space<vmem>>, vector<128x1xf32>
    %174 = vector.broadcast %173 : vector<128x1xf32> to vector<128x9xf32>
    %175 = arith.addf %172, %174 : vector<128x9xf32>
    %c0_97 = arith.constant 0 : index
    %c0_98 = arith.constant 0 : index
    %c0_99 = arith.constant 0 : index
    %176 = vector.load %arg21[%c0_97, %c0_98, %c0_99] : memref<1x128x9xf32, #tpu.memory_space<vmem>>, vector<1x128x9xf32>
    %177 = vector.shape_cast %176 : vector<1x128x9xf32> to vector<128x9xf32>
    %178 = vector.shape_cast %175 : vector<128x9xf32> to vector<1x128x9xf32>
    tpu.vector_store %arg21[%c0_97, %c0_98, %c0_99], %178 {strides = array<i32>} : memref<1x128x9xf32, #tpu.memory_space<vmem>>, vector<1x128x9xf32>,
    return
  }
  func.func @transform_0(%arg0: i32) -> (i32, i32, i32) {
    %c0_i32 = arith.constant 0 : i32
    %c0_i32_0 = arith.constant 0 : i32
    %c0_i32_1 = arith.constant 0 : i32
    return %arg0, %c0_i32, %c0_i32_0 : i32, i32, i32
  }
  func.func @transform_1(%arg0: i32) -> (i32, i32) {
    %c0_i32 = arith.constant 0 : i32
    %c0_i32_0 = arith.constant 0 : i32
    %c0_i32_1 = arith.constant 0 : i32
    return %c0_i32, %c0_i32_0 : i32, i32
  }
  func.func @transform_2(%arg0: i32) -> (i32, i32) {
    %c0_i32 = arith.constant 0 : i32
    %c0_i32_0 = arith.constant 0 : i32
    %c0_i32_1 = arith.constant 0 : i32
    return %c0_i32, %c0_i32_0 : i32, i32
  }
  func.func @transform_3(%arg0: i32) -> (i32, i32) {
    %c0_i32 = arith.constant 0 : i32
    %c0_i32_0 = arith.constant 0 : i32
    %c0_i32_1 = arith.constant 0 : i32
    return %c0_i32, %c0_i32_0 : i32, i32
  }
  func.func @transform_4(%arg0: i32) -> (i32, i32) {
    %c0_i32 = arith.constant 0 : i32
    %c0_i32_0 = arith.constant 0 : i32
    %c0_i32_1 = arith.constant 0 : i32
    return %c0_i32, %c0_i32_0 : i32, i32
  }
  func.func @transform_5(%arg0: i32) -> (i32, i32) {
    %c0_i32 = arith.constant 0 : i32
    %c0_i32_0 = arith.constant 0 : i32
    %c0_i32_1 = arith.constant 0 : i32
    return %c0_i32, %c0_i32_0 : i32, i32
  }
  func.func @transform_6(%arg0: i32) -> (i32, i32) {
    %c0_i32 = arith.constant 0 : i32
    %c0_i32_0 = arith.constant 0 : i32
    %c0_i32_1 = arith.constant 0 : i32
    return %c0_i32, %c0_i32_0 : i32, i32
  }
  func.func @transform_7(%arg0: i32) -> (i32, i32) {
    %c0_i32 = arith.constant 0 : i32
    %c0_i32_0 = arith.constant 0 : i32
    %c0_i32_1 = arith.constant 0 : i32
    return %c0_i32, %c0_i32_0 : i32, i32
  }
  func.func @transform_8(%arg0: i32) -> (i32, i32) {
    %c0_i32 = arith.constant 0 : i32
    %c0_i32_0 = arith.constant 0 : i32
    %c0_i32_1 = arith.constant 0 : i32
    return %c0_i32, %c0_i32_0 : i32, i32
  }
  func.func @transform_9(%arg0: i32) -> (i32, i32) {
    %c0_i32 = arith.constant 0 : i32
    %c0_i32_0 = arith.constant 0 : i32
    %c0_i32_1 = arith.constant 0 : i32
    return %c0_i32, %c0_i32_0 : i32, i32
  }
  func.func @transform_10(%arg0: i32) -> (i32, i32) {
    %c0_i32 = arith.constant 0 : i32
    %c0_i32_0 = arith.constant 0 : i32
    %c0_i32_1 = arith.constant 0 : i32
    return %c0_i32, %c0_i32_0 : i32, i32
  }
  func.func @transform_11(%arg0: i32) -> (i32, i32) {
    %c0_i32 = arith.constant 0 : i32
    %c0_i32_0 = arith.constant 0 : i32
    %c0_i32_1 = arith.constant 0 : i32
    return %c0_i32, %c0_i32_0 : i32, i32
  }
  func.func @transform_12(%arg0: i32) -> (i32, i32) {
    %c0_i32 = arith.constant 0 : i32
    %c0_i32_0 = arith.constant 0 : i32
    %c0_i32_1 = arith.constant 0 : i32
    return %c0_i32, %c0_i32_0 : i32, i32
  }
  func.func @transform_13(%arg0: i32) -> (i32, i32) {
    %c0_i32 = arith.constant 0 : i32
    %c0_i32_0 = arith.constant 0 : i32
    %c0_i32_1 = arith.constant 0 : i32
    return %c0_i32, %c0_i32_0 : i32, i32
  }
  func.func @transform_14(%arg0: i32) -> (i32, i32) {
    %c0_i32 = arith.constant 0 : i32
    %c0_i32_0 = arith.constant 0 : i32
    %c0_i32_1 = arith.constant 0 : i32
    return %c0_i32, %c0_i32_0 : i32, i32
  }
  func.func @transform_15(%arg0: i32) -> (i32, i32) {
    %c0_i32 = arith.constant 0 : i32
    %c0_i32_0 = arith.constant 0 : i32
    %c0_i32_1 = arith.constant 0 : i32
    return %c0_i32, %c0_i32_0 : i32, i32
  }
  func.func @transform_16(%arg0: i32) -> (i32, i32) {
    %c0_i32 = arith.constant 0 : i32
    %c0_i32_0 = arith.constant 0 : i32
    %c0_i32_1 = arith.constant 0 : i32
    return %c0_i32, %c0_i32_0 : i32, i32
  }
  func.func @transform_17(%arg0: i32) -> (i32, i32) {
    %c0_i32 = arith.constant 0 : i32
    %c0_i32_0 = arith.constant 0 : i32
    %c0_i32_1 = arith.constant 0 : i32
    return %c0_i32, %c0_i32_0 : i32, i32
  }
  func.func @transform_18(%arg0: i32) -> (i32, i32) {
    %c0_i32 = arith.constant 0 : i32
    %c0_i32_0 = arith.constant 0 : i32
    %c0_i32_1 = arith.constant 0 : i32
    return %c0_i32, %c0_i32_0 : i32, i32
  }
  func.func @transform_19(%arg0: i32) -> (i32, i32) {
    %c0_i32 = arith.constant 0 : i32
    %c0_i32_0 = arith.constant 0 : i32
    %c0_i32_1 = arith.constant 0 : i32
    return %c0_i32, %c0_i32_0 : i32, i32
  }
  func.func @transform_20(%arg0: i32) -> (i32, i32, i32) {
    %c0_i32 = arith.constant 0 : i32
    %c0_i32_0 = arith.constant 0 : i32
    %c0_i32_1 = arith.constant 0 : i32
    return %arg0, %c0_i32, %c0_i32_0 : i32, i32, i32
  }
  func.func @transform_21(%arg0: i32) -> (i32, i32, i32) {
    %c0_i32 = arith.constant 0 : i32
    %c0_i32_0 = arith.constant 0 : i32
    %c0_i32_1 = arith.constant 0 : i32
    return %arg0, %c0_i32, %c0_i32_0 : i32, i32, i32
  }
}

</mosaic_0001>

<bundles_post_ra>
// kernel: cnn_ae_forward.1
= control target key start
LH: loop header
LB: loop body
LE: loop exit
PB: predicated region body
PF: predicated region fallthrough
CT: control target
= control target key end

     0   :  { %s9821_s0 = inlined_call_operand.vmem [shape: f32[2,128,9], index: 0, kind: input, shape index: {}]   ;;  %s9822_s1 = inlined_call_operand.vmem [shape: bf16[72,32], index: 1, kind: input, shape index: {}]   ;;  %s9823_s2 = inlined_call_operand.vmem [shape: f32[1,32], index: 2, kind: input, shape index: {}]   ;;  %s9824_s3 = inlined_call_operand.vmem [shape: bf16[256,64], index: 3, kind: input, shape index: {}]   ;;  %s9825_s4 = inlined_call_operand.vmem [shape: f32[1,64], index: 4, kind: input, shape index: {}]   ;;  %s9826_s5 = inlined_call_operand.vmem [shape: bf16[512,128], index: 5, kind: input, shape index: {}]   ;;  %s9827_s6 = inlined_call_operand.vmem [shape: f32[1,128], index: 6, kind: input, shape index: {}]   ;;  %s9828_s7 = inlined_call_operand.vmem [shape: bf16[1024,64], index: 7, kind: input, shape index: {}]   ;;  %s9829_s8 = inlined_call_operand.vmem [shape: f32[1,64], index: 8, kind: input, shape index: {}]   ;;  %s9830_s9 = inlined_call_operand.vmem [shape: bf16[34,33], index: 9, kind: input, shape index: {}]   ;;  %s9831_s10 = inlined_call_operand.vmem [shape: f32[34,1], index: 10, kind: input, shape index: {}]   ;;  %s9832_s11 = inlined_call_operand.vmem [shape: bf16[512,32], index: 11, kind: input, shape index: {}]   ;;  %s9833_s12 = inlined_call_operand.vmem [shape: f32[1,32], index: 12, kind: input, shape index: {}]   ;;  %s9834_s13 = inlined_call_operand.vmem [shape: bf16[256,9], index: 13, kind: input, shape index: {}]   ;;  %s9835_s14 = inlined_call_operand.vmem [shape: f32[1,9], index: 14, kind: input, shape index: {}]   ;;  %s9836_s15 = inlined_call_operand.vmem [shape: bf16[128,127], index: 15, kind: input, shape index: {}]   ;;  %s9837_s16 = inlined_call_operand.vmem [shape: f32[128,1], index: 16, kind: input, shape index: {}]   ;;  %s9838_s17 = inlined_call_operand.vmem [shape: bf16[34,36], index: 17, kind: input, shape index: {}]   ;;  %s9839_s18 = inlined_call_operand.vmem [shape: bf16[66,68], index: 18, kind: input, shape index: {}]   ;;  %s9840_s19 = inlined_call_operand.vmem [shape: bf16[128,130], index: 19, kind: input, shape index: {}]   ;;  %s9841_s20 = inlined_call_operand.vmem [shape: f32[2,128,9], index: 20, kind: output, shape index: {0}]   ;;  %s9842_s21 = inlined_call_operand.vmem [shape: f32[2,18,128], index: 21, kind: output, shape index: {1}]  }
   0x1   :  { %9902 = sst [smem:[#allocation28_spill]] %s9821_s0 }
   0x2   :  { %9903 = sst [smem:[#allocation29_spill]] %s9822_s1 }
   0x3   :  { %9904 = sst [smem:[#allocation30_spill]] %s9823_s2  ;;  %s7119_s2 = smov 0  }
   0x4   :  { %9905 = sst [smem:[#allocation31_spill]] %s9824_s3 }
   0x5   :  { %9906 = sst [smem:[#allocation32_spill]] %s9825_s4 }
   0x6   :  { %9907 = sst [smem:[#allocation33_spill]] %s9826_s5 }
   0x7 LB: > { %s5893_s25 = sadd.s32 4294967295, %s6994_s2   ;;  %p5897_p0 = scmp.ge.s32.totalorder %s6994_s2, 1  ;;  %s6994_s2 = sphi %s7119_s2, %s32_s2  }
   0x8   : > { %p590_p1 = scmp.lt.s32.totalorder %s6994_s2, 3 }
   0xa   : > { %p591_p2 = pnand %p5897_p0, %p590_p1 }
   0xc   : > { %594 = sbr.rel (%p591_p2) target bundleno = 3091 (0xc13), region = 100 }
  0x11   : > { %p655_p3 = scmp.lt.s32.totalorder %s5893_s25, 1  ;;  %s9908_s28 = sld [smem:[#allocation28_spill]]  ;;  %vm743_vm0 = vcmask 1041408   ;;  %vm9846_vm1 = vcmask 1045504   ;;  %vm9858_vm2 = vcmask 1046528   ;;  %vm9861_vm5 = vcmask 1044480  }
  0x12   : > { %s6996_s0 = smov 36   ;;  %s6997_s4 = smov 18   ;;  %vm890_vm3 = vsmask.f32 6400  ;;  %vm765_vm4 = vsmask.f32 7424 }
  0x13   : > { %s10157_s25 = smov (!%p655_p3, %s5893_s25), 1  ;;  %s6998_s30 = smov 54   ;;  %vm9873_vm6 = vsmask.f32 4352  ;;  %vm9874_vm7 = vsmask.f32 5376 }
  0x14   : > { %s9856_s26 = sshll.u32 %s10157_s25, 7  ;;  %s6999_s5 = smov 27   ;;  %vm1316_vm8 = vcmask 1043456   ;;  %vm9847_vm9 = vcmask 72704   ;;  %vm1143_vm10 = vcmask 146432   ;;  %vm1162_vm11 = vcmask 220160  }
  0x15   : > { %s7000_s22 = smov 9   ;;  %s7001_s23 = smov 63   ;;  %vm9857_vm12 = vcmask 293888   ;;  %vm1200_vm13 = vcmask 367616   ;;  %vm1219_vm14 = vcmask 441344   ;;  %vm1238_vm15 = vcmask 515072  }
  0x16   : > { %s7002_s1 = smov 45   ;;  %s9909_s3 = sld [smem:[#allocation29_spill]] }
  0x17   : > { %s7135_s29 = scalar_lea.vmem %s9908_s28, %s9856_s26  ;;  %s9946_s27 = sld [smem:[#allocation32_spill]] }
  0x18   : > { %v671_v0 = vld [vmem:[%s7135_s29] sm:$0xff]  ;;  %v672_v1 = vld [vmem:[%s7135_s29 + $0x8] sm:$0xff]  ;;  %v673_v2 = vld [vmem:[%s7135_s29 + $0x10] sm:$0xff]  ;;  %s9951_s26 = sld [smem:[#allocation33_spill]]  ;;  %s6957_s28 = smul.u32 24, %s10157_s25 }
  0x19   : > { %v674_v3 = vld [vmem:[%s7135_s29 + $0x18] sm:$0xff]  ;;  %v675_v4 = vld [vmem:[%s7135_s29 + $0x20] sm:$0xff]  ;;  %v676_v5 = vld [vmem:[%s7135_s29 + $0x28] sm:$0xff]  ;;  %v687_v6 = vpack.c.bf16 %v671_v0, %v671_v0  ;;  %v688_v7 = vpack.c.bf16 %v672_v1, %v672_v1  ;;  %v689_v8 = vpack.c.bf16 %v673_v2, %v673_v2 }
  0x1a   : > { %v690_v9 = vpack.c.bf16 %v674_v3, %v674_v3  ;;  %v691_v10 = vpack.c.bf16 %v675_v4, %v675_v4  ;;  %v692_v11 = vpack.c.bf16 %v676_v5, %v676_v5  ;;  %v677_v48 = vld [vmem:[%s7135_s29 + $0x30] sm:$0xff]  ;;  %v678_v49 = vld [vmem:[%s7135_s29 + $0x38] sm:$0xff]  ;;  %s669_s24 = scalar_lea.vmem %s9842_s21, %s6957_s28  ;;  %s10054_s28 = smov 96  }
  0x1b   : > { %v719_v12 = vunpack.c.l.b16 %v687_v6  ;;  %v720_v13 = vunpack.c.l.b16 %v688_v7  ;;  %v721_v14 = vunpack.c.l.b16 %v689_v8  ;;  %v693_v58 = vpack.c.bf16 %v677_v48, %v677_v48 }
  0x1c   : > { %v722_v15 = vunpack.c.l.b16 %v690_v9  ;;  %v723_v16 = vunpack.c.l.b16 %v691_v10  ;;  %v724_v17 = vunpack.c.l.b16 %v692_v11  ;;  %v694_v59 = vpack.c.bf16 %v678_v49, %v678_v49 }
  0x1d   : > { %v735_v18 = vpack.c.b16 %v720_v13, %v719_v12  ;;  %v725_v3 = vunpack.c.l.b16 %v693_v58 }
  0x1e   : > { %v736_v19 = vpack.c.b16 %v722_v15, %v721_v14  ;;  %v737_v20 = vpack.c.b16 %v724_v17, %v723_v16  ;;  %v726_v4 = vunpack.c.l.b16 %v694_v59 }
  0x1f   : > { %v744_v21 = vrot.slane %v735_v18, 6 }
  0x20   : > { %v745_v22 = vrot.slane %v736_v19, 6  ;;  %v7149_v25 = vrot.slane %v737_v20, 6  ;;  %v738_v13 = vpack.c.b16 %v726_v4, %v725_v3  ;;  %v679_v19 = vld [vmem:[%s7135_s29 + $0x40] sm:$0xff] }
  0x21   : > { %v7144_v23 = vsel %vm743_vm0, 0, %v744_v21 }
  0x22   : > { %v7147_v24 = vsel %vm743_vm0, %v744_v21, %v745_v22  ;;  %v945_v26 = vrot.slane %v7144_v23, 2  ;;  %v855_v27 = vrot.slane %v7144_v23, 1  ;;  %v7156_v30 = vshrl.u32 %v7144_v23, 16 }
  0x23   : > { %v946_v28 = vrot.slane %v7147_v24, 2  ;;  %v856_v29 = vrot.slane %v7147_v24, 1  ;;  %v7159_v31 = vshll.u32 %v7144_v23, 16  ;;  %v7162_v32 = vshll.u32 %v7147_v24, 16 }
  0x24   : > { %v777_v33 = vshrl.u32 %v7147_v24, 16  ;;  %v891_v36 = vrot.slane %v7156_v30, 1  ;;  %v7177_v41 = vsel %vm743_vm0, %v745_v22, %v7149_v25  ;;  %v1035_v44 = vrot.slane %v7144_v23, 3 }
  0x25   : > { %v947_v34 = vsel %vm9846_vm1, %v945_v26, %v946_v28  ;;  %v857_v35 = vsel %vm9858_vm2, %v855_v27, %v856_v29  ;;  %v892_v37 = vrot.slane %v7159_v31, 2  ;;  %v895_v39 = vrot.slane %v7162_v32, 2  ;;  %v680_v26 = vld [vmem:[%s7135_s29 + $0x48] sm:$0xff]  ;;  %v681_v27 = vld [vmem:[%s7135_s29 + $0x50] sm:$0xff] }
  0x26   : > { %962 = vrot.lane.b32.xlu1 %v947_v34, %s6996_s0  ;;  %872 = vrot.lane.b32.xlu0 %v857_v35, %s6997_s4  ;;  %v894_v38 = vrot.slane %v777_v33, 1  ;;  %v770_v40 = vrot.slane %v7159_v31, 1  ;;  %v775_v43 = vrot.slane %v7162_v32, 1  ;;  %v1036_v47 = vrot.slane %v7147_v24, 3 }
  0x27   : > { %v893_v42 = vor.u32 %v892_v37, %v891_v36  ;;  %v7188_v50 = vshll.u32 %v7177_v41, 16  ;;  %v1071_v51 = vrot.slane %v7156_v30, 3  ;;  %v1072_v52 = vrot.slane %v7159_v31, 4  ;;  %v683_v36 = vld [vmem:[%s7135_s29 + $0x60] sm:$0xff]  ;;  %v684_v37 = vld [vmem:[%s7135_s29 + $0x68] sm:$0xff] }
  0x28   : > { %v7181_v45 = vor.u32 %v895_v39, %v894_v38  ;;  %v771_v46 = vor.u32 %v770_v40, %v7156_v30  ;;  %v1074_v53 = vrot.slane %v777_v33, 3  ;;  %v1075_v56 = vrot.slane %v7162_v32, 4 }
  0x29   : > { %v1037_v57 = vsel %vm9861_vm5, %v1035_v44, %v1036_v47  ;;  %v858_v60 = vrot.slane %v7177_v41, 1  ;;  %v783_v61 = vrot.slane %v7188_v50, 1  ;;  %v779_v62 = vor.u32 %v777_v33, %v775_v43 }
  0x2a   : > { %v897_v54 = vsel %vm890_vm3, %v893_v42, %v7181_v45  ;;  %v776_v55 = vsel %vm765_vm4, %v771_v46, %v775_v43  ;;  %1052 = vrot.lane.b32.xlu2 %v1037_v57, %s6998_s30  ;;  %v1073_v63 = vor.u32 %v1072_v52, %v1071_v51  ;;  %v1076_v0 = vor.u32 %v1075_v56, %v1074_v53 }
  0x2b   : > { %v7205_v1 = vshrl.u32 %v7177_v41, 16  ;;  %v981_v2 = vrot.slane %v7156_v30, 2  ;;  %v859_v5 = vsel %vm9858_vm2, %v856_v29, %v858_v60  ;;  %v982_v6 = vrot.slane %v7159_v31, 3  ;;  %v682_v29 = vld [vmem:[%s7135_s29 + $0x58] sm:$0xff] }
  0x2c   : > { %v984_v7 = vrot.slane %v777_v33, 2  ;;  %v985_v8 = vrot.slane %v7162_v32, 3  ;;  %v784_v9 = vsel %vm765_vm4, %v779_v62, %v783_v61  ;;  %v1077_v10 = vsel %vm9873_vm6, %v1073_v63, %v1076_v0 }
  0x2d   : > { %v898_v11 = vrot.slane %v7205_v1, 1  ;;  %v899_v12 = vrot.slane %v7188_v50, 2  ;;  %v983_v14 = vor.u32 %v982_v6, %v981_v2  ;;  %v948_v16 = vrot.slane %v7177_v41, 2 }
  0x2e   : > { %926 = vrot.lane.b32.xlu1 %v897_v54, %s6999_s5  ;;  %834 = vrot.lane.b32.xlu0 %v776_v55, %s7000_s22  ;;  %v986_v15 = vor.u32 %v985_v8, %v984_v7  ;;  %v7223_v18 = vrot.slane %v738_v13, 6  ;;  %v988_v21 = vrot.slane %v7205_v1, 2  ;;  %v989_v22 = vrot.slane %v7188_v50, 3 }
  0x2f   : > { %v900_v17 = vor.u32 %v899_v12, %v898_v11  ;;  %v1078_v30 = vrot.slane %v7205_v1, 3  ;;  %v1079_v31 = vrot.slane %v7188_v50, 4  ;;  %v949_v32 = vsel %vm9846_vm1, %v946_v28, %v948_v16 }
  0x30   : > { %v987_v20 = vsel %vm9874_vm7, %v983_v14, %v986_v15  ;;  %v695_v34 = vpack.c.bf16 %v679_v19, %v679_v19  ;;  %v7245_v35 = vsel %vm743_vm0, %v7149_v25, %v7223_v18  ;;  %v696_v38 = vpack.c.bf16 %v680_v26, %v680_v26 }
  0x31   : > { %v901_v33 = vsel %vm890_vm3, %v7181_v45, %v900_v17  ;;  %v697_v39 = vpack.c.bf16 %v681_v27, %v681_v27  ;;  %v698_v40 = vpack.c.bf16 %v682_v29, %v682_v29  ;;  %v990_v42 = vor.u32 %v989_v22, %v988_v21 }
  0x32   : > { %874 = vrot.lane.b32.xlu2 %v859_v5, %s6997_s4  ;;  %v1080_v28 = vor.u32 %v1079_v31, %v1078_v30  ;;  %v1038_v43 = vrot.slane %v7177_v41, 3  ;;  %v7253_v44 = vshll.u32 %v7245_v35, 16  ;;  %v7256_v45 = vshrl.u32 %v7245_v35, 16 }
  0x33   : > { %v699_v25 = vpack.c.bf16 %v683_v36, %v683_v36  ;;  %v700_v46 = vpack.c.bf16 %v684_v37, %v684_v37  ;;  %v727_v48 = vunpack.c.l.b16 %v695_v34  ;;  %v728_v49 = vunpack.c.l.b16 %v696_v38 }
  0x34   : > { %v729_v51 = vunpack.c.l.b16 %v697_v39  ;;  %v730_v52 = vunpack.c.l.b16 %v698_v40  ;;  %v991_v53 = vsel %vm9874_vm7, %v986_v15, %v990_v42  ;;  %v1081_v54 = vsel %vm9873_vm6, %v1076_v0, %v1080_v28 }
  0x35   : > { %v1039_v55 = vsel %vm9861_vm5, %v1036_v47, %v1038_v43  ;;  %v902_v56 = vrot.slane %v7256_v45, 1  ;;  %v903_v57 = vrot.slane %v7253_v44, 2  ;;  %v731_v58 = vunpack.c.l.b16 %v699_v25 }
  0x36   : > { %836 = vrot.lane.b32.xlu1 %v784_v9, %s7000_s22  ;;  %1106 = vrot.lane.b32.xlu0 %v1077_v10, %s7001_s23  ;;  %v732_v59 = vunpack.c.l.b16 %v700_v46  ;;  %v739_v62 = vpack.c.b16 %v728_v49, %v727_v48  ;;  %v740_v63 = vpack.c.b16 %v730_v52, %v729_v51  ;;  %v787_v2 = vor.u32 %v7205_v1, %v783_v61 }
  0x37   : > { %v791_v0 = vrot.slane %v7253_v44, 1  ;;  %v7272_v47 = vor.u32 %v903_v57, %v902_v56  ;;  %v860_v3 = vrot.slane %v7245_v35, 1  ;;  %v992_v1 = vrot.slane %v7256_v45, 2  ;;  %v685_v56 = vld [vmem:[%s7135_s29 + $0x70] sm:$0xff]  ;;  %v686_v57 = vld [vmem:[%s7135_s29 + $0x78] sm:$0xff]  ;;  %s9941_s29 = sld [smem:[#allocation31_spill]] }
  0x38   : > { %v741_v4 = vpack.c.b16 %v732_v59, %v731_v58  ;;  %v751_v5 = vrot.slane %v739_v62, 6  ;;  %v753_v6 = vrot.slane %v740_v63, 6  ;;  %v993_v8 = vrot.slane %v7253_v44, 3 }
  0x39   : > { %v792_v7 = vsel %vm765_vm4, %v787_v2, %v791_v0  ;;  %v905_v50 = vsel %vm890_vm3, %v900_v17, %v7272_v47  ;;  %v861_v61 = vsel %vm9858_vm2, %v858_v60, %v860_v3  ;;  %v950_v11 = vrot.slane %v7245_v35, 2 }
  0x3a   : > { %1016 = vrot.lane.b32.xlu2 %v987_v20, %s7002_s1  ;;  %v7288_v9 = vsel %vm743_vm0, %v751_v5, %v753_v6  ;;  %v7290_v10 = vrot.slane %v741_v4, 6  ;;  %v1040_v12 = vrot.slane %v7245_v35, 3  ;;  %v7297_v60 = vor.u32 %v993_v8, %v992_v1 }
  0x3b   : > { %v7300_v13 = vshll.u32 %v7288_v9, 16  ;;  %v1082_v15 = vrot.slane %v7256_v45, 3  ;;  %v1083_v17 = vrot.slane %v7253_v44, 4  ;;  %v951_v19 = vsel %vm9846_vm1, %v948_v16, %v950_v11 }
  0x3c   : > { %v7304_v14 = vsel %vm743_vm0, %v753_v6, %v7290_v10  ;;  %v1041_v20 = vsel %vm9861_vm5, %v1038_v43, %v1040_v12  ;;  %v995_v21 = vsel %vm9874_vm7, %v990_v42, %v7297_v60  ;;  %v809_v26 = vshrl.u32 %v7288_v9, 16 }
  0x3d   : > { %v807_v22 = vrot.slane %v7300_v13, 1  ;;  %v7321_v27 = vshll.u32 %v7304_v14, 16  ;;  %v7324_v29 = vor.u32 %v1083_v17, %v1082_v15  ;;  %v864_v16 = vrot.slane %v7288_v9, 1 }
  0x3e   : > { %964 = vrot.lane.b32.xlu1 %v949_v32, %s6996_s0  ;;  %928 = vrot.lane.b32.xlu0 %v901_v33, %s6999_s5  ;;  %v866_v30 = vrot.slane %v7304_v14, 1  ;;  %v7334_v33 = vshrl.u32 %v7304_v14, 16  ;;  %v910_v36 = vrot.slane %v809_v26, 1  ;;  %v911_v37 = vrot.slane %v7300_v13, 2 }
  0x3f   : > { %v811_v31 = vor.u32 %v809_v26, %v807_v22  ;;  %v815_v32 = vrot.slane %v7321_v27, 1  ;;  %v1085_v34 = vsel %vm9873_vm6, %v1080_v28, %v7324_v29  ;;  %v915_v39 = vrot.slane %v7321_v27, 2 }
  0x40   : > { %v914_v38 = vrot.slane %v7334_v33, 1  ;;  %v867_v40 = vsel %vm9858_vm2, %v864_v16, %v866_v30  ;;  %v1001_v42 = vrot.slane %v7300_v13, 3  ;;  %v1000_v43 = vrot.slane %v809_v26, 2 }
  0x41   : > { %v816_v28 = vsel %vm765_vm4, %v811_v31, %v815_v32  ;;  %v1004_v25 = vrot.slane %v7334_v33, 2  ;;  %v1005_v46 = vrot.slane %v7321_v27, 3  ;;  %v7353_v48 = vor.u32 %v911_v37, %v910_v36 }
  0x42   : > { %1018 = vrot.lane.b32.xlu2 %v991_v53, %s7002_s1  ;;  %v7355_v49 = vor.u32 %v915_v39, %v914_v38  ;;  %v954_v51 = vrot.slane %v7288_v9, 2  ;;  %v956_v52 = vrot.slane %v7304_v14, 2  ;;  %v7361_v53 = vor.u32 %v1001_v42, %v1000_v43  ;;  %v1265_v43 = vld [vmem:[%s9909_s3 + $0x20] sm:$0xf] }
  0x43   : > { %v1090_v62 = vrot.slane %v809_v26, 3  ;;  %v1091_v63 = vrot.slane %v7300_v13, 4  ;;  %v1094_v2 = vrot.slane %v7334_v33, 3  ;;  %v1095_v4 = vrot.slane %v7321_v27, 4 }
  0x44   : > { %v917_v58 = vsel %vm890_vm3, %v7353_v48, %v7355_v49  ;;  %v957_v59 = vsel %vm9846_vm1, %v954_v51, %v956_v52  ;;  %v701_v6 = vpack.c.bf16 %v685_v56, %v685_v56  ;;  %v795_v15 = vor.u32 %v7256_v45, %v791_v0 }
  0x45   : > { %v7393_v1 = vor.u32 %v1091_v63, %v1090_v62  ;;  %v7395_v8 = vor.u32 %v1095_v4, %v1094_v2  ;;  %v6751_v2 = vld [vmem:[%s9909_s3 + $0x18] sm:$0xff] }
  0x46   : > { %1108 = vrot.lane.b32.xlu1 %v1081_v54, %s7001_s23  ;;  %1054 = vrot.lane.b32.xlu0 %v1039_v55, %s6998_s30  ;;  %v7363_v54 = vor.u32 %v1005_v46, %v1004_v25  ;;  %v7367_v55 = vsel %vm743_vm0, %v7223_v18, %v751_v5  ;;  %v1287_v25 = vunpack.c.l.b16 %v1265_v43 }
  0x47   : > { %v7386_v5 = vshll.u32 %v7367_v55, 16  ;;  %v1097_v31 = vsel %vm9873_vm6, %v7393_v1, %v7395_v8  ;;  %v862_v36 = vrot.slane %v7367_v55, 1  ;;  %v952_v37 = vrot.slane %v7367_v55, 2 }
  0x48   : > { %v1007_v18 = vsel %vm9874_vm7, %v7361_v53, %v7363_v54  ;;  %v1042_v63 = vrot.slane %v7367_v55, 3 }
  0x49   : > { %v799_v17 = vrot.slane %v7386_v5, 1  ;;  %v907_v0 = vrot.slane %v7386_v5, 2  ;;  %v953_v46 = vsel %vm9846_vm1, %v950_v11, %v952_v37 }
  0x4a   : > { %838 = vrot.lane.b32.xlu2 %v792_v7, %s7000_s22  ;;  %v702_v7 = vpack.c.bf16 %v686_v57, %v686_v57  ;;  %v1087_v57 = vrot.slane %v7386_v5, 4 }
  0x4b   : > { %v800_v44 = vsel %vm765_vm4, %v795_v15, %v799_v17 }
  0x4e   : > { %930 = vrot.lane.b32.xlu1 %v905_v50, %s6999_s5  ;;  %876 = vrot.lane.b32.xlu0 %v861_v61, %s6997_s4  ;;  %v1044_v50 = vrot.slane %v7288_v9, 3  ;;  %v1046_v61 = vrot.slane %v7304_v14, 3 }
  0x50   : > { %v1047_v26 = vsel %vm9861_vm5, %v1044_v50, %v1046_v61 }
  0x52   : > { %966 = vrot.lane.b32.xlu2 %v951_v19, %s6996_s0  ;;  %v7402_v19 = vshrl.u32 %v7367_v55, 16 }
  0x54   : > { %v906_v45 = vrot.slane %v7402_v19, 1  ;;  %v996_v42 = vrot.slane %v7402_v19, 2 }
  0x56   : > { %1056 = vrot.lane.b32.xlu1 %v1041_v20, %s6998_s30  ;;  %1020 = vrot.lane.b32.xlu0 %v995_v21, %s7002_s1  ;;  %v733_v20 = vunpack.c.l.b16 %v701_v6  ;;  %v734_v21 = vunpack.c.l.b16 %v702_v7  ;;  %v7422_v38 = vor.u32 %v907_v0, %v906_v45  ;;  %v1043_v7 = vsel %vm9861_vm5, %v1040_v12, %v1042_v63 }
  0x58   : > { %v909_v56 = vsel %vm890_vm3, %v7272_v47, %v7422_v38 }
  0x5a   : > { %1110 = vrot.lane.b32.xlu2 %v1085_v34, %s7001_s23  ;;  %v742_v34 = vpack.c.b16 %v734_v21, %v733_v20  ;;  %v6750_v21 = vld [vmem:[%s9909_s3 + $0x10] sm:$0xff] }
  0x5c   : > { %v7424_v39 = vrot.slane %v742_v34, 6 }
  0x5e   : > { %882 = vrot.lane.b32.xlu1 %v867_v40, %s6997_s4  ;;  %844 = vrot.lane.b32.xlu0 %v816_v28, %s7000_s22  ;;  %v863_v40 = vsel %vm9858_vm2, %v860_v3, %v862_v36  ;;  %v997_v28 = vrot.slane %v7386_v5, 3  ;;  %v1086_v3 = vrot.slane %v7402_v19, 3  ;;  %v865_v5 = vsel %vm9858_vm2, %v862_v36, %v864_v16 }
  0x5f   : > { %v913_v16 = vsel %vm890_vm3, %v7422_v38, %v7353_v48 }
  0x60   : > { %v7452_v62 = vor.u32 %v997_v28, %v996_v42  ;;  %v7456_v11 = vor.u32 %v1087_v57, %v1086_v3 }
  0x62   : > { %936 = vrot.lane.b32.xlu2 %v917_v58, %s6999_s5  ;;  %v7449_v58 = vsel %vm743_vm0, %v7290_v10, %v7424_v39  ;;  %v999_v4 = vsel %vm9874_vm7, %v7297_v60, %v7452_v62  ;;  %v1089_v6 = vsel %vm9873_vm6, %v7324_v29, %v7456_v11  ;;  %v819_v60 = vor.u32 %v7334_v33, %v815_v32  ;;  %v6749_v32 = vld [vmem:[%s9909_s3 + $0x8] sm:$0xff] }
  0x63   : > { %v7463_v10 = vshrl.u32 %v7449_v58, 16  ;;  %v958_v0 = vrot.slane %v7449_v58, 2  ;;  %v1003_v36 = vsel %vm9874_vm7, %v7452_v62, %v7361_v53  ;;  %v1045_v62 = vsel %vm9861_vm5, %v1042_v63, %v1044_v50 }
  0x65   : > { %v918_v15 = vrot.slane %v7463_v10, 1  ;;  %v959_v42 = vsel %vm9846_vm1, %v956_v52, %v958_v0  ;;  %v803_v52 = vor.u32 %v7402_v19, %v799_v17 }
  0x66   : > { %1026 = vrot.lane.b32.xlu1 %v1007_v18, %s7002_s1  ;;  %972 = vrot.lane.b32.xlu0 %v957_v59, %s6996_s0  ;;  %v1292_v59 = vpack.c.b16 %v1287_v25, %v1287_v25  ;;  %v7460_v18 = vshll.u32 %v7449_v58, 16  ;;  %v1098_v25 = vrot.slane %v7463_v10, 3 }
  0x68   : > { %v1318_v47 = vsel %vm1316_vm8, %v1292_v59, 0  ;;  %v919_v20 = vrot.slane %v7460_v18, 2  ;;  %v823_v29 = vrot.slane %v7460_v18, 1  ;;  %v1009_v45 = vrot.slane %v7460_v18, 3 }
  0x69   : > { %1323 = vmatpush.bf16.msra.mxu0 %v1318_v47  ;;  %6944 = vmatpush.bf16.msra.mxu3 %v1318_v47  ;;  %vm1297_vm8 = vcmask 588800  }
  0x6a   : > { %1062 = vrot.lane.b32.xlu2 %v1047_v26, %s6998_s30  ;;  %v7491_v12 = vor.u32 %v919_v20, %v918_v15  ;;  %v868_v26 = vrot.slane %v7449_v58, 1  ;;  %v824_v27 = vsel %vm765_vm4, %v819_v60, %v823_v29  ;;  %v827_v38 = vor.u32 %v7463_v10, %v823_v29 }
  0x6c   : > { %v921_v33 = vsel %vm890_vm3, %v7355_v49, %v7491_v12  ;;  %v6748_v49 = vld [vmem:[%s9909_s3] sm:$0xff] }
  0x6d   : > { %1324 = vmatpush.bf16.msra.mxu0 %v6751_v2  ;;  %6945 = vmatpush.bf16.msra.mxu3 %v6751_v2 }
  0x6e   : > { %1116 = vrot.lane.b32.xlu1 %v1097_v31, %s7001_s23  ;;  %840 = vrot.lane.b32.xlu0 %v800_v44, %s7000_s22  ;;  %v869_v31 = vsel %vm9858_vm2, %v866_v30, %v868_v26  ;;  %v1008_v44 = vrot.slane %v7463_v10, 2  ;;  %v1048_v30 = vrot.slane %v7449_v58, 3 }
  0x70   : > { %v1049_v28 = vsel %vm9861_vm5, %v1046_v61, %v1048_v30 }
  0x71   : > { %1325 = vmatpush.bf16.msra.mxu0 %v6750_v21  ;;  %6946 = vmatpush.bf16.msra.mxu3 %v6750_v21 }
  0x72   : > { %878 = vrot.lane.b32.xlu2 %v863_v40, %s6997_s4  ;;  %v7518_v40 = vor.u32 %v1009_v45, %v1008_v44 }
  0x74   : > { %v1011_v43 = vsel %vm9874_vm7, %v7363_v54, %v7518_v40  ;;  %v808_v54 = vsel %vm765_vm4, %v803_v52, %v807_v22  ;;  %v7561_v22 = vsel %vm743_vm0, %v7424_v39, 0 }
  0x75   : > { %1326 = vmatpush.bf16.msra.mxu0 %v6749_v32  ;;  %6947 = vmatpush.bf16.msra.mxu3 %v6749_v32  ;;  %v828_v57 = vshll.u32 %v7561_v22, 16  ;;  %v870_v63 = vrot.slane %v7561_v22, 1 }
  0x76   : > { %968 = vrot.lane.b32.xlu1 %v953_v46, %s6996_s0  ;;  %932 = vrot.lane.b32.xlu0 %v909_v56, %s6999_s5  ;;  %v1099_v46 = vrot.slane %v7460_v18, 4  ;;  %v1093_v18 = vsel %vm9873_vm6, %v7456_v11, %v7393_v1 }
  0x77   : > { %v830_v39 = vrot.slane %v828_v57, 1  ;;  %v871_v21 = vsel %vm9858_vm2, %v868_v26, %v870_v63  ;;  %v1013_v32 = vrot.slane %v828_v57, 3  ;;  %v1103_v45 = vrot.slane %v828_v57, 4 }
  0x78   : > { %v7543_v61 = vor.u32 %v1099_v46, %v1098_v25 }
  0x79   : > { %1327 = vmatpush.bf16.msra.mxu0 %v6748_v49  ;;  %6948 = vmatpush.bf16.msra.mxu3 %v6748_v49  ;;  %v831_v2 = vsel %vm765_vm4, %v827_v38, %v830_v39 }
  0x7a   : > { %1022 = vrot.lane.b32.xlu2 %v999_v4, %s7002_s1  ;;  %v1101_v17 = vsel %vm9873_vm6, %v7395_v8, %v7543_v61  ;;  %v955_v8 = vsel %vm9846_vm1, %v952_v37, %v954_v51  ;;  %v7582_v51 = vshrl.u32 %v7561_v22, 16  ;;  %v923_v4 = vrot.slane %v828_v57, 2 }
  0x7c   : > { %v1102_v44 = vrot.slane %v7582_v51, 3 }
  0x7e   : > { %1112 = vrot.lane.b32.xlu1 %v1089_v6, %s7001_s23  ;;  %1058 = vrot.lane.b32.xlu0 %v1043_v7, %s6998_s30  ;;  %v960_v7 = vrot.slane %v7561_v22, 2 }
  0x82   : > { %846 = vrot.lane.b32.xlu2 %v824_v27, %s7000_s22  ;;  %v1012_v27 = vrot.slane %v7582_v51, 2 }
  0x84   : > { %v7515_v34 = vpop.permute.xlu2 %1052  ;;  %v1014_v49 = vor.u32 %v1013_v32, %v1012_v27 }
  0x86   : > { %938 = vrot.lane.b32.xlu1 %v921_v33, %s6999_s5  ;;  %884 = vrot.lane.b32.xlu0 %v869_v31, %s6997_s4  ;;  %v961_v31 = vsel %vm9846_vm1, %v958_v0, %v960_v7  ;;  %v1015_v25 = vsel %vm9874_vm7, %v7518_v40, %v1014_v49  ;;  %vm9860_vm1 = vcmask 261120  }
  0x8a   : > { %974 = vrot.lane.b32.xlu2 %v959_v42, %s6996_s0  ;;  %v1104_v42 = vor.u32 %v1103_v45, %v1102_v44 }
  0x8c   : > { %v7541_v56 = vpop.permute.xlu2 %874  ;;  %v1105_v52 = vsel %vm9873_vm6, %v7543_v61, %v1104_v42 }
  0x8e   : > { %1064 = vrot.lane.b32.xlu1 %v1049_v28, %s6998_s30  ;;  %1028 = vrot.lane.b32.xlu0 %v1011_v43, %s7002_s1 }
  0x92   : > { %842 = vrot.lane.b32.xlu2 %v808_v54, %s7000_s22 }
  0x94   : > { %v1017_v19 = vpop.permute.xlu2 %1016 }
  0x96   : > { %880 = vrot.lane.b32.xlu1 %v865_v5, %s6997_s4  ;;  %1118 = vrot.lane.b32.xlu0 %v1101_v17, %s7001_s23 }
  0x98   : > { %v963_v13 = vpop.permute.xlu1 %962  ;;  %v873_v3 = vpop.permute.xlu0 %872 }
  0x9a   : > { %934 = vrot.lane.b32.xlu2 %v913_v16, %s6999_s5 }
  0x9c   : > { %v7578_v48 = vpop.permute.xlu2 %1018 }
  0x9e   : > { %970 = vrot.lane.b32.xlu0 %v955_v8, %s6996_s0  ;;  %1024 = vrot.lane.b32.xlu1 %v1003_v36, %s7002_s1 }
  0xa0   : > { %v927_v37 = vpop.permute.xlu1 %926  ;;  %v835_v53 = vpop.permute.xlu0 %834 }
  0xa1   : > { %v1126_v59 = vsel %vm9847_vm9, %v7144_v23, %v835_v53  ;;  %v922_v23 = vrot.slane %v7582_v51, 1 }
  0xa2   : > { %v1145_v47 = vsel %vm1143_vm10, %v1126_v59, %v873_v3  ;;  %1060 = vrot.lane.b32.xlu2 %v1045_v62, %s6998_s30 }
  0xa3   : > { %v1164_v10 = vsel %vm1162_vm11, %v1145_v47, %v927_v37  ;;  %v924_v11 = vor.u32 %v923_v4, %v922_v23 }
  0xa4   : > { %v1183_v6 = vsel %vm9857_vm12, %v1164_v10, %v963_v13  ;;  %v839_v1 = vpop.permute.xlu2 %838 }
  0xa5   : > { %v1202_v50 = vsel %vm1200_vm13, %v1183_v6, %v1017_v19  ;;  %v925_v33 = vsel %vm890_vm3, %v7491_v12, %v924_v11  ;;  %v1050_v12 = vrot.slane %v7561_v22, 3  ;;  %v1130_v13 = vsel %vm9847_vm9, %v7177_v41, %v839_v1 }
  0xa6   : > { %1114 = vrot.lane.b32.xlu0 %v1093_v18, %s7001_s23  ;;  %848 = vrot.lane.b32.xlu1 %v831_v2, %s7000_s22  ;;  %v1221_v60 = vsel %vm1219_vm14, %v1202_v50, %v7515_v34 }
  0xa8   : > { %v837_v15 = vpop.permute.xlu1 %836  ;;  %v1107_v20 = vpop.permute.xlu0 %1106 }
  0xa9   : > { %v1240_v29 = vsel %vm1238_vm15, %v1221_v60, %v1107_v20  ;;  %v1128_v26 = vsel %vm9847_vm9, %v7147_v24, %v837_v15  ;;  %v1051_v24 = vsel %vm9861_vm5, %v1048_v30, %v1050_v12 }
  0xaa   : > { %5919 = vmatmul.msk.bf16.vlgmr.msra.gmra.mxu0 %vm1297_vm8, %v1240_v29  ;;  %886 = vrot.lane.b32.xlu2 %v871_v21, %s6997_s4  ;;  %v1147_v0 = vsel %vm1143_vm10, %v1128_v26, %v7541_v56 }
  0xac   : > { %v967_v34 = vpop.permute.xlu2 %966 }
  0xae   : > { %940 = vrot.lane.b32.xlu0 %v925_v33, %s6999_s5  ;;  %976 = vrot.lane.b32.xlu1 %v961_v31, %s6996_s0 }
  0xb0   : > { %v965_v28 = vpop.permute.xlu1 %964  ;;  %v929_v43 = vpop.permute.xlu0 %928 }
  0xb1   : > { %v1166_v46 = vsel %vm1162_vm11, %v1147_v0, %v929_v43 }
  0xb2   : > { %1030 = vrot.lane.b32.xlu2 %v1015_v25, %s7002_s1  ;;  %v1185_v54 = vsel %vm9857_vm12, %v1166_v46, %v965_v28 }
  0xb3   : > { %v1204_v40 = vsel %vm1200_vm13, %v1185_v54, %v7578_v48 }
  0xb4   : > { %v1111_v56 = vpop.permute.xlu2 %1110 }
  0xb6   : > { %1066 = vrot.lane.b32.xlu0 %v1051_v24, %s6998_s30  ;;  %1120 = vrot.lane.b32.xlu1 %v1105_v52, %s7001_s23 }
  0xb8   : > { %v1109_v5 = vpop.permute.xlu1 %1108  ;;  %v1055_v17 = vpop.permute.xlu0 %1054 }
  0xb9   : > { %v1223_v19 = vsel %vm1219_vm14, %v1204_v40, %v1055_v17  ;;  %v7003_v17 = vmov 0.0  }
  0xba   : > { %v1242_v30 = vsel %vm1238_vm15, %v1223_v19, %v1109_v5  ;;  %850 = vrot.lane.b32.xlu2 %v7582_v51, %s7000_s22  ;;  %1391 = vst.msk [vmem:[#allocation2] sm:$0xff] %vm9860_vm1, %v7003_v17  ;;  %s9867_s22 = smov 96  }
  0xbb   : > { %5920 = vmatmul.msk.bf16.gmra.mxu0 %vm1297_vm8, %v1242_v30  ;;  %1392 = vst.msk [vmem:[#allocation2 + $0x8] sm:$0xff] %vm9860_vm1, %v7003_v17 }
  0xbc   : > { %v937_v61 = vpop.permute.xlu2 %936  ;;  %1393 = vst.msk [vmem:[#allocation2 + $0x10] sm:$0xff] %vm9860_vm1, %v7003_v17 }
  0xbd   : > { %1394 = vst.msk [vmem:[#allocation2 + $0x18] sm:$0xff] %vm9860_vm1, %v7003_v17 }
  0xbe   : > { %888 = vrot.lane.b32.xlu0 %v870_v63, %s6997_s4  ;;  %942 = vrot.lane.b32.xlu1 %v922_v23, %s6999_s5  ;;  %1395 = vst.msk [vmem:[#allocation2 + $0x20] sm:$0xff] %vm9860_vm1, %v7003_v17  ;;  %s9869_s5 = smov 64   ;;  %s9988_s4 = smov 64  }
  0xbf   : > { %1396 = vst.msk [vmem:[#allocation2 + $0x28] sm:$0xff] %vm9860_vm1, %v7003_v17 }
  0xc0   : > { %v931_v3 = vpop.permute.xlu1 %930  ;;  %v877_v16 = vpop.permute.xlu0 %876  ;;  %1397 = vst.msk [vmem:[#allocation2 + $0x30] sm:$0xff] %vm9860_vm1, %v7003_v17 }
  0xc1   : > { %v1149_v8 = vsel %vm1143_vm10, %v1130_v13, %v877_v16  ;;  %1398 = vst.msk [vmem:[#allocation2 + $0x38] sm:$0xff] %vm9860_vm1, %v7003_v17 }
  0xc2   : > { %978 = vrot.lane.b32.xlu2 %v960_v7, %s6996_s0  ;;  %v1168_v36 = vsel %vm1162_vm11, %v1149_v8, %v931_v3  ;;  %1399 = vst.msk [vmem:[#allocation2 + $0x40] sm:$0xff] %vm9860_vm1, %v7003_v17 }
  0xc3   : > { %v1187_v48 = vsel %vm9857_vm12, %v1168_v36, %v967_v34  ;;  %1400 = vst.msk [vmem:[#allocation2 + $0x48] sm:$0xff] %vm9860_vm1, %v7003_v17 }
  0xc4   : > { %v1063_v57 = vpop.permute.xlu2 %1062  ;;  %1401 = vst.msk [vmem:[#allocation2 + $0x50] sm:$0xff] %vm9860_vm1, %v7003_v17 }
  0xc5   : > { %1402 = vst.msk [vmem:[#allocation2 + $0x58] sm:$0xff] %vm9860_vm1, %v7003_v17 }
  0xc6   : > { %1032 = vrot.lane.b32.xlu0 %v1012_v27, %s7002_s1  ;;  %1068 = vrot.lane.b32.xlu1 %v1050_v12, %s6998_s30  ;;  %1403 = vst.msk [vmem:[#allocation2 + $0x60] sm:$0xff] %vm9860_vm1, %v7003_v17  ;;  %s9910_s30 = sld [smem:[#allocation30_spill]] }
  0xc7   : > { %1404 = vst.msk [vmem:[#allocation2 + $0x68] sm:$0xff] %vm9860_vm1, %v7003_v17 }
  0xc8   : > { %v1057_v38 = vpop.permute.xlu1 %1056  ;;  %v1021_v39 = vpop.permute.xlu0 %1020  ;;  %1405 = vst.msk [vmem:[#allocation2 + $0x70] sm:$0xff] %vm9860_vm1, %v7003_v17 }
  0xc9   : > { %v1206_v51 = vsel %vm1200_vm13, %v1187_v48, %v1021_v39  ;;  %1406 = vst.msk [vmem:[#allocation2 + $0x78] sm:$0xff] %vm9860_vm1, %v7003_v17 }
  0xca   : > { %v1225_v41 = vsel %vm1219_vm14, %v1206_v51, %v1057_v38  ;;  %1122 = vrot.lane.b32.xlu2 %v1102_v44, %s7001_s23  ;;  %2570 = vst [vmem:[#allocation4] sm:$0xff] %v7003_v17  ;;  %s9865_s23 = smov 32  }
  0xcb   : > { %v1244_v37 = vsel %vm1238_vm15, %v1225_v41, %v1111_v56  ;;  %2571 = vst [vmem:[#allocation4 + $0x8] sm:$0xff] %v7003_v17 }
  0xcc   : > { %5921 = vmatmul.msk.bf16.gmra.mxu0 %vm1297_vm8, %v1244_v37  ;;  %v879_v53 = vpop.permute.xlu2 %878  ;;  %2572 = vst [vmem:[#allocation4 + $0x10] sm:$0xff] %v7003_v17 }
  0xcd   : > { %2573 = vst [vmem:[#allocation4 + $0x18] sm:$0xff] %v7003_v17 }
  0xce   : > { %2574 = vst [vmem:[#allocation4 + $0x20] sm:$0xf] %v7003_v17 }
  0xd0   : > { %v883_v59 = vpop.permute.xlu1 %882  ;;  %v845_v62 = vpop.permute.xlu0 %844 }
  0xd1   : > { %v1136_v47 = vsel %vm9847_vm9, %v7288_v9, %v845_v62  ;;  %v7741_v62 = vld [vmem:[%s9910_s30] ss:$0 sm:$0xff] }
  0xd2   : > { %v1155_v18 = vsel %vm1143_vm10, %v1136_v47, %v883_v59 }
  0xd3   : > { %v1174_v4 = vsel %vm1162_vm11, %v1155_v18, %v937_v61 }
  0xd4   : > { %v1023_v10 = vpop.permute.xlu2 %1022 }
  0xd8   : > { %v1027_v2 = vpop.permute.xlu1 %1026  ;;  %v973_v23 = vpop.permute.xlu0 %972 }
  0xd9   : > { %v1193_v6 = vsel %vm9857_vm12, %v1174_v4, %v973_v23 }
  0xda   : > { %v1212_v50 = vsel %vm1200_vm13, %v1193_v6, %v1027_v2 }
  0xdb   : > { %v1231_v1 = vsel %vm1219_vm14, %v1212_v50, %v1063_v57 }
  0xdc   : > { %v847_v63 = vpop.permute.xlu2 %846 }
  0xdd   : > { %v1138_v12 = vsel %vm9847_vm9, %v7304_v14, %v847_v63 }
  0xe0   : > { %v1117_v11 = vpop.permute.xlu1 %1116  ;;  %v841_v7 = vpop.permute.xlu0 %840 }
  0xe1   : > { %v1250_v15 = vsel %vm1238_vm15, %v1231_v1, %v1117_v11  ;;  %v1132_v9 = vsel %vm9847_vm9, %v7245_v35, %v841_v7 }
  0xe2   : > { %5924 = vmatmul.msk.bf16.vlgmr.msra.gmra.mxu3 %vm1297_vm8, %v1250_v15  ;;  %v1151_v21 = vsel %vm1143_vm10, %v1132_v9, %v879_v53 }
  0xe4   : > { %v975_v20 = vpop.permute.xlu2 %974 }
  0xe8   : > { %v969_v60 = vpop.permute.xlu1 %968  ;;  %v933_v29 = vpop.permute.xlu0 %932 }
  0xe9   : > { %v1170_v27 = vsel %vm1162_vm11, %v1151_v21, %v933_v29 }
  0xea   : > { %v1189_v32 = vsel %vm9857_vm12, %v1170_v27, %v969_v60 }
  0xeb   : > { %v1208_v33 = vsel %vm1200_vm13, %v1189_v32, %v1023_v10 }
  0xec   : > { %v843_v49 = vpop.permute.xlu2 %842 }
  0xed   : > { %v1134_v14 = vsel %vm9847_vm9, %v7367_v55, %v843_v49 }
  0xf0   : > { %v1113_v31 = vpop.permute.xlu1 %1112  ;;  %v1059_v44 = vpop.permute.xlu0 %1058 }
  0xf1   : > { %v1227_v45 = vsel %vm1219_vm14, %v1208_v33, %v1059_v44 }
  0xf2   : > { %v1246_v26 = vsel %vm1238_vm15, %v1227_v45, %v1113_v31 }
  0xf3   : > { %5922 = vmatmul.msk.bf16.gmra.mxu0 %vm1297_vm8, %v1246_v26 }
  0xf4   : > { %v935_v42 = vpop.permute.xlu2 %934 }
  0xf8   : > { %v939_v35 = vpop.permute.xlu1 %938  ;;  %v885_v34 = vpop.permute.xlu0 %884 }
  0xf9   : > { %v1157_v28 = vsel %vm1143_vm10, %v1138_v12, %v885_v34 }
  0xfa   : > { %v1176_v25 = vsel %vm1162_vm11, %v1157_v28, %v939_v35 }
  0xfb   : > { %v1195_v46 = vsel %vm9857_vm12, %v1176_v25, %v975_v20 }
  0xfc   : > { %v1061_v52 = vpop.permute.xlu2 %1060 }
 0x100   : > { %v1065_v43 = vpop.permute.xlu1 %1064  ;;  %v1029_v0 = vpop.permute.xlu0 %1028 }
 0x101   : > { %v1214_v24 = vsel %vm1200_vm13, %v1195_v46, %v1029_v0 }
 0x102   : > { %v1233_v40 = vsel %vm1219_vm14, %v1214_v24, %v1065_v43 }
 0x104   : > { %v887_v30 = vpop.permute.xlu2 %886 }
 0x108   : > { %v881_v54 = vpop.permute.xlu1 %880  ;;  %v1119_v56 = vpop.permute.xlu0 %1118 }
 0x109   : > { %v1252_v5 = vsel %vm1238_vm15, %v1233_v40, %v1119_v56  ;;  %v1153_v19 = vsel %vm1143_vm10, %v1134_v14, %v881_v54 }
 0x10a   : > { %5925 = vmatmul.msk.bf16.gmra.mxu3 %vm1297_vm8, %v1252_v5  ;;  %v1172_v13 = vsel %vm1162_vm11, %v1153_v19, %v935_v42 }
 0x10c   : > { %v1031_v38 = vpop.permute.xlu2 %1030 }
 0x110   : > { %v971_v55 = vpop.permute.xlu0 %970  ;;  %v1025_v61 = vpop.permute.xlu1 %1024 }
 0x111   : > { %v1191_v3 = vsel %vm9857_vm12, %v1172_v13, %v971_v55 }
 0x112   : > { %v1210_v16 = vsel %vm1200_vm13, %v1191_v3, %v1025_v61 }
 0x113   : > { %v1229_v8 = vsel %vm1219_vm14, %v1210_v16, %v1061_v52  ;;  %v9915_v52 = vmov 0 }
 0x114   : > { %v851_v59 = vpop.permute.xlu2 %850 }
 0x115   : > { %v1142_v1 = vsel %vm9847_vm9, %v7561_v22, %v851_v59 }
 0x118   : > { %v1115_v36 = vpop.permute.xlu0 %1114  ;;  %v849_v57 = vpop.permute.xlu1 %848 }
 0x119   : > { %v1248_v48 = vsel %vm1238_vm15, %v1229_v8, %v1115_v36  ;;  %v1140_v39 = vsel %vm9847_vm9, %v7449_v58, %v849_v57  ;;  %vm1407_vm9 = vcmask 254976  }
 0x11a   : > { %5923 = vmatmul.msk.bf16.gmra.mxu0 %vm1297_vm8, %v1248_v48  ;;  %v1159_v37 = vsel %vm1143_vm10, %v1140_v39, %v887_v30  ;;  %1408 = vst.msk [vmem:[#allocation2 + $0x80] sm:$0x3] %vm1407_vm9, %v7003_v17 }
 0x11c   : > { %v979_v63 = vpop.permute.xlu2 %978 }
 0x120   : > { %v941_v51 = vpop.permute.xlu0 %940  ;;  %v977_v41 = vpop.permute.xlu1 %976 }
 0x121   : > { %v1178_v53 = vsel %vm1162_vm11, %v1159_v37, %v941_v51 }
 0x122   : > { %v1197_v47 = vsel %vm9857_vm12, %v1178_v53, %v977_v41 }
 0x123   : > { %v1216_v58 = vsel %vm1200_vm13, %v1197_v47, %v1031_v38 }
 0x124   : > { %v1123_v21 = vpop.permute.xlu2 %1122 }
 0x127   : > { %v1329_v18 = vpop.f32.mrf.mxu0 }
 0x128   : > { %v1330_v10 = vadd.f32 %v7741_v62, %v1329_v18  ;;  %v1067_v2 = vpop.permute.xlu0 %1066  ;;  %v1121_v23 = vpop.permute.xlu1 %1120 }
 0x129   : > { %v1235_v4 = vsel %vm1219_vm14, %v1216_v58, %v1067_v2 }
 0x12a   : > { %v1373_v6 = vmax.f32 %v1330_v10, 0.0  ;;  %v1254_v50 = vsel %vm1238_vm15, %v1235_v4, %v1121_v23 }
 0x12b   : > { %5926 = vmatmul.msk.bf16.gmra.mxu3 %vm1297_vm8, %v1254_v50 }
 0x12c   : > { %1409 = vst.msk [vmem:[#allocation2 + $0x1] sm:$0xff] %vm9860_vm1, %v1373_v6  ;;  %v9922_v6 = vmov 0 }
 0x12f   : > { %v1331_v11 = vpop.f32.mrf.mxu0 }
 0x130   : > { %v1332_v7 = vadd.f32 %v7741_v62, %v1331_v11  ;;  %v889_v15 = vpop.permute.xlu0 %888  ;;  %v943_v9 = vpop.permute.xlu1 %942 }
 0x131   : > { %v1161_v60 = vsel %vm1143_vm10, %v1142_v1, %v889_v15 }
 0x132   : > { %v1374_v20 = vmax.f32 %v1332_v7, 0.0  ;;  %v1180_v29 = vsel %vm1162_vm11, %v1161_v60, %v943_v9 }
 0x133   : > { %v1199_v27 = vsel %vm9857_vm12, %v1180_v29, %v979_v63  ;;  %vm9945_vm12 = vcmask 1045504  }
 0x134   : > { %1410 = vst.msk [vmem:[#allocation2 + $0x9] sm:$0xff] %vm9860_vm1, %v1374_v20 }
 0x138   : > { %v1334_v32 = vpop.f32.mrf.mxu0  ;;  %v1033_v33 = vpop.permute.xlu0 %1032 }
 0x139   : > { %v1335_v31 = vadd.f32 %v7741_v62, %v1334_v32  ;;  %v1218_v22 = vsel %vm1200_vm13, %v1199_v27, %v1033_v33  ;;  %v1069_v44 = vpop.permute.xlu1 %1068 }
 0x13a   : > { %v1237_v45 = vsel %vm1219_vm14, %v1218_v22, %v1069_v44 }
 0x13b   : > { %v1375_v49 = vmax.f32 %v1335_v31, 0.0  ;;  %v1256_v26 = vsel %vm1238_vm15, %v1237_v45, %v1123_v21  ;;  %v7761_v35 = vld [vmem:[#allocation2] ss:$2 sm:$0xff]  ;;  %v7763_v34 = vld [vmem:[#allocation2 + $0x1] ss:$2 sm:$0xff] }
 0x13c   : > { %9911 = vst [vmem:[#allocation5_spill] sm:$0xff] %v7761_v35  ;;  %5927 = vmatmul.msk.bf16.gmra.mxu3 %vm1297_vm8, %v1256_v26  ;;  %vm9853_vm10 = vcmp.gt.f32.partialorder %v7763_v34, %v7761_v35  ;;  %v1462_v48 = vmax.f32 %v7761_v35, %v7763_v34 }
 0x13d   : > { %9912 = vst [vmem:[#allocation6_spill] sm:$0xff] %v7763_v34 }
 0x13e   : > { %1411 = vst.msk [vmem:[#allocation2 + $0x11] sm:$0xff] %vm9860_vm1, %v1375_v49  ;;  %v1480_v41 = vpack.c.bf16 %v1462_v48, %v1462_v48 }
 0x140   : > { %v1336_v12 = vpop.f32.mrf.mxu0  ;;  %v1498_v59 = vunpack.c.l.b16 %v1480_v41 }
 0x141   : > { %v1337_v42 = vadd.f32 %v7741_v62, %v1336_v12 }
 0x143   : > { %v1376_v28 = vmax.f32 %v1337_v42, 0.0 }
 0x145   : > { %1412 = vst.msk [vmem:[#allocation2 + $0x19] sm:$0xff] %vm9860_vm1, %v1376_v28 }
 0x149   : > { %v1339_v43 = vpop.f32.mrf.mxu0 }
 0x14a   : > { %v1340_v0 = vadd.f32 %v7741_v62, %v1339_v43 }
 0x14c   : > { %v1377_v25 = vmax.f32 %v1340_v0, 0.0  ;;  %v7772_v46 = vld [vmem:[#allocation2 + $0x10] ss:$2 sm:$0xff]  ;;  %v7774_v24 = vld [vmem:[#allocation2 + $0x11] ss:$2 sm:$0xff] }
 0x14d   : > { %9913 = vst [vmem:[#allocation7_spill] sm:$0xff] %v7772_v46  ;;  %vm9850_vm11 = vcmp.gt.f32.partialorder %v7774_v24, %v7772_v46  ;;  %v1463_v57 = vmax.f32 %v7772_v46, %v7774_v24 }
 0x14e   : > { %9914 = vst [vmem:[#allocation8_spill] sm:$0xff] %v7774_v24  ;;  %vm7785_vm13 = vmpackc.low %vm9850_vm11, %vm9853_vm10 }
 0x14f   : > { %1413 = vst.msk [vmem:[#allocation2 + $0x21] sm:$0xff] %vm9860_vm1, %v1377_v25  ;;  %v9916_v52 = vsel %vm7785_vm13, 4294967295, %v9915_v52  ;;  %v1481_v39 = vpack.c.bf16 %v1463_v57, %v1463_v57 }
 0x150   : > { %9917 = vst [vmem:[#allocation9_spill] sm:$0xff] %v9916_v52 }
 0x151   : > { %v1341_v54 = vpop.f32.mrf.mxu0  ;;  %v1499_v53 = vunpack.c.l.b16 %v1481_v39 }
 0x152   : > { %v1342_v56 = vadd.f32 %v7741_v62, %v1341_v54 }
 0x153   : > { %v1507_v47 = vpack.c.b16 %v1499_v53, %v1498_v59 }
 0x154   : > { %v1378_v40 = vmax.f32 %v1342_v56, 0.0 }
 0x155   : > { %v1512_v2 = vrot.slane %v1507_v47, 6 }
 0x156   : > { %1414 = vst.msk [vmem:[#allocation2 + $0x29] sm:$0xff] %vm9860_vm1, %v1378_v40 }
 0x157   : > { %v7830_v63 = vsel %vm743_vm0, 0, %v1512_v2 }
 0x158   : > { %v1528_v15 = vshrl.u32 %v7830_v63, 16  ;;  %v1530_v9 = vshll.u32 %v7830_v63, 16  ;;  %v1664_v27 = vrot.slane %v7830_v63, 3 }
 0x15a   : > { %v1683_v32 = vrot.slane %v1528_v15, 3  ;;  %v1684_v33 = vrot.slane %v1530_v9, 4  ;;  %v1635_v49 = vrot.slane %v1528_v15, 2  ;;  %v1636_v26 = vrot.slane %v1530_v9, 3 }
 0x15b   : > { %v1598_v39 = vrot.slane %v1530_v9, 2 }
 0x15c   : > { %v1685_v25 = vor.u32 %v1684_v33, %v1683_v32  ;;  %v1637_v40 = vor.u32 %v1636_v26, %v1635_v49  ;;  %v9931_v33 = vmov 0 }
 0x15d   : > { %v7791_v5 = vld [vmem:[#allocation2 + $0x20] ss:$2 sm:$0xff]  ;;  %v7793_v14 = vld [vmem:[#allocation2 + $0x21] ss:$2 sm:$0xff] }
 0x15e   : > { %9918 = vst [vmem:[#allocation10_spill] sm:$0xff] %v7791_v5  ;;  %vm9849_vm14 = vcmp.gt.f32.partialorder %v7793_v14, %v7791_v5  ;;  %v1464_v18 = vmax.f32 %v7791_v5, %v7793_v14 }
 0x15f   : > { %9919 = vst [vmem:[#allocation11_spill] sm:$0xff] %v7793_v14 }
 0x160   : > { %v1482_v4 = vpack.c.bf16 %v1464_v18, %v1464_v18 }
 0x162   : > { %v1500_v1 = vunpack.c.l.b16 %v1482_v4 }
 0x165   : > { %v1354_v19 = vpop.f32.mrf.mxu3 }
 0x166   : > { %v1355_v30 = vadd.f32 %v7741_v62, %v1354_v19 }
 0x168   : > { %v1383_v55 = vmax.f32 %v1355_v30, 0.0 }
 0x16a   : > { %1419 = vst.msk [vmem:[#allocation2 + $0x51] sm:$0xff] %vm9860_vm1, %v1383_v55 }
 0x16d   : > { %v1356_v61 = vpop.f32.mrf.mxu3 }
 0x16e   : > { %v1357_v13 = vadd.f32 %v7741_v62, %v1356_v61 }
 0x170   : > { %v1384_v3 = vmax.f32 %v1357_v13, 0.0  ;;  %v1344_v16 = vpop.f32.mrf.mxu0 }
 0x171   : > { %v1345_v8 = vadd.f32 %v7741_v62, %v1344_v16 }
 0x172   : > { %1420 = vst.msk [vmem:[#allocation2 + $0x59] sm:$0xff] %vm9860_vm1, %v1384_v3 }
 0x173   : > { %v1379_v36 = vmax.f32 %v1345_v8, 0.0 }
 0x175   : > { %1415 = vst.msk [vmem:[#allocation2 + $0x31] sm:$0xff] %vm9860_vm1, %v1379_v36  ;;  %v1578_v36 = vrot.slane %v7830_v63, 1 }
 0x178   : > { %v1346_v38 = vpop.f32.mrf.mxu0 }
 0x179   : > { %v1347_v51 = vadd.f32 %v7741_v62, %v1346_v38  ;;  %v1597_v38 = vrot.slane %v1528_v15, 1 }
 0x17b   : > { %v1380_v37 = vmax.f32 %v1347_v51, 0.0  ;;  %v1532_v51 = vrot.slane %v1530_v9, 1  ;;  %v1599_v47 = vor.u32 %v1598_v39, %v1597_v38 }
 0x17d   : > { %1416 = vst.msk [vmem:[#allocation2 + $0x39] sm:$0xff] %vm9860_vm1, %v1380_v37  ;;  %v1533_v18 = vor.u32 %v1532_v51, %v1528_v15  ;;  %v7899_v15 = vld [vmem:[#allocation2 + $0x51] ss:$2 sm:$0xff] }
 0x17e   : > { %9927 = vst [vmem:[#allocation17_spill] sm:$0xff] %v7899_v15 }
 0x184   : > { %v7811_v58 = vld [vmem:[#allocation2 + $0x30] ss:$2 sm:$0xff]  ;;  %v7813_v10 = vld [vmem:[#allocation2 + $0x31] ss:$2 sm:$0xff] }
 0x185   : > { %9920 = vst [vmem:[#allocation12_spill] sm:$0xff] %v7811_v58  ;;  %v1465_v23 = vmax.f32 %v7811_v58, %v7813_v10  ;;  %vm9848_vm15 = vcmp.gt.f32.partialorder %v7813_v10, %v7811_v58 }
 0x186   : > { %9921 = vst [vmem:[#allocation13_spill] sm:$0xff] %v7813_v10  ;;  %vm7825_vm8 = vmpackc.low %vm9848_vm15, %vm9849_vm14 }
 0x187   : > { %v9923_v6 = vsel %vm7825_vm8, 4294967295, %v9922_v6  ;;  %v1483_v50 = vpack.c.bf16 %v1465_v23, %v1465_v23 }
 0x188   : > { %9924 = vst [vmem:[#allocation14_spill] sm:$0xff] %v9923_v6 }
 0x189   : > { %v1501_v11 = vunpack.c.l.b16 %v1483_v50 }
 0x18b   : > { %v1508_v7 = vpack.c.b16 %v1501_v11, %v1500_v1 }
 0x18d   : > { %v1359_v20 = vpop.f32.mrf.mxu3  ;;  %v7834_v60 = vrot.slane %v1508_v7, 6 }
 0x18e   : > { %v1360_v29 = vadd.f32 %v7741_v62, %v1359_v20 }
 0x18f   : > { %v7839_v21 = vsel %vm743_vm0, %v1512_v2, %v7834_v60 }
 0x190   : > { %v1385_v31 = vmax.f32 %v1360_v29, 0.0  ;;  %v1665_v22 = vrot.slane %v7839_v21, 3  ;;  %v7844_v44 = vshll.u32 %v7839_v21, 16  ;;  %v7847_v45 = vshrl.u32 %v7839_v21, 16 }
 0x191   : > { %v1579_v30 = vrot.slane %v7839_v21, 1 }
 0x192   : > { %1421 = vst.msk [vmem:[#allocation2 + $0x61] sm:$0xff] %vm9860_vm1, %v1385_v31  ;;  %v1666_v12 = vsel %vm9861_vm5, %v1664_v27, %v1665_v22  ;;  %v1686_v42 = vrot.slane %v7847_v45, 3  ;;  %v1687_v28 = vrot.slane %v7844_v44, 4  ;;  %v1638_v43 = vrot.slane %v7847_v45, 2 }
 0x193   : > { %1673 = vrot.lane.b32.xlu1 %v1666_v12, %s9869_s5  ;;  %v1639_v0 = vrot.slane %v7844_v44, 3  ;;  %v1600_v13 = vrot.slane %v7847_v45, 1  ;;  %v1601_v3 = vrot.slane %v7844_v44, 2  ;;  %v1580_v37 = vsel %vm9858_vm2, %v1578_v36, %v1579_v30 }
 0x194   : > { %v7858_v54 = vor.u32 %v1687_v28, %v1686_v42  ;;  %v1537_v59 = vrot.slane %v7844_v44, 1 }
 0x195   : > { %v1361_v56 = vpop.f32.mrf.mxu3  ;;  %v7860_v19 = vor.u32 %v1639_v0, %v1638_v43  ;;  %v7878_v53 = vor.u32 %v1601_v3, %v1600_v13 }
 0x196   : > { %v1362_v55 = vadd.f32 %v7741_v62, %v1361_v56  ;;  %v1689_v61 = vsel %vm9873_vm6, %v1685_v25, %v7858_v54  ;;  %v1538_v23 = vsel %vm765_vm4, %v1533_v18, %v1537_v59 }
 0x197   : > { %1702 = vrot.lane.b32.xlu2 %v1689_v61, %s9867_s22  ;;  %v1641_v16 = vsel %vm9874_vm7, %v1637_v40, %v7860_v19  ;;  %v1349_v8 = vpop.f32.mrf.mxu0  ;;  %v1603_v2 = vsel %vm890_vm3, %v1599_v47, %v7878_v53 }
 0x198   : > { %v1386_v57 = vmax.f32 %v1362_v55, 0.0  ;;  %1654 = vrot.lane.b32.xlu0 %v1641_v16, %s9865_s23  ;;  %v1350_v48 = vadd.f32 %v7741_v62, %v1349_v8 }
 0x19a   : > { %1422 = vst.msk [vmem:[#allocation2 + $0x69] sm:$0xff] %vm9860_vm1, %v1386_v57  ;;  %v1381_v41 = vmax.f32 %v1350_v48, 0.0 }
 0x19b   : > { %1587 = vrot.lane.b32.xlu1 %v1580_v37, %s9869_s5 }
 0x19c   : > { %1417 = vst.msk [vmem:[#allocation2 + $0x41] sm:$0xff] %vm9860_vm1, %v1381_v41 }
 0x19f   : > { %1616 = vrot.lane.b32.xlu2 %v1603_v2, %s9867_s22  ;;  %v1351_v4 = vpop.f32.mrf.mxu0 }
 0x1a0   : > { %1566 = vrot.lane.b32.xlu0 %v1538_v23, %s9865_s23  ;;  %v1352_v50 = vadd.f32 %v7741_v62, %v1351_v4 }
 0x1a1   : > { %v7892_v1 = vld [vmem:[#allocation2 + $0x60] ss:$2 sm:$0xff]  ;;  %v7894_v11 = vld [vmem:[#allocation2 + $0x61] ss:$2 sm:$0xff] }
 0x1a2   : > { %9925 = vst [vmem:[#allocation15_spill] sm:$0xff] %v7892_v1  ;;  %v1382_v7 = vmax.f32 %v1352_v50, 0.0  ;;  %vm9855_vm9 = vcmp.gt.f32.partialorder %v7894_v11, %v7892_v1  ;;  %v1468_v2 = vmax.f32 %v7892_v1, %v7894_v11 }
 0x1a3   : > { %9926 = vst [vmem:[#allocation16_spill] sm:$0xff] %v7894_v11 }
 0x1a4   : > { %1418 = vst.msk [vmem:[#allocation2 + $0x49] sm:$0xff] %vm9860_vm1, %v1382_v7 }
 0x1ab   : > { %v7901_v9 = vld [vmem:[#allocation2 + $0x40] ss:$2 sm:$0xff]  ;;  %v7903_v20 = vld [vmem:[#allocation2 + $0x50] ss:$2 sm:$0xff]  ;;  %v7905_v29 = vld [vmem:[#allocation2 + $0x41] ss:$2 sm:$0xff] }
 0x1ac   : > { %9928 = vst [vmem:[#allocation18_spill] sm:$0xff] %v7901_v9  ;;  %v1466_v27 = vmax.f32 %v7901_v9, %v7905_v29  ;;  %v1467_v32 = vmax.f32 %v7903_v20, %v7899_v15  ;;  %vm9852_vm15 = vcmp.gt.f32.partialorder %v7905_v29, %v7901_v9  ;;  %vm9851_vm14 = vcmp.gt.f32.partialorder %v7899_v15, %v7903_v20 }
 0x1ad   : > { %9929 = vst [vmem:[#allocation19_spill] sm:$0xff] %v7903_v20  ;;  %vm7921_vm11 = vmpackc.low %vm9851_vm14, %vm9852_vm15  ;;  %vm1425_vm14 = vcmask 253952  }
 0x1ae   : > { %9930 = vst [vmem:[#allocation20_spill] sm:$0xff] %v7905_v29  ;;  %v9932_v33 = vsel %vm7921_vm11, 4294967295, %v9931_v33  ;;  %v1364_v31 = vpop.f32.mrf.mxu3  ;;  %v1484_v49 = vpack.c.bf16 %v1466_v27, %v1466_v27  ;;  %v1485_v26 = vpack.c.bf16 %v1467_v32, %v1467_v32  ;;  %v1486_v32 = vpack.c.bf16 %v1468_v2, %v1468_v2 }
 0x1af   : > { %9933 = vst [vmem:[#allocation21_spill] sm:$0xff] %v9932_v33  ;;  %v1365_v12 = vadd.f32 %v7741_v62, %v1364_v31  ;;  %v9936_v31 = vmov 0 }
 0x1b0   : > { %v1502_v42 = vunpack.c.l.b16 %v1484_v49  ;;  %v1503_v28 = vunpack.c.l.b16 %v1485_v26 }
 0x1b1   : > { %v1387_v43 = vmax.f32 %v1365_v12, 0.0 }
 0x1b2   : > { %v1509_v0 = vpack.c.b16 %v1503_v28, %v1502_v42 }
 0x1b3   : > { %1423 = vst.msk [vmem:[#allocation2 + $0x71] sm:$0xff] %vm9860_vm1, %v1387_v43 }
 0x1b4   : > { %v1515_v25 = vrot.slane %v1509_v0, 6 }
 0x1b6   : > { %v1366_v56 = vpop.f32.mrf.mxu3  ;;  %v7929_v40 = vsel %vm743_vm0, %v7834_v60, %v1515_v25 }
 0x1b7   : > { %v1367_v55 = vadd.f32 %v7741_v62, %v1366_v56  ;;  %v1667_v61 = vrot.slane %v7929_v40, 3  ;;  %v7934_v13 = vshll.u32 %v7929_v40, 16  ;;  %v7937_v3 = vshrl.u32 %v7929_v40, 16 }
 0x1b9   : > { %v1388_v16 = vmax.f32 %v1367_v55, 0.0  ;;  %v1668_v8 = vsel %vm9861_vm5, %v1665_v22, %v1667_v61  ;;  %v1690_v36 = vrot.slane %v7937_v3, 3  ;;  %v1691_v60 = vrot.slane %v7934_v13, 4 }
 0x1ba   : > { %1675 = vrot.lane.b32.xlu1 %v1668_v8, %s9869_s5  ;;  %v1642_v57 = vrot.slane %v7937_v3, 2  ;;  %v1643_v48 = vrot.slane %v7934_v13, 3  ;;  %v1581_v22 = vrot.slane %v7929_v40, 1  ;;  %v1604_v41 = vrot.slane %v7937_v3, 1 }
 0x1bb   : > { %v1692_v38 = vor.u32 %v1691_v60, %v1690_v36  ;;  %1424 = vst.msk [vmem:[#allocation2 + $0x79] sm:$0xff] %vm9860_vm1, %v1388_v16  ;;  %v1605_v37 = vrot.slane %v7934_v13, 2  ;;  %v6767_v36 = vld [vmem:[%s9941_s29 + $0x78] sm:$0xff] }
 0x1bc   : > { %v7948_v39 = vor.u32 %v1643_v48, %v1642_v57  ;;  %v1582_v23 = vsel %vm9858_vm2, %v1579_v30, %v1581_v22  ;;  %v1541_v30 = vor.u32 %v7847_v45, %v1537_v59  ;;  %v1504_v59 = vunpack.c.l.b16 %v1486_v32  ;;  %1954 = vmatpush.bf16.msra.mxu2 %v6767_v36 }
 0x1bd   : > { %v1693_v51 = vsel %vm9873_vm6, %v7858_v54, %v1692_v38  ;;  %v7968_v4 = vor.u32 %v1605_v37, %v1604_v41  ;;  %v6766_v37 = vld [vmem:[%s9941_s29 + $0x70] sm:$0xff] }
 0x1be   : > { %1704 = vrot.lane.b32.xlu2 %v1693_v51, %s9867_s22  ;;  %v1645_v47 = vsel %vm9874_vm7, %v7860_v19, %v7948_v39  ;;  %v1545_v19 = vrot.slane %v7934_v13, 1 }
 0x1bf   : > { %1656 = vrot.lane.b32.xlu0 %v1645_v47, %s9865_s23  ;;  %v1369_v18 = vpop.f32.mrf.mxu3  ;;  %v1607_v49 = vsel %vm890_vm3, %v7878_v53, %v7968_v4 }
 0x1c0   : > { %v1370_v54 = vadd.f32 %v7741_v62, %v1369_v18  ;;  %v1546_v44 = vsel %vm765_vm4, %v1541_v30, %v1545_v19  ;;  %1955 = vmatpush.bf16.msra.mxu2 %v6766_v37  ;;  %v6756_v37 = vld [vmem:[%s9941_s29 + $0x20] sm:$0xff] }
 0x1c2   : > { %v1389_v50 = vmax.f32 %v1370_v54, 0.0  ;;  %1589 = vrot.lane.b32.xlu1 %v1582_v23, %s9869_s5  ;;  %v7972_v7 = vld [vmem:[#allocation2 + $0x70] ss:$2 sm:$0xff]  ;;  %v7974_v27 = vld [vmem:[#allocation2 + $0x71] ss:$2 sm:$0xff] }
 0x1c3   : > { %9934 = vst [vmem:[#allocation22_spill] sm:$0xff] %v7972_v7  ;;  %v1469_v62 = vmax.f32 %v7972_v7, %v7974_v27  ;;  %vm9854_vm15 = vcmp.gt.f32.partialorder %v7974_v27, %v7972_v7  ;;  %v8001_v28 = vld [vmem:[#allocation2 + $0x80] ss:$2 sm:$0x1] }
 0x1c4   : > { %9935 = vst [vmem:[#allocation23_spill] sm:$0xff] %v7974_v27  ;;  %vm7989_vm10 = vmpackc.low %vm9854_vm15, %vm9855_vm9  ;;  %vm1525_vm15 = vsmask.f32 2304 }
 0x1c5   : > { %1426 = vst.msk [vmem:[#allocation2 + $0x81] sm:$0x1] %vm1425_vm14, %v1389_v50  ;;  %v9937_v31 = vsel %vm7989_vm10, 4294967295, %v9936_v31  ;;  %v1487_v26 = vpack.c.bf16 %v1469_v62, %v1469_v62  ;;  %vm1524_vm14 = vcmask 1042432  }
 0x1c6   : > { %9938 = vst [vmem:[#allocation24_spill] sm:$0xff] %v9937_v31  ;;  %1618 = vrot.lane.b32.xlu2 %v1607_v49, %s9867_s22  ;;  %vm8040_vm9 = vmand %vm1524_vm14, %vm1525_vm15  ;;  %v9942_v49 = vmov 0  ;;  %vm9864_vm15 = vcmask 523264  }
 0x1c7   : > { %1568 = vrot.lane.b32.xlu0 %v1546_v44, %s9865_s23  ;;  %v1371_v45 = vpop.f32.mrf.mxu3  ;;  %v1505_v12 = vunpack.c.l.b16 %v1487_v26  ;;  %9939 = vst [vmem:[#allocation25_spill] sm:$0xff] %v8001_v28  ;;  %v9943_v49 = vsel %vm8040_vm9, 4294967295, %v9942_v49  ;;  %v6765_v26 = vld [vmem:[%s9941_s29 + $0x68] sm:$0xff] }
 0x1c8   : > { %9944 = vst [vmem:[#allocation27_spill] sm:$0xff] %v9943_v49  ;;  %1956 = vmatpush.bf16.msra.mxu2 %v6765_v26 }
 0x1c9   : > { %v1510_v42 = vpack.c.b16 %v1505_v12, %v1504_v59  ;;  %1996 = vst.msk [vmem:[#allocation3] sm:$0xff] %vm9864_vm15, %v7003_v17 }
 0x1ca   : > { %1997 = vst.msk [vmem:[#allocation3 + $0x8] sm:$0xff] %vm9864_vm15, %v7003_v17 }
 0x1cb   : > { %v1517_v43 = vrot.slane %v1510_v42, 6  ;;  %v6758_v42 = vld [vmem:[%s9941_s29 + $0x30] sm:$0xff]  ;;  %1998 = vst.msk [vmem:[#allocation3 + $0x10] sm:$0xff] %vm9864_vm15, %v7003_v17 }
 0x1cc   : > { %v8003_v0 = vld [vmem:[#allocation2 + $0x81] ss:$2 sm:$0x1]  ;;  %1999 = vst.msk [vmem:[#allocation3 + $0x18] sm:$0xff] %vm9864_vm15, %v7003_v17 }
 0x1cd   : > { %9940 = vst [vmem:[#allocation26_spill] sm:$0xff] %v8003_v0  ;;  %v1470_v53 = vmax.f32 %v8001_v28, %v8003_v0  ;;  %v8010_v56 = vsel %vm743_vm0, %v1515_v25, %v1517_v43 }
 0x1ce   : > { %v1669_v55 = vrot.slane %v8010_v56, 3  ;;  %v8014_v16 = vshll.u32 %v8010_v56, 16  ;;  %v8017_v8 = vshrl.u32 %v8010_v56, 16  ;;  %2000 = vst.msk [vmem:[#allocation3 + $0x20] sm:$0xff] %vm9864_vm15, %v7003_v17 }
 0x1cf   : > { %v1488_v60 = vpack.c.bf16 %v1470_v53, %v1470_v53  ;;  %2001 = vst.msk [vmem:[#allocation3 + $0x28] sm:$0xff] %vm9864_vm15, %v7003_v17 }
 0x1d0   : > { %v1670_v57 = vsel %vm9861_vm5, %v1667_v61, %v1669_v55  ;;  %v1694_v48 = vrot.slane %v8017_v8, 3  ;;  %v1695_v25 = vrot.slane %v8014_v16, 4  ;;  %v1646_v51 = vrot.slane %v8017_v8, 2  ;;  %2002 = vst.msk [vmem:[#allocation3 + $0x30] sm:$0xff] %vm9864_vm15, %v7003_v17 }
 0x1d1   : > { %1677 = vrot.lane.b32.xlu1 %v1670_v57, %s9869_s5  ;;  %v1647_v41 = vrot.slane %v8014_v16, 3  ;;  %v1506_v18 = vunpack.c.l.b16 %v1488_v60  ;;  %v1583_v61 = vrot.slane %v8010_v56, 1  ;;  %v1608_v23 = vrot.slane %v8017_v8, 1  ;;  %2003 = vst.msk [vmem:[#allocation3 + $0x38] sm:$0xff] %vm9864_vm15, %v7003_v17 }
 0x1d2   : > { %v1696_v47 = vor.u32 %v1695_v25, %v1694_v48  ;;  %v1609_v50 = vrot.slane %v8014_v16, 2  ;;  %v1553_v59 = vrot.slane %v8014_v16, 1  ;;  %v1549_v16 = vor.u32 %v7937_v3, %v1545_v19  ;;  %v6757_v3 = vld [vmem:[%s9941_s29 + $0x28] sm:$0xff] }
 0x1d3   : > { %v1648_v2 = vor.u32 %v1647_v41, %v1646_v51  ;;  %v1511_v62 = vpack.c.b16 %v1506_v18, %v1506_v18  ;;  %v6762_v18 = vld [vmem:[%s9941_s29 + $0x50] sm:$0xff] }
 0x1d4   : > { %v1697_v54 = vsel %vm9873_vm6, %v1692_v38, %v1696_v47  ;;  %v6759_v38 = vld [vmem:[%s9941_s29 + $0x38] sm:$0xff]  ;;  %v1610_v44 = vor.u32 %v1609_v50, %v1608_v23  ;;  %v1554_v25 = vsel %vm765_vm4, %v1549_v16, %v1553_v59  ;;  %v1626_v16 = vrot.slane %v7830_v63, 2 }
 0x1d5   : > { %1706 = vrot.lane.b32.xlu2 %v1697_v54, %s9867_s22  ;;  %v1649_v32 = vsel %vm9874_vm7, %v7948_v39, %v1648_v2  ;;  %v1519_v30 = vrot.slane %v1511_v62, 6  ;;  %v1584_v39 = vsel %vm9858_vm2, %v1581_v22, %v1583_v61  ;;  %1921 = vmatpush.bf16.msra.mxu1 %v6759_v38  ;;  %v6764_v22 = vld [vmem:[%s9941_s29 + $0x60] sm:$0xff] }
 0x1d6   : > { %1658 = vrot.lane.b32.xlu0 %v1649_v32, %s9865_s23  ;;  %v1611_v36 = vsel %vm890_vm3, %v7968_v4, %v1610_v44  ;;  %1957 = vmatpush.bf16.msra.mxu2 %v6764_v22  ;;  %v6763_v4 = vld [vmem:[%s9941_s29 + $0x58] sm:$0xff] }
 0x1d7   : > { %v1520_v45 = vsel %vm743_vm0, %v1517_v43, %v1519_v30  ;;  %v6755_v30 = vld [vmem:[%s9941_s29 + $0x18] sm:$0xff] }
 0x1d8   : > { %v8058_v12 = vsel %vm8040_vm9, %v1520_v45, 0  ;;  %v6754_v45 = vld [vmem:[%s9941_s29 + $0x10] sm:$0xff] }
 0x1d9   : > { %1591 = vrot.lane.b32.xlu1 %v1584_v39, %s9869_s5  ;;  %v8067_v43 = vshll.u32 %v8058_v12, 16  ;;  %v8070_v53 = vshrl.u32 %v8058_v12, 16  ;;  %v1671_v60 = vrot.slane %v8058_v12, 3  ;;  %1922 = vmatpush.bf16.msra.mxu1 %v6758_v42  ;;  %v1585_v50 = vrot.slane %v8058_v12, 1  ;;  %v6760_v42 = vld [vmem:[%s9941_s29 + $0x40] sm:$0xff] }
 0x1da   : > { %1958 = vmatpush.bf16.msra.mxu2 %v6763_v4 }
 0x1db   : > { %v1698_v57 = vrot.slane %v8070_v53, 3  ;;  %v1699_v48 = vrot.slane %v8067_v43, 4  ;;  %v1650_v51 = vrot.slane %v8070_v53, 2  ;;  %v1651_v13 = vrot.slane %v8067_v43, 3 }
 0x1dc   : > { %v1672_v19 = vsel %vm9861_vm5, %v1669_v55, %v1671_v60  ;;  %v1612_v55 = vrot.slane %v8070_v53, 1  ;;  %v1613_v62 = vrot.slane %v8067_v43, 2  ;;  %v1586_v38 = vsel %vm9858_vm2, %v1583_v61, %v1585_v50 }
 0x1dd   : > { %1620 = vrot.lane.b32.xlu2 %v1611_v36, %s9867_s22  ;;  %v1700_v41 = vor.u32 %v1699_v48, %v1698_v57  ;;  %1923 = vmatpush.bf16.msra.mxu1 %v6757_v3  ;;  %v1652_v54 = vor.u32 %v1651_v13, %v1650_v51  ;;  %v1561_v39 = vrot.slane %v8067_v43, 1  ;;  %v1627_v43 = vrot.slane %v7839_v21, 2 }
 0x1de   : > { %1570 = vrot.lane.b32.xlu0 %v1554_v25, %s9865_s23  ;;  %1959 = vmatpush.bf16.msra.mxu2 %v6762_v18  ;;  %v1614_v26 = vor.u32 %v1613_v62, %v1612_v55  ;;  %vm9859_vm2 = vcmask 785408   ;;  %v1629_v18 = vrot.slane %v7929_v40, 2 }
 0x1df   : > { %v1701_v23 = vsel %vm9873_vm6, %v1696_v47, %v1700_v41  ;;  %v1653_v32 = vsel %vm9874_vm7, %v1648_v2, %v1652_v54  ;;  %v6761_v47 = vld [vmem:[%s9941_s29 + $0x48] sm:$0xff]  ;;  %v1557_v2 = vor.u32 %v8017_v8, %v1553_v59  ;;  %v1565_v59 = vor.u32 %v8070_v53, %v1561_v39 }
 0x1e0   : > { %v1615_v22 = vsel %vm890_vm3, %v1610_v44, %v1614_v26  ;;  %v6753_v8 = vld [vmem:[%s9941_s29 + $0x8] sm:$0xff]  ;;  %v6752_v44 = vld [vmem:[%s9941_s29] sm:$0xff]  ;;  %v1628_v57 = vsel %vm9945_vm12, %v1626_v16, %v1627_v43 }
 0x1e1   : > { %1679 = vrot.lane.b32.xlu1 %v1672_v19, %s9869_s5  ;;  %1924 = vmatpush.bf16.msra.mxu1 %v6756_v37  ;;  %v1562_v61 = vsel %vm765_vm4, %v1557_v2, %v1561_v39 }
 0x1e2   : > { %1960 = vmatpush.bf16.msra.mxu2 %v6761_v47 }
 0x1e5   : > { %1708 = vrot.lane.b32.xlu2 %v1701_v23, %s9867_s22  ;;  %1925 = vmatpush.bf16.msra.mxu1 %v6755_v30 }
 0x1e6   : > { %1660 = vrot.lane.b32.xlu0 %v1653_v32, %s9865_s23  ;;  %1961 = vmatpush.bf16.msra.mxu2 %v6760_v42 }
 0x1e9   : > { %1593 = vrot.lane.b32.xlu1 %v1586_v38, %s9869_s5  ;;  %1926 = vmatpush.bf16.msra.mxu1 %v6754_v45 }
 0x1ed   : > { %1622 = vrot.lane.b32.xlu2 %v1615_v22, %s9867_s22  ;;  %1927 = vmatpush.bf16.msra.mxu1 %v6753_v8  ;;  %v1631_v22 = vrot.slane %v8010_v56, 2 }
 0x1ee   : > { %1572 = vrot.lane.b32.xlu0 %v1562_v61, %s9865_s23 }
 0x1ef   : > { %v1632_v61 = vsel %vm9945_vm12, %v1629_v18, %v1631_v22 }
 0x1f1   : > { %1681 = vrot.lane.b32.xlu1 %v1671_v60, %s9869_s5  ;;  %1928 = vmatpush.bf16.msra.mxu1 %v6752_v44  ;;  %v1703_v60 = vpop.permute.xlu2 %1702 }
 0x1f5   : > { %1710 = vrot.lane.b32.xlu2 %v1700_v41, %s9867_s22 }
 0x1f6   : > { %1662 = vrot.lane.b32.xlu0 %v1652_v54, %s9865_s23 }
 0x1f9   : > { %1595 = vrot.lane.b32.xlu1 %v1585_v50, %s9869_s5  ;;  %v1617_v19 = vpop.permute.xlu2 %1616  ;;  %v1630_v50 = vsel %vm9945_vm12, %v1627_v43, %v1629_v18 }
 0x1fd   : > { %1624 = vrot.lane.b32.xlu2 %v1614_v26, %s9867_s22 }
 0x1fe   : > { %1574 = vrot.lane.b32.xlu0 %v1565_v59, %s9865_s23 }
 0x205   : > { %v1674_v36 = vpop.permute.xlu1 %1673 }
 0x20a   : > { %v1655_v48 = vpop.permute.xlu0 %1654 }
 0x20b   : > { %v1751_v25 = vsel %vm9860_vm1, %v1628_v57, %v1655_v48 }
 0x20c   : > { %v1765_v51 = vsel %vm9864_vm15, %v1751_v25, %v1674_v36 }
 0x20d   : > { %v1775_v53 = vsel %vm9859_vm2, %v1765_v51, %v1703_v60  ;;  %v1588_v3 = vpop.permute.xlu1 %1587 }
 0x20e   : > { %1962 = vmatmul.bf16.vlgmr.msra.gmra.mxu2 %v1775_v53  ;;  %v1633_v53 = vrot.slane %v8058_v12, 2 }
 0x212   : > { %v1567_v13 = vpop.permute.xlu0 %1566 }
 0x213   : > { %v1713_v4 = vsel %vm9860_vm1, %v7830_v63, %v1567_v13  ;;  %v1634_v13 = vsel %vm9945_vm12, %v1631_v22, %v1633_v53 }
 0x214   : > { %v1724_v41 = vsel %vm9864_vm15, %v1713_v4, %v1588_v3 }
 0x215   : > { %v1735_v37 = vsel %vm9859_vm2, %v1724_v41, %v1617_v19 }
 0x216   : > { %1929 = vmatmul.bf16.vlgmr.msra.gmra.mxu1 %v1735_v37 }
 0x218   : > { %v1705_v54 = vpop.permute.xlu2 %1704 }
 0x220   : > { %v1619_v63 = vpop.permute.xlu2 %1618 }
 0x22c   : > { %v1676_v23 = vpop.permute.xlu1 %1675 }
 0x22f   : > { %v1707_v45 = vpop.permute.xlu2 %1706 }
 0x231   : > { %v1657_v55 = vpop.permute.xlu0 %1656 }
 0x232   : > { %v1754_v62 = vsel %vm9860_vm1, %v1630_v50, %v1657_v55 }
 0x233   : > { %v1767_v32 = vsel %vm9864_vm15, %v1754_v62, %v1676_v23 }
 0x234   : > { %v1778_v30 = vsel %vm9859_vm2, %v1767_v32, %v1705_v54  ;;  %v1590_v38 = vpop.permute.xlu1 %1589 }
 0x235   : > { %1967 = vmatmul.bf16.gmra.mxu2 %v1778_v30 }
 0x237   : > { %v1621_v59 = vpop.permute.xlu2 %1620 }
 0x239   : > { %v1569_v47 = vpop.permute.xlu0 %1568 }
 0x23a   : > { %v1715_v26 = vsel %vm9860_vm1, %v7839_v21, %v1569_v47 }
 0x23b   : > { %v1726_v39 = vsel %vm9864_vm15, %v1715_v26, %v1590_v38 }
 0x23c   : > { %v1738_v2 = vsel %vm9859_vm2, %v1726_v39, %v1619_v63 }
 0x23d   : > { %1934 = vmatmul.bf16.gmra.mxu1 %v1738_v2 }
 0x23f   : > { %v1709_v51 = vpop.permute.xlu2 %1708 }
 0x243   : > { %v1678_v42 = vpop.permute.xlu1 %1677 }
 0x247   : > { %v1623_v37 = vpop.permute.xlu2 %1622 }
 0x248   : > { %v1659_v8 = vpop.permute.xlu0 %1658 }
 0x249   : > { %v1757_v44 = vsel %vm9860_vm1, %v1632_v61, %v1659_v8 }
 0x24a   : > { %v1769_v43 = vsel %vm9864_vm15, %v1757_v44, %v1678_v42  ;;  %v8202_v42 = vld [vmem:[%s9946_s27] ss:$0 sm:$0xff]  ;;  %s10139_s27 = sshll.u32 %s10157_s25, 7 }
 0x24b   : > { %v1592_v16 = vpop.permute.xlu1 %1591  ;;  %v1781_v21 = vsel %vm9859_vm2, %v1769_v43, %v1707_v45  ;;  %s9784_s1 = scalar_lea.vmem %s9841_s20, %s10139_s27 }
 0x24c   : > { %1972 = vmatmul.bf16.gmra.mxu2 %v1781_v21 }
 0x24f   : > { %v1711_v62 = vpop.permute.xlu2 %1710 }
 0x250   : > { %v1571_v36 = vpop.permute.xlu0 %1570 }
 0x251   : > { %v1717_v60 = vsel %vm9860_vm1, %v7929_v40, %v1571_v36 }
 0x252   : > { %v1728_v57 = vsel %vm9864_vm15, %v1717_v60, %v1592_v16 }
 0x253   : > { %v1680_v48 = vpop.permute.xlu1 %1679  ;;  %v1741_v25 = vsel %vm9859_vm2, %v1728_v57, %v1621_v59 }
 0x254   : > { %1939 = vmatmul.bf16.gmra.mxu1 %v1741_v25 }
 0x257   : > { %v1625_v39 = vpop.permute.xlu2 %1624 }
 0x258   : > { %v1661_v3 = vpop.permute.xlu0 %1660 }
 0x259   : > { %v1760_v4 = vsel %vm9860_vm1, %v1634_v13, %v1661_v3 }
 0x25a   : > { %v1771_v19 = vsel %vm9864_vm15, %v1760_v4, %v1680_v48 }
 0x25b   : > { %v1784_v41 = vsel %vm9859_vm2, %v1771_v19, %v1709_v51  ;;  %v1594_v40 = vpop.permute.xlu1 %1593 }
 0x25c   : > { %1977 = vmatmul.bf16.gmra.mxu2 %v1784_v41 }
 0x260   : > { %v1573_v18 = vpop.permute.xlu0 %1572 }
 0x261   : > { %v1719_v54 = vsel %vm9860_vm1, %v8010_v56, %v1573_v18 }
 0x262   : > { %v1730_v23 = vsel %vm9864_vm15, %v1719_v54, %v1594_v40 }
 0x263   : > { %v1744_v50 = vsel %vm9859_vm2, %v1730_v23, %v1623_v37  ;;  %v1682_v55 = vpop.permute.xlu1 %1681 }
 0x264   : > { %1944 = vmatmul.bf16.gmra.mxu1 %v1744_v50 }
 0x268   : > { %v1663_v32 = vpop.permute.xlu0 %1662 }
 0x269   : > { %v1763_v30 = vsel %vm9860_vm1, %v1633_v53, %v1663_v32 }
 0x26a   : > { %v1773_v63 = vsel %vm9864_vm15, %v1763_v30, %v1682_v55  ;;  %v3651_v55 = vld [vmem:[%s9839_s18 + $0x20] sm:$0x1] }
 0x26b   : > { %v1787_v47 = vsel %vm9859_vm2, %v1773_v63, %v1711_v62  ;;  %v1596_v26 = vpop.permute.xlu1 %1595 }
 0x26c   : > { %1982 = vmatmul.bf16.gmra.mxu2 %v1787_v47 }
 0x270   : > { %v1575_v38 = vpop.permute.xlu0 %1574 }
 0x271   : > { %v1721_v56 = vsel %vm9860_vm1, %v8058_v12, %v1575_v38 }
 0x272   : > { %v1732_v2 = vsel %vm9864_vm15, %v1721_v56, %v1596_v26 }
 0x273   : > { %v1747_v45 = vsel %vm9859_vm2, %v1732_v2, %v1625_v39  ;;  %vm2004_vm2 = vcmask 519168  }
 0x274   : > { %1949 = vmatmul.bf16.gmra.mxu1 %v1747_v45  ;;  %2005 = vst.msk [vmem:[#allocation3 + $0x40] sm:$0xf] %vm2004_vm2, %v7003_v17 }
 0x291   : > { %v1963_v22 = vpop.f32.mrf.mxu2 }
 0x293   : > { %v1930_v61 = vpop.f32.mrf.mxu1 }
 0x294   : > { %v1931_v8 = vadd.f32 %v8202_v42, %v1930_v61 }
 0x296   : > { %v1964_v44 = vadd.f32 %v1963_v22, %v1931_v8 }
 0x298   : > { %v1987_v59 = vmax.f32 %v1964_v44, 0.0 }
 0x299   : > { %v1965_v16 = vpop.f32.mrf.mxu2 }
 0x29a   : > { %2006 = vst.msk [vmem:[#allocation3 + $0x1] sm:$0xff] %vm9864_vm15, %v1987_v59 }
 0x29b   : > { %v1932_v12 = vpop.f32.mrf.mxu1 }
 0x29c   : > { %v1933_v43 = vadd.f32 %v8202_v42, %v1932_v12 }
 0x29e   : > { %v1966_v21 = vadd.f32 %v1965_v16, %v1933_v43 }
 0x2a0   : > { %v1988_v36 = vmax.f32 %v1966_v21, 0.0 }
 0x2a2   : > { %2007 = vst.msk [vmem:[#allocation3 + $0x9] sm:$0xff] %vm9864_vm15, %v1988_v36 }
 0x2a9   : > { %v8208_v60 = vld [vmem:[#allocation3] ss:$2 sm:$0xff]  ;;  %v8210_v57 = vld [vmem:[#allocation3 + $0x1] ss:$2 sm:$0xff] }
 0x2aa   : > { %vm9863_vm12 = vcmp.gt.f32.partialorder %v8210_v57, %v8208_v60  ;;  %v2035_v59 = vmax.f32 %v8208_v60, %v8210_v57 }
 0x2ac   : > { %v2045_v36 = vpack.c.bf16 %v2035_v59, %v2035_v59 }
 0x2b8   : > { %v1968_v48 = vpop.f32.mrf.mxu2 }
 0x2ba   : > { %v1935_v25 = vpop.f32.mrf.mxu1 }
 0x2bb   : > { %v1936_v51 = vadd.f32 %v8202_v42, %v1935_v25 }
 0x2bd   : > { %v1969_v53 = vadd.f32 %v1968_v48, %v1936_v51 }
 0x2bf   : > { %v1989_v13 = vmax.f32 %v1969_v53, 0.0  ;;  %v2055_v53 = vunpack.c.l.b16 %v2045_v36 }
 0x2c0   : > { %v1970_v19 = vpop.f32.mrf.mxu2 }
 0x2c1   : > { %2008 = vst.msk [vmem:[#allocation3 + $0x11] sm:$0xff] %vm9864_vm15, %v1989_v13 }
 0x2c2   : > { %v1937_v3 = vpop.f32.mrf.mxu1 }
 0x2c3   : > { %v1938_v4 = vadd.f32 %v8202_v42, %v1937_v3 }
 0x2c5   : > { %v1971_v41 = vadd.f32 %v1970_v19, %v1938_v4 }
 0x2c7   : > { %v1990_v40 = vmax.f32 %v1971_v41, 0.0 }
 0x2c9   : > { %2009 = vst.msk [vmem:[#allocation3 + $0x19] sm:$0xff] %vm9864_vm15, %v1990_v40 }
 0x2cf   : > { %v1973_v37 = vpop.f32.mrf.mxu2 }
 0x2d0   : > { %v8218_v18 = vld [vmem:[#allocation3 + $0x10] ss:$2 sm:$0xff]  ;;  %v8220_v54 = vld [vmem:[#allocation3 + $0x11] ss:$2 sm:$0xff] }
 0x2d1   : > { %v1940_v23 = vpop.f32.mrf.mxu1  ;;  %vm9862_vm1 = vcmp.gt.f32.partialorder %v8220_v54, %v8218_v18  ;;  %v2036_v22 = vmax.f32 %v8218_v18, %v8220_v54 }
 0x2d2   : > { %v1941_v50 = vadd.f32 %v8202_v42, %v1940_v23  ;;  %vm8232_vm5 = vmpackc.low %vm9862_vm1, %vm9863_vm12  ;;  %vm2014_vm1 = vcmask 517120  }
 0x2d3   : > { %v2046_v16 = vpack.c.bf16 %v2036_v22, %v2036_v22 }
 0x2d4   : > { %v1974_v62 = vadd.f32 %v1973_v37, %v1941_v50 }
 0x2d5   : > { %v2056_v25 = vunpack.c.l.b16 %v2046_v16 }
 0x2d6   : > { %v1991_v32 = vmax.f32 %v1974_v62, 0.0 }
 0x2d7   : > { %v1975_v30 = vpop.f32.mrf.mxu2  ;;  %v2060_v4 = vpack.c.b16 %v2056_v25, %v2055_v53 }
 0x2d8   : > { %2010 = vst.msk [vmem:[#allocation3 + $0x21] sm:$0xff] %vm9864_vm15, %v1991_v32 }
 0x2d9   : > { %v1942_v63 = vpop.f32.mrf.mxu1  ;;  %v2063_v37 = vrot.slane %v2060_v4, 6 }
 0x2da   : > { %v1943_v47 = vadd.f32 %v8202_v42, %v1942_v63  ;;  %v6870_v63 = vld [vmem:[%s9839_s18 + $0x10] sm:$0xff] }
 0x2dc   : > { %v1976_v38 = vadd.f32 %v1975_v30, %v1943_v47 }
 0x2de   : > { %v1992_v17 = vmax.f32 %v1976_v38, 0.0  ;;  %v8275_v38 = vsel %vm743_vm0, 0, %v2063_v37 }
 0x2df   : > { %v1978_v26 = vpop.f32.mrf.mxu2  ;;  %v2073_v16 = vshrl.u32 %v8275_v38, 16 }
 0x2e0   : > { %2011 = vst.msk [vmem:[#allocation3 + $0x29] sm:$0xff] %vm9864_vm15, %v1992_v17 }
 0x2e1   : > { %v1945_v56 = vpop.f32.mrf.mxu1 }
 0x2e2   : > { %v1946_v39 = vadd.f32 %v8202_v42, %v1945_v56  ;;  %v8278_v56 = vshll.u32 %v8275_v38, 16 }
 0x2e4   : > { %v1979_v2 = vadd.f32 %v1978_v26, %v1946_v39  ;;  %v2077_v59 = vrot.slane %v8278_v56, 1 }
 0x2e6   : > { %v1993_v45 = vmax.f32 %v1979_v2, 0.0  ;;  %v2078_v25 = vor.u32 %v2077_v59, %v2073_v16 }
 0x2e7   : > { %v1980_v61 = vpop.f32.mrf.mxu2  ;;  %v8242_v8 = vld [vmem:[#allocation3 + $0x20] ss:$2 sm:$0xff]  ;;  %v8244_v44 = vld [vmem:[#allocation3 + $0x21] ss:$2 sm:$0xff] }
 0x2e8   : > { %2012 = vst.msk [vmem:[#allocation3 + $0x31] sm:$0xff] %vm9864_vm15, %v1993_v45  ;;  %vm9872_vm2 = vcmp.gt.f32.partialorder %v8244_v44, %v8242_v8  ;;  %v2037_v41 = vmax.f32 %v8242_v8, %v8244_v44 }
 0x2e9   : > { %v1947_v12 = vpop.f32.mrf.mxu1 }
 0x2ea   : > { %v1948_v43 = vadd.f32 %v8202_v42, %v1947_v12  ;;  %v2047_v30 = vpack.c.bf16 %v2037_v41, %v2037_v41  ;;  %v2107_v41 = vrot.slane %v2073_v16, 1 }
 0x2ec   : > { %v1981_v21 = vadd.f32 %v1980_v61, %v1948_v43  ;;  %v2057_v17 = vunpack.c.l.b16 %v2047_v30 }
 0x2ee   : > { %v1994_v48 = vmax.f32 %v1981_v21, 0.0 }
 0x2ef   : > { %v1983_v51 = vpop.f32.mrf.mxu2 }
 0x2f0   : > { %2013 = vst.msk [vmem:[#allocation3 + $0x39] sm:$0xff] %vm9864_vm15, %v1994_v48 }
 0x2f1   : > { %v1950_v13 = vpop.f32.mrf.mxu1 }
 0x2f2   : > { %v1951_v3 = vadd.f32 %v8202_v42, %v1950_v13 }
 0x2f4   : > { %v1984_v19 = vadd.f32 %v1983_v51, %v1951_v3 }
 0x2f6   : > { %v1995_v40 = vmax.f32 %v1984_v19, 0.0 }
 0x2f7   : > { %v1985_v23 = vpop.f32.mrf.mxu2  ;;  %v8256_v50 = vld [vmem:[#allocation3 + $0x30] ss:$2 sm:$0xff]  ;;  %v8258_v62 = vld [vmem:[#allocation3 + $0x31] ss:$2 sm:$0xff] }
 0x2f8   : > { %2015 = vst.msk [vmem:[#allocation3 + $0x41] sm:$0x3] %vm2014_vm1, %v1995_v40  ;;  %v2038_v32 = vmax.f32 %v8256_v50, %v8258_v62  ;;  %vm9871_vm12 = vcmp.gt.f32.partialorder %v8258_v62, %v8256_v50  ;;  %v2108_v40 = vrot.slane %v8278_v56, 2  ;;  %v6791_v23 = vld [vmem:[%s9951_s26 + $0xb8] sm:$0xff]  ;;  %vm9953_vm1 = vcmask 523264  }
 0x2f9   : > { %v1952_v42 = vpop.f32.mrf.mxu1  ;;  %vm8270_vm15 = vmpackc.low %vm9871_vm12, %vm9872_vm2  ;;  %2519 = vmatpush.bf16.msrb.mxu1 %v6791_v23  ;;  %v2152_v23 = vrot.slane %v8278_v56, 4  ;;  %vm9957_vm2 = vcmask 1044480  }
 0x2fa   : > { %v2048_v47 = vpack.c.bf16 %v2038_v32, %v2038_v32  ;;  %v6775_v32 = vld [vmem:[%s9951_s26 + $0x38] sm:$0xff]  ;;  %vm9954_vm12 = vmmov %vm9953_vm1 }
 0x2fb   : > { %2473 = vmatpush.bf16.msrb.mxu3 %v6775_v32 }
 0x2fc   : > { %v2058_v26 = vunpack.c.l.b16 %v2048_v47 }
 0x2fe   : > { %v2061_v39 = vpack.c.b16 %v2058_v26, %v2057_v17  ;;  %v6790_v26 = vld [vmem:[%s9951_s26 + $0xb0] sm:$0xff] }
 0x2ff   : > { %v8280_v2 = vld [vmem:[#allocation3 + $0x40] ss:$2 sm:$0x3]  ;;  %v8282_v45 = vld [vmem:[#allocation3 + $0x41] ss:$2 sm:$0x3]  ;;  %2520 = vmatpush.bf16.msrb.mxu1 %v6790_v26 }
 0x300   : > { %v2064_v22 = vrot.slane %v2061_v39, 6  ;;  %v2039_v61 = vmax.f32 %v8280_v2, %v8282_v45  ;;  %v2109_v39 = vor.u32 %v2108_v40, %v2107_v41  ;;  %v6773_v40 = vld [vmem:[%s9951_s26 + $0x28] sm:$0xff]  ;;  %v2129_v26 = vrot.slane %v2073_v16, 2 }
 0x302   : > { %v8290_v12 = vsel %vm743_vm0, %v2063_v37, %v2064_v22  ;;  %v2049_v43 = vpack.c.bf16 %v2039_v61, %v2039_v61 }
 0x303   : > { %v2080_v21 = vshll.u32 %v8290_v12, 16  ;;  %v2084_v36 = vshrl.u32 %v8290_v12, 16 }
 0x304   : > { %v2059_v48 = vunpack.c.l.b16 %v2049_v43 }
 0x305   : > { %v2082_v51 = vrot.slane %v2080_v21, 1  ;;  %v2110_v3 = vrot.slane %v2084_v36, 1  ;;  %v2111_v4 = vrot.slane %v2080_v21, 2  ;;  %v2133_v41 = vrot.slane %v2080_v21, 3 }
 0x306   : > { %v2062_v53 = vpack.c.b16 %v2059_v48, %v2059_v48 }
 0x307   : > { %v2083_v13 = vsel %vm765_vm4, %v2078_v25, %v2082_v51  ;;  %v2112_v30 = vor.u32 %v2111_v4, %v2110_v3  ;;  %v2086_v61 = vor.u32 %v2084_v36, %v2082_v51  ;;  %v2154_v3 = vrot.slane %v2084_v36, 3 }
 0x308   : > { %2094 = vrot.lane.b32.xlu0 %v2083_v13, %s9869_s5  ;;  %v2066_v19 = vrot.slane %v2062_v53, 6  ;;  %v2155_v4 = vrot.slane %v2080_v21, 4  ;;  %v2132_v51 = vrot.slane %v2084_v36, 2  ;;  %v6788_v21 = vld [vmem:[%s9951_s26 + $0xa0] sm:$0xff] }
 0x309   : > { %v2113_v43 = vsel %vm890_vm3, %v2109_v39, %v2112_v30  ;;  %v2130_v39 = vrot.slane %v8278_v56, 3 }
 0x30a   : > { %v2067_v37 = vsel %vm743_vm0, %v2064_v22, %v2066_v19  ;;  %v6774_v22 = vld [vmem:[%s9951_s26 + $0x30] sm:$0xff]  ;;  %v6789_v19 = vld [vmem:[%s9951_s26 + $0xa8] sm:$0xff]  ;;  %v2134_v36 = vor.u32 %v2133_v41, %v2132_v51 }
 0x30b   : > { %v8306_v42 = vsel %vm1524_vm14, %v2067_v37, 0  ;;  %2474 = vmatpush.bf16.msrb.mxu3 %v6774_v22  ;;  %v2151_v37 = vrot.slane %v2073_v16, 3  ;;  %2521 = vmatpush.bf16.msrb.mxu1 %v6789_v19  ;;  %v6772_v22 = vld [vmem:[%s9951_s26 + $0x20] sm:$0xff]  ;;  %v6786_v19 = vld [vmem:[%s9951_s26 + $0x90] sm:$0xff]  ;;  %vm9952_vm14 = vcmask 1045504  }
 0x30c   : > { %v2087_v47 = vshll.u32 %v8306_v42, 16  ;;  %v2091_v17 = vshrl.u32 %v8306_v42, 16 }
 0x30e   : > { %v2089_v59 = vrot.slane %v2087_v47, 1  ;;  %v2114_v48 = vrot.slane %v2091_v17, 1  ;;  %v2115_v25 = vrot.slane %v2087_v47, 2  ;;  %v2158_v16 = vrot.slane %v2091_v17, 3 }
 0x30f   : > { %2475 = vmatpush.bf16.msrb.mxu3 %v6773_v40  ;;  %2522 = vmatpush.bf16.msrb.mxu1 %v6788_v21  ;;  %v6799_v40 = vld [vmem:[%s9951_s26 + $0xf8] sm:$0xff]  ;;  %v6768_v21 = vld [vmem:[%s9951_s26] sm:$0xff] }
 0x310   : > { %2118 = vrot.lane.b32.xlu0 %v2113_v43, %s9869_s5  ;;  %v2090_v53 = vsel %vm765_vm4, %v2086_v61, %v2089_v59  ;;  %v2093_v13 = vor.u32 %v2091_v17, %v2089_v59  ;;  %v2116_v32 = vor.u32 %v2115_v25, %v2114_v48  ;;  %v2156_v61 = vor.u32 %v2155_v4, %v2154_v3  ;;  %v6787_v25 = vld [vmem:[%s9951_s26 + $0x98] sm:$0xff] }
 0x311   : > { %2096 = vrot.lane.b32.xlu1 %v2090_v53, %s9869_s5  ;;  %v2153_v59 = vor.u32 %v2152_v23, %v2151_v37  ;;  %v2131_v53 = vor.u32 %v2130_v39, %v2129_v26  ;;  %v2159_v48 = vrot.slane %v2087_v47, 4  ;;  %v2136_v3 = vrot.slane %v2091_v17, 2  ;;  %v6785_v37 = vld [vmem:[%s9951_s26 + $0x88] sm:$0xff]  ;;  %2542 = vmatpush.bf16.msrb.mxu2 %v6799_v40  ;;  %v6770_v23 = vld [vmem:[%s9951_s26 + $0x10] sm:$0xff]  ;;  %v6784_v26 = vld [vmem:[%s9951_s26 + $0x80] sm:$0xff] }
 0x312   : > { %2098 = vrot.lane.b32.xlu2 %v2093_v13, %s9869_s5  ;;  %v2117_v43 = vsel %vm890_vm3, %v2112_v30, %v2116_v32  ;;  %v2137_v4 = vrot.slane %v2087_v47, 3  ;;  %v6771_v47 = vld [vmem:[%s9951_s26 + $0x18] sm:$0xff]  ;;  %v6769_v39 = vld [vmem:[%s9951_s26 + $0x8] sm:$0xff]  ;;  %v6778_v40 = vld [vmem:[%s9951_s26 + $0x50] sm:$0xff] }
 0x313   : > { %v2157_v56 = vsel %vm9873_vm6, %v2153_v59, %v2156_v61  ;;  %v2135_v13 = vsel %vm9874_vm7, %v2131_v53, %v2134_v36  ;;  %2476 = vmatpush.bf16.msrb.mxu3 %v6772_v22  ;;  %v2160_v30 = vor.u32 %v2159_v48, %v2158_v16  ;;  %2523 = vmatpush.bf16.msrb.mxu1 %v6787_v25  ;;  %v6795_v22 = vld [vmem:[%s9951_s26 + $0xd8] sm:$0xff]  ;;  %v6794_v59 = vld [vmem:[%s9951_s26 + $0xd0] sm:$0xff]  ;;  %v6792_v53 = vld [vmem:[%s9951_s26 + $0xc0] sm:$0xff]  ;;  %v2125_v25 = vrot.slane %v8290_v12, 2 }
 0x314   : > { %v2138_v51 = vor.u32 %v2137_v4, %v2136_v3  ;;  %v6783_v16 = vld [vmem:[%s9951_s26 + $0x78] sm:$0xff]  ;;  %v6782_v48 = vld [vmem:[%s9951_s26 + $0x70] sm:$0xff]  ;;  %v6781_v3 = vld [vmem:[%s9951_s26 + $0x68] sm:$0xff] }
 0x315   : > { %v2161_v41 = vsel %vm9873_vm6, %v2156_v61, %v2160_v30  ;;  %v6797_v61 = vld [vmem:[%s9951_s26 + $0xe8] sm:$0xff]  ;;  %vm9959_vm6 = vmmov %vm9953_vm1 }
 0x316   : > { %v2139_v17 = vsel %vm9874_vm7, %v2134_v36, %v2138_v51  ;;  %v6796_v36 = vld [vmem:[%s9951_s26 + $0xe0] sm:$0xff]  ;;  %vm9960_vm7 = vmmov %vm9957_vm2 }
 0x317   : > { %2524 = vmatpush.bf16.msrb.mxu1 %v6786_v19  ;;  %2477 = vmatpush.bf16.msrb.mxu3 %v6771_v47  ;;  %v6779_v47 = vld [vmem:[%s9951_s26 + $0x58] sm:$0xff] }
 0x318   : > { %2120 = vrot.lane.b32.xlu0 %v2117_v43, %s9869_s5  ;;  %v6793_v43 = vld [vmem:[%s9951_s26 + $0xc8] sm:$0xff] }
 0x319   : > { %2162 = vrot.lane.b32.xlu1 %v2157_v56, %s9869_s5 }
 0x31a   : > { %2140 = vrot.lane.b32.xlu2 %v2135_v13, %s9869_s5  ;;  %v2124_v13 = vrot.slane %v8275_v38, 2 }
 0x31b   : > { %2525 = vmatpush.bf16.msrb.mxu1 %v6785_v37  ;;  %2478 = vmatpush.bf16.msrb.mxu3 %v6770_v23  ;;  %v2127_v37 = vrot.slane %v8306_v42, 2 }
 0x31f   : > { %2526 = vmatpush.bf16.msrb.mxu1 %v6784_v26  ;;  %2479 = vmatpush.bf16.msrb.mxu3 %v6769_v39 }
 0x320   : > { %2122 = vrot.lane.b32.xlu0 %v2116_v32, %s9869_s5  ;;  %v6798_v32 = vld [vmem:[%s9951_s26 + $0xf0] sm:$0xff] }
 0x321   : > { %2164 = vrot.lane.b32.xlu1 %v2161_v41, %s9869_s5  ;;  %2543 = vmatpush.bf16.msrb.mxu2 %v6798_v32  ;;  %v6777_v32 = vld [vmem:[%s9951_s26 + $0x48] sm:$0xff] }
 0x322   : > { %2142 = vrot.lane.b32.xlu2 %v2139_v17, %s9869_s5 }
 0x323   : > { %2480 = vmatpush.bf16.msrb.mxu3 %v6768_v21  ;;  %v6776_v21 = vld [vmem:[%s9951_s26 + $0x40] sm:$0xff] }
 0x325   : > { %2544 = vmatpush.bf16.msrb.mxu2 %v6797_v61 }
 0x327   : > { %2496 = vmatpush.bf16.msra.mxu3 %v6783_v16 }
 0x329   : > { %2166 = vrot.lane.b32.xlu1 %v2160_v30, %s9869_s5  ;;  %2545 = vmatpush.bf16.msrb.mxu2 %v6796_v36  ;;  %v2126_v30 = vsel %vm9952_vm14, %v2124_v13, %v2125_v25  ;;  %v2147_v36 = vrot.slane %v8290_v12, 3  ;;  %v2149_v13 = vrot.slane %v8306_v42, 3 }
 0x32a   : > { %2144 = vrot.lane.b32.xlu2 %v2138_v51, %s9869_s5  ;;  %v6780_v51 = vld [vmem:[%s9951_s26 + $0x60] sm:$0xff]  ;;  %s10056_s5 = smov 32  }
 0x32b   : > { %2497 = vmatpush.bf16.msra.mxu3 %v6782_v48 }
 0x32d   : > { %2546 = vmatpush.bf16.msrb.mxu2 %v6795_v22  ;;  %v2146_v22 = vrot.slane %v8275_v38, 3 }
 0x32f   : > { %2498 = vmatpush.bf16.msra.mxu3 %v6781_v3 }
 0x331   : > { %2547 = vmatpush.bf16.msrb.mxu2 %v6794_v59 }
 0x333   : > { %2499 = vmatpush.bf16.msra.mxu3 %v6780_v51  ;;  %v2103_v51 = vrot.slane %v8290_v12, 1 }
 0x335   : > { %2548 = vmatpush.bf16.msrb.mxu2 %v6793_v43 }
 0x337   : > { %2500 = vmatpush.bf16.msra.mxu3 %v6779_v47 }
 0x339   : > { %2549 = vmatpush.bf16.msrb.mxu2 %v6792_v53  ;;  %v2148_v53 = vsel %vm9957_vm2, %v2146_v22, %v2147_v36  ;;  %vm9962_vm2 = vcmask 1046528  }
 0x33b   : > { %2501 = vmatpush.bf16.msra.mxu3 %v6778_v40 }
 0x33f   : > { %2502 = vmatpush.bf16.msra.mxu3 %v6777_v32 }
 0x343   : > { %2503 = vmatpush.bf16.msra.mxu3 %v6776_v21 }
 0x36c   : > { %v2099_v56 = vpop.permute.xlu2 %2098 }
 0x374   : > { %v2141_v4 = vpop.permute.xlu2 %2140 }
 0x375   : > { %v2191_v19 = vsel %vm9953_vm1, %v2126_v30, %v2141_v4  ;;  %v2175_v4 = vsel %vm9959_vm6, %v8306_v42, %v2099_v56  ;;  %v2150_v30 = vsel %vm9960_vm7, %v2147_v36, %v2149_v13  ;;  %v2105_v56 = vrot.slane %v8306_v42, 1  ;;  %vm9964_vm6 = vmmov %vm9962_vm2 }
 0x376   : > { %2527 = vmatmul.bf16.vlgmr.msrb.gmra.mxu1 %v2191_v19  ;;  %vm9965_vm7 = vmmov %vm9953_vm1 }
 0x37a   : > { %v2095_v41 = vpop.permute.xlu0 %2094 }
 0x37b   : > { %v2169_v17 = vsel %vm9954_vm12, %v8275_v38, %v2095_v41  ;;  %vm9955_vm12 = vmmov %vm9952_vm14  ;;  %v2102_v41 = vrot.slane %v8275_v38, 1 }
 0x37c   : > { %2481 = vmatmul.bf16.vlgmr.msrb.gmra.mxu3 %v2169_v17  ;;  %v2143_v23 = vpop.permute.xlu2 %2142  ;;  %v2128_v39 = vsel %vm9955_vm12, %v2125_v25, %v2127_v37  ;;  %vm9956_vm14 = vmmov %vm9953_vm1 }
 0x37d   : > { %v2195_v61 = vsel %vm9953_vm1, %v2128_v39, %v2143_v23  ;;  %vm9958_vm12 = vmmov %vm9953_vm1  ;;  %v2104_v40 = vsel %vm9962_vm2, %v2102_v41, %v2103_v51 }
 0x382   : > { %v2119_v17 = vpop.permute.xlu0 %2118 }
 0x383   : > { %v2097_v26 = vpop.permute.xlu1 %2096 }
 0x384   : > { %v2172_v43 = vsel %vm9956_vm14, %v8290_v12, %v2097_v26  ;;  %v2145_v48 = vpop.permute.xlu2 %2144  ;;  %vm9961_vm14 = vmmov %vm9953_vm1  ;;  %v2106_v26 = vsel %vm9964_vm6, %v2103_v51, %v2105_v56  ;;  %v6984_v51 = vld [vmem:[%s9827_s6] ss:$0 sm:$0xff] }
 0x385   : > { %v2199_v25 = vsel %vm9953_vm1, %v2127_v37, %v2145_v48 }
 0x386   : > { %2532 = vmatmul.bf16.gmra.mxu1 %v2195_v61 }
 0x38a   : > { %v2121_v32 = vpop.permute.xlu0 %2120 }
 0x38b   : > { %v2163_v59 = vpop.permute.xlu1 %2162  ;;  %v2183_v39 = vsel %vm9965_vm7, %v2106_v26, %v2121_v32  ;;  %vm9967_vm7 = vcmask 293888  }
 0x38c   : > { %2486 = vmatmul.bf16.gmra.mxu3 %v2172_v43  ;;  %v2203_v16 = vsel %vm9958_vm12, %v2148_v53, %v2163_v59  ;;  %vm9963_vm12 = vmmov %vm9953_vm1 }
 0x38d   : > { %2550 = vmatmul.bf16.vlgmr.msrb.gmra.mxu2 %v2203_v16  ;;  %v2179_v37 = vsel %vm9963_vm12, %v2104_v40, %v2119_v17 }
 0x392   : > { %v2123_v12 = vpop.permute.xlu0 %2122 }
 0x393   : > { %v2165_v3 = vpop.permute.xlu1 %2164 }
 0x394   : > { %v2207_v19 = vsel %vm9961_vm14, %v2150_v30, %v2165_v3  ;;  %vm9966_vm14 = vmmov %vm9953_vm1 }
 0x395   : > { %v2187_v38 = vsel %vm9966_vm14, %v2105_v56, %v2123_v12  ;;  %vm9968_vm14 = vmmov %vm9967_vm7 }
 0x396   : > { %2537 = vmatmul.bf16.gmra.mxu1 %v2199_v25 }
 0x39b   : > { %v2167_v47 = vpop.permute.xlu1 %2166 }
 0x39c   : > { %2491 = vmatmul.bf16.gmra.mxu3 %v2175_v4  ;;  %v2211_v23 = vsel %vm9953_vm1, %v2149_v13, %v2167_v47 }
 0x39d   : > { %2555 = vmatmul.bf16.gmra.mxu2 %v2207_v19 }
 0x3ac   : > { %2504 = vmatmul.bf16.vlgmr.msra.gmra.mxu3 %v2179_v37 }
 0x3ad   : > { %2560 = vmatmul.bf16.gmra.mxu2 %v2211_v23 }
 0x3bc   : > { %2509 = vmatmul.bf16.gmra.mxu3 %v2183_v39 }
 0x3cc   : > { %2514 = vmatmul.bf16.gmra.mxu3 %v2187_v38 }
 0x3f3   : > { %v2528_v61 = vpop.f32.mrf.mxu1 }
 0x3fb   : > { %v2530_v21 = vpop.f32.mrf.mxu1 }
 0x3ff   : > { %v2482_v36 = vpop.f32.mrf.mxu3 }
 0x400   : > { %v2483_v41 = vadd.f32 %v6984_v51, %v2482_v36 }
 0x403   : > { %v2533_v22 = vpop.f32.mrf.mxu1 }
 0x407   : > { %v2484_v59 = vpop.f32.mrf.mxu3 }
 0x408   : > { %v2485_v56 = vadd.f32 %v6984_v51, %v2484_v59 }
 0x40b   : > { %v2535_v43 = vpop.f32.mrf.mxu1 }
 0x40f   : > { %v2487_v53 = vpop.f32.mrf.mxu3 }
 0x410   : > { %v2551_v16 = vpop.f32.mrf.mxu2 }
 0x413   : > { %v2538_v48 = vpop.f32.mrf.mxu1 }
 0x417   : > { %v2489_v42 = vpop.f32.mrf.mxu3 }
 0x418   : > { %v2553_v25 = vpop.f32.mrf.mxu2 }
 0x41b   : > { %v2540_v13 = vpop.f32.mrf.mxu1 }
 0x41f   : > { %v2492_v3 = vpop.f32.mrf.mxu3 }
 0x420   : > { %v2556_v4 = vpop.f32.mrf.mxu2 }
 0x427   : > { %v2494_v30 = vpop.f32.mrf.mxu3 }
 0x428   : > { %v2558_v19 = vpop.f32.mrf.mxu2  ;;  %v2488_v30 = vadd.f32 %v6984_v51, %v2487_v53 }
 0x42f   : > { %v2505_v17 = vpop.f32.mrf.mxu3 }
 0x430   : > { %v2506_v47 = vadd.f32 %v2505_v17, %v2483_v41  ;;  %v2561_v40 = vpop.f32.mrf.mxu2  ;;  %v2490_v17 = vadd.f32 %v6984_v51, %v2489_v42 }
 0x432   : > { %v2529_v37 = vadd.f32 %v2528_v61, %v2506_v47 }
 0x434   : > { %v2552_v23 = vadd.f32 %v2551_v16, %v2529_v37 }
 0x436   : > { %v2565_v32 = vmax.f32 %v2552_v23, 0.0 }
 0x437   : > { %v2507_v26 = vpop.f32.mrf.mxu3 }
 0x438   : > { %2575 = vst [vmem:[#allocation4 + $0x1] sm:$0xff] %v2565_v32  ;;  %v2508_v39 = vadd.f32 %v2507_v26, %v2485_v56  ;;  %v2563_v12 = vpop.f32.mrf.mxu2 }
 0x43a   : > { %v2531_v38 = vadd.f32 %v2530_v21, %v2508_v39 }
 0x43c   : > { %v2554_v13 = vadd.f32 %v2553_v25, %v2531_v38 }
 0x43e   : > { %v2566_v52 = vmax.f32 %v2554_v13, 0.0 }
 0x43f   : > { %v2510_v6 = vpop.f32.mrf.mxu3 }
 0x440   : > { %2576 = vst [vmem:[#allocation4 + $0x9] sm:$0xff] %v2566_v52  ;;  %v2511_v33 = vadd.f32 %v2510_v6, %v2488_v30  ;;  %v2493_v52 = vadd.f32 %v6984_v51, %v2492_v3 }
 0x442   : > { %v2534_v36 = vadd.f32 %v2533_v22, %v2511_v33 }
 0x444   : > { %v2557_v41 = vadd.f32 %v2556_v4, %v2534_v36 }
 0x446   : > { %v2567_v61 = vmax.f32 %v2557_v41, 0.0 }
 0x447   : > { %v2512_v47 = vpop.f32.mrf.mxu3  ;;  %v2580_v59 = vld [vmem:[#allocation4] ss:$2 sm:$0xff]  ;;  %v2586_v16 = vld [vmem:[#allocation4 + $0x1] ss:$2 sm:$0xff] }
 0x448   : > { %2577 = vst [vmem:[#allocation4 + $0x11] sm:$0xff] %v2567_v61  ;;  %v2513_v21 = vadd.f32 %v2512_v47, %v2490_v17  ;;  %v2591_v25 = vmax.f32 %v2580_v59, %v2586_v16  ;;  %vm2594_vm1 = vcmp.gt.f32.partialorder %v2586_v16, %v2580_v59  ;;  %v6807_v59 = vld [vmem:[%s9828_s7 + $0x28] sm:$0xff] }
 0x449   : > { %v6801_v16 = vld [vmem:[%s9838_s17 + $0x8] sm:$0xff] }
 0x44a   : > { %v2536_v53 = vadd.f32 %v2535_v43, %v2513_v21  ;;  %2597 = vst [vmem:[%s669_s24] sm:$0xff] %v2591_v25 }
 0x44c   : > { %v2559_v37 = vadd.f32 %v2558_v19, %v2536_v53 }
 0x44e   : > { %v2568_v6 = vmax.f32 %v2559_v37, 0.0  ;;  %v6800_v37 = vld [vmem:[%s9838_s17] sm:$0xff] }
 0x44f   : > { %v2515_v33 = vpop.f32.mrf.mxu3 }
 0x450   : > { %2578 = vst [vmem:[#allocation4 + $0x19] sm:$0xff] %v2568_v6  ;;  %v2516_v22 = vadd.f32 %v2515_v33, %v2493_v52  ;;  %v6809_v52 = vld [vmem:[%s9828_s7 + $0x38] sm:$0xff]  ;;  %v6808_v6 = vld [vmem:[%s9828_s7 + $0x30] sm:$0xff] }
 0x451   : > { %3334 = vmatpush.bf16.msra.mxu1 %v6809_v52  ;;  %v6811_v52 = vld [vmem:[%s9828_s7 + $0x48] sm:$0xff] }
 0x452   : > { %v2539_v42 = vadd.f32 %v2538_v48, %v2516_v22 }
 0x454   : > { %v2562_v4 = vadd.f32 %v2561_v40, %v2539_v42  ;;  %v2603_v40 = vsel %vm2594_vm1, 0.0, %v2591_v25  ;;  %v6806_v42 = vld [vmem:[%s9828_s7 + $0x20] sm:$0xff] }
 0x455   : > { %v2609_v41 = vrot.slane %v2603_v40, 6  ;;  %3335 = vmatpush.bf16.msra.mxu1 %v6808_v6  ;;  %v6831_v40 = vld [vmem:[%s9828_s7 + $0xe8] sm:$0xff] }
 0x456   : > { %v2569_v23 = vmax.f32 %v2562_v4, 0.0  ;;  %v6805_v4 = vld [vmem:[%s9828_s7 + $0x18] sm:$0xff] }
 0x457   : > { %v2517_v56 = vpop.f32.mrf.mxu3  ;;  %v2582_v32 = vld [vmem:[#allocation4 + $0x10] ss:$2 sm:$0xff]  ;;  %v2588_v26 = vld [vmem:[#allocation4 + $0x11] ss:$2 sm:$0xff] }
 0x458   : > { %2579 = vst [vmem:[#allocation4 + $0x21] sm:$0x7] %v2569_v23  ;;  %v2592_v39 = vmax.f32 %v2582_v32, %v2588_v26  ;;  %vm2595_vm2 = vcmp.gt.f32.partialorder %v2588_v26, %v2582_v32  ;;  %v6825_v23 = vld [vmem:[%s9828_s7 + $0xb8] sm:$0xff]  ;;  %v6804_v56 = vld [vmem:[%s9828_s7 + $0x10] sm:$0xff] }
 0x459   : > { %vm6128_vm6 = vmpackc.low %vm2595_vm2, %vm2594_vm1  ;;  %3336 = vmatpush.bf16.msra.mxu1 %v6807_v59  ;;  %3380 = vmatpush.bf16.msrb.mxu0 %v6825_v23  ;;  %v6817_v32 = vld [vmem:[%s9828_s7 + $0x78] sm:$0xff]  ;;  %v6824_v26 = vld [vmem:[%s9828_s7 + $0xb0] sm:$0xff] }
 0x45a   : > { %2598 = vst [vmem:[%s669_s24 + $0x8] sm:$0xff] %v2592_v39  ;;  %v2604_v3 = vsel %vm2595_vm2, 0.0, %v2592_v39  ;;  %v6129_v53 = vpack.c.bf16 %v2592_v39, %v2591_v25  ;;  %v2622_v25 = vld [vmem:[%s9838_s17 + $0x10] sm:$0x1]  ;;  %vm9969_vm2 = vmmov %vm9967_vm7  ;;  %3357 = vmatpush.bf16.msra.mxu2 %v6817_v32  ;;  %v6833_v39 = vld [vmem:[%s9828_s7 + $0xf8] sm:$0xff] }
 0x45b   : > { %v2610_v51 = vrot.slane %v2604_v3, 6  ;;  %v2635_v33 = vunpack.c.l.b16 %v2622_v25  ;;  %v6832_v3 = vld [vmem:[%s9828_s7 + $0xf0] sm:$0xff]  ;;  %v6827_v25 = vld [vmem:[%s9828_s7 + $0xc8] sm:$0xff] }
 0x45c   : > { %v6840_v32 = vld [vmem:[%s9828_s7 + $0x130] sm:$0xff] }
 0x45d   : > { %v2611_v47 = vsel %vm743_vm0, %v2609_v41, %v2610_v51  ;;  %v2638_v22 = vpack.c.b16 %v2635_v33, %v2635_v33  ;;  %3337 = vmatpush.bf16.msra.mxu1 %v6806_v42  ;;  %3381 = vmatpush.bf16.msrb.mxu0 %v6824_v26  ;;  %v6810_v42 = vld [vmem:[%s9828_s7 + $0x40] sm:$0xff] }
 0x45f   : > { %v2584_v12 = vld [vmem:[#allocation4 + $0x20] ss:$2 sm:$0x3]  ;;  %v2590_v38 = vld [vmem:[#allocation4 + $0x21] ss:$2 sm:$0x3] }
 0x460   : > { %v2593_v43 = vmax.f32 %v2584_v12, %v2590_v38  ;;  %vm2596_vm12 = vcmp.gt.f32.partialorder %v2590_v38, %v2584_v12  ;;  %v6803_v12 = vld [vmem:[%s9828_s7 + $0x8] sm:$0xff]  ;;  %v6816_v38 = vld [vmem:[%s9828_s7 + $0x70] sm:$0xff] }
 0x461   : > { %3338 = vmatpush.bf16.msra.mxu1 %v6805_v4  ;;  %3358 = vmatpush.bf16.msra.mxu2 %v6816_v38  ;;  %v6839_v38 = vld [vmem:[%s9828_s7 + $0x128] sm:$0xff] }
 0x462   : > { %2599 = vst [vmem:[%s669_s24 + $0x10] sm:$0x3] %v2593_v43  ;;  %v2605_v19 = vsel %vm2596_vm12, 0.0, %v2593_v43  ;;  %v2602_v30 = vsel %vm2596_vm12, %v2593_v43, 0.0  ;;  %v6823_v43 = vld [vmem:[%s9828_s7 + $0xa8] sm:$0xff] }
 0x463   : > { %v2612_v48 = vrot.slane %v2605_v19, 6  ;;  %v2617_v61 = vsel %vm743_vm0, %v2602_v30, %v2609_v41  ;;  %v6802_v19 = vld [vmem:[%s9828_s7] sm:$0xff]  ;;  %3382 = vmatpush.bf16.msrb.mxu0 %v6823_v43  ;;  %v6821_v30 = vld [vmem:[%s9828_s7 + $0x98] sm:$0xff]  ;;  %vm2692_vm12 = vsmask.f32 1280 }
 0x464   : > { %v2624_v21 = vpack.c.bf16 %v2611_v47, %v2617_v61  ;;  %v6813_v41 = vld [vmem:[%s9828_s7 + $0x58] sm:$0xff]  ;;  %v6820_v61 = vld [vmem:[%s9828_s7 + $0x90] sm:$0xff]  ;;  %vm8584_vm1 = vmand %vm743_vm0, %vm2692_vm12 }
 0x465   : > { %v2613_v13 = vsel %vm743_vm0, %v2610_v51, %v2612_v48  ;;  %3339 = vmatpush.bf16.msra.mxu1 %v6804_v56  ;;  %v6815_v51 = vld [vmem:[%s9828_s7 + $0x68] sm:$0xff]  ;;  %v6822_v48 = vld [vmem:[%s9828_s7 + $0xa0] sm:$0xff]  ;;  %v6829_v47 = vld [vmem:[%s9828_s7 + $0xd8] sm:$0xff] }
 0x466   : > { %v2625_v36 = vpack.c.bf16 %v2613_v13, %v2613_v13  ;;  %3359 = vmatpush.bf16.msra.mxu2 %v6815_v51  ;;  %v6814_v13 = vld [vmem:[%s9828_s7 + $0x60] sm:$0xff] }
 0x467   : > { %3383 = vmatpush.bf16.msrb.mxu0 %v6822_v48  ;;  %v6826_v56 = vld [vmem:[%s9828_s7 + $0xc0] sm:$0xff] }
 0x468   : > { %v2649_v17 = vsel %vm743_vm0, %v2625_v36, 0  ;;  %v6830_v36 = vld [vmem:[%s9828_s7 + $0xe0] sm:$0xff] }
 0x469   : > { %2656 = vmatpush.bf16.msrb.mxu3 %v2649_v17  ;;  %3340 = vmatpush.bf16.msra.mxu1 %v6803_v12 }
 0x46a   : > { %3360 = vmatpush.bf16.msra.mxu2 %v6814_v13 }
 0x46b   : > { %3384 = vmatpush.bf16.msrb.mxu0 %v6821_v30 }
 0x46d   : > { %2657 = vmatpush.bf16.msrb.mxu3 %v2624_v21  ;;  %3341 = vmatpush.bf16.msra.mxu1 %v6802_v19  ;;  %v6812_v21 = vld [vmem:[%s9828_s7 + $0x50] sm:$0xff] }
 0x46e   : > { %3361 = vmatpush.bf16.msra.mxu2 %v6813_v41 }
 0x46f   : > { %3385 = vmatpush.bf16.msrb.mxu0 %v6820_v61 }
 0x471   : > { %6130 = vmatpush.bf16.msk.msrb.mxu3 %vm6128_vm6, %v6129_v53  ;;  %v6819_v53 = vld [vmem:[%s9828_s7 + $0x88] sm:$0xff]  ;;  %vm9972_vm6 = vcmask 1046528  }
 0x472   : > { %3362 = vmatpush.bf16.msra.mxu2 %v6812_v21  ;;  %v6857_v21 = vld [vmem:[%s9828_s7 + $0x1b8] sm:$0xff] }
 0x473   : > { %3386 = vmatpush.bf16.msrb.mxu0 %v6819_v53 }
 0x474   : > { %6131 = vmatmul.msk.bf16.vlgmr.msrb.gmra.mxu3 %vm9967_vm7, %v6800_v37  ;;  %v6828_v37 = vld [vmem:[%s9828_s7 + $0xd0] sm:$0xff]  ;;  %vm9974_vm7 = vmmov %vm9972_vm6 }
 0x475   : > { %3403 = vmatpush.bf16.msra.mxu3 %v6833_v39 }
 0x476   : > { %3363 = vmatpush.bf16.msra.mxu2 %v6811_v52 }
 0x479   : > { %3404 = vmatpush.bf16.msra.mxu3 %v6832_v3 }
 0x47a   : > { %3364 = vmatpush.bf16.msra.mxu2 %v6810_v42  ;;  %v6865_v42 = vld [vmem:[%s9828_s7 + $0x1f8] sm:$0xff] }
 0x47d   : > { %3405 = vmatpush.bf16.msra.mxu3 %v6831_v40  ;;  %v6838_v40 = vld [vmem:[%s9828_s7 + $0x120] sm:$0xff] }
 0x481   : > { %3406 = vmatpush.bf16.msra.mxu3 %v6830_v36 }
 0x484   : > { %6132 = vmatmul.msk.bf16.gmra.mxu3 %vm9968_vm14, %v6801_v16  ;;  %v6818_v16 = vld [vmem:[%s9828_s7 + $0x80] sm:$0xff]  ;;  %vm9975_vm14 = vcmask 1045504  }
 0x485   : > { %3407 = vmatpush.bf16.msra.mxu3 %v6829_v47  ;;  %3387 = vmatpush.bf16.msrb.mxu0 %v6818_v16  ;;  %v6849_v16 = vld [vmem:[%s9828_s7 + $0x178] sm:$0xff] }
 0x486   : > { %6949 = vmatpush.bf16.msrb.mxu2 %v6849_v16 }
 0x489   : > { %3408 = vmatpush.bf16.msra.mxu3 %v6828_v37  ;;  %3472 = vmatpush.bf16.msra.mxu0 %v6857_v21 }
 0x48d   : > { %3409 = vmatpush.bf16.msra.mxu3 %v6827_v25 }
 0x491   : > { %3410 = vmatpush.bf16.msra.mxu3 %v6826_v56 }
 0x494   : > { %6133 = vmatmul.msk.bf16.gmra.mxu3 %vm9969_vm2, %v2638_v22  ;;  %v6841_v22 = vld [vmem:[%s9828_s7 + $0x138] sm:$0xff]  ;;  %vm9976_vm2 = vmmov %vm9975_vm14 }
 0x495   : > { %3426 = vmatpush.bf16.msrb.mxu1 %v6841_v22  ;;  %v6856_v22 = vld [vmem:[%s9828_s7 + $0x1b0] sm:$0xff]  ;;  %3495 = vmatpush.bf16.msrb.mxu3 %v6865_v42 }
 0x496   : > { %3473 = vmatpush.bf16.msra.mxu0 %v6856_v22  ;;  %v6863_v22 = vld [vmem:[%s9828_s7 + $0x1e8] sm:$0xff] }
 0x499   : > { %3427 = vmatpush.bf16.msrb.mxu1 %v6840_v32  ;;  %v6835_v32 = vld [vmem:[%s9828_s7 + $0x108] sm:$0xff] }
 0x49d   : > { %3428 = vmatpush.bf16.msrb.mxu1 %v6839_v38 }
 0x4a1   : > { %3429 = vmatpush.bf16.msrb.mxu1 %v6838_v40 }
 0x4f7   : > { %v2660_v17 = vpop.f32.mrf.mxu3 }
 0x4f8   : > { %v2674_v6 = vpack.c.bf16 %v2660_v17, %v2660_v17  ;;  %v6837_v17 = vld [vmem:[%s9828_s7 + $0x118] sm:$0xff] }
 0x4f9   : > { %3430 = vmatpush.bf16.msrb.mxu1 %v6837_v17 }
 0x4fa   : > { %v2684_v4 = vunpack.c.l.b16 %v2674_v6 }
 0x4ff   : > { %v2662_v59 = vpop.f32.mrf.mxu3 }
 0x500   : > { %v2675_v33 = vpack.c.bf16 %v2662_v59, %v2662_v59  ;;  %v6836_v59 = vld [vmem:[%s9828_s7 + $0x110] sm:$0xff] }
 0x501   : > { %3431 = vmatpush.bf16.msrb.mxu1 %v6836_v59 }
 0x502   : > { %v2685_v23 = vunpack.c.l.b16 %v2675_v33 }
 0x504   : > { %v2689_v26 = vpack.c.b16 %v2685_v23, %v2684_v4  ;;  %v8627_v4 = vld [vmem:[%s9828_s7 + $0x170] sm:$0xff] }
 0x505   : > { %6950 = vmatpush.bf16.msrb.mxu2 %v8627_v4  ;;  %3432 = vmatpush.bf16.msrb.mxu1 %v6835_v32  ;;  %v6846_v32 = vld [vmem:[%s9828_s7 + $0x160] sm:$0xff] }
 0x506   : > { %v2694_v39 = vshrl.u32 %v2689_v26, 16  ;;  %v2697_v12 = vshll.u32 %v2689_v26, 16  ;;  %v6855_v26 = vld [vmem:[%s9828_s7 + $0x1a8] sm:$0xff] }
 0x507   : > { %v2665_v43 = vpop.f32.mrf.mxu3  ;;  %3474 = vmatpush.bf16.msra.mxu0 %v6855_v26 }
 0x508   : > { %v2696_v3 = vrot.slane %v2694_v39, 6  ;;  %v2699_v19 = vrot.slane %v2697_v12, 7  ;;  %v2676_v41 = vpack.c.bf16 %v2665_v43, %v2665_v43  ;;  %v6864_v12 = vld [vmem:[%s9828_s7 + $0x1f0] sm:$0xff] }
 0x509   : > { %3496 = vmatpush.bf16.msrb.mxu3 %v6864_v12 }
 0x50a   : > { %v2700_v48 = vor.u32 %v2699_v19, %v2696_v3  ;;  %v2686_v52 = vunpack.c.l.b16 %v2676_v41  ;;  %v8642_v19 = vld [vmem:[%s9828_s7 + $0x168] sm:$0xff] }
 0x50b   : > { %6951 = vmatpush.bf16.msrb.mxu2 %v8642_v19 }
 0x50c   : > { %v8593_v13 = vsel %vm8584_vm1, 0, %v2700_v48 }
 0x50d   : > { %v8596_v30 = vshll.u32 %v8593_v13, 16  ;;  %3342 = vmatmul.bf16.vlgmr.msra.gmra.mxu1 %v8593_v13  ;;  %v8600_v36 = vshrl.u32 %v8593_v13, 16  ;;  %3497 = vmatpush.bf16.msrb.mxu3 %v6863_v22 }
 0x50f   : > { %v2667_v61 = vpop.f32.mrf.mxu3  ;;  %v2782_v53 = vrot.slane %v8600_v36, 2  ;;  %v2783_v37 = vrot.slane %v8596_v30, 3  ;;  %v2730_v17 = vrot.slane %v8596_v30, 1  ;;  %6952 = vmatpush.bf16.msrb.mxu2 %v6846_v32 }
 0x510   : > { %v2677_v47 = vpack.c.bf16 %v2667_v61, %v2667_v61  ;;  %v6834_v61 = vld [vmem:[%s9828_s7 + $0x100] sm:$0xff] }
 0x511   : > { %v8616_v25 = vor.u32 %v2783_v37, %v2782_v53  ;;  %v2752_v53 = vrot.slane %v8593_v13, 1  ;;  %v2760_v37 = vrot.slane %v8600_v36, 1  ;;  %3433 = vmatpush.bf16.msrb.mxu1 %v6834_v61  ;;  %v6862_v61 = vld [vmem:[%s9828_s7 + $0x1e0] sm:$0xff] }
 0x512   : > { %v2687_v6 = vunpack.c.l.b16 %v2677_v47  ;;  %3498 = vmatpush.bf16.msrb.mxu3 %v6862_v61  ;;  %v6842_v61 = vld [vmem:[%s9828_s7 + $0x140] sm:$0xff] }
 0x514   : > { %v2690_v33 = vpack.c.b16 %v2687_v6, %v2686_v52 }
 0x515   : > { %3449 = vmatpush.bf16.msra.mxu1 %v6849_v16  ;;  %v6861_v16 = vld [vmem:[%s9828_s7 + $0x1d8] sm:$0xff] }
 0x516   : > { %v2702_v23 = vshrl.u32 %v2690_v33, 16  ;;  %v2705_v56 = vshll.u32 %v2690_v33, 16  ;;  %v2761_v33 = vrot.slane %v8596_v30, 2  ;;  %3499 = vmatpush.bf16.msrb.mxu3 %v6861_v16 }
 0x517   : > { %v2670_v39 = vpop.f32.mrf.mxu3 }
 0x518   : > { %v2704_v38 = vrot.slane %v2702_v23, 6  ;;  %v2707_v43 = vrot.slane %v2705_v56, 7  ;;  %v2678_v3 = vpack.c.bf16 %v2670_v39, %v2670_v39  ;;  %v2731_v56 = vor.u32 %v2730_v17, %v8600_v36  ;;  %v6853_v17 = vld [vmem:[%s9828_s7 + $0x198] sm:$0xff] }
 0x519   : > { %3450 = vmatpush.bf16.msra.mxu1 %v8627_v4  ;;  %v6843_v4 = vld [vmem:[%s9828_s7 + $0x148] sm:$0xff] }
 0x51a   : > { %v2708_v40 = vor.u32 %v2707_v43, %v2704_v38  ;;  %v2688_v41 = vunpack.c.l.b16 %v2678_v3 }
 0x51c   : > { %v2691_v47 = vpack.c.b16 %v2688_v41, %v2688_v41  ;;  %v8649_v21 = vsel %vm2692_vm12, %v2700_v48, %v2708_v40  ;;  %v6854_v48 = vld [vmem:[%s9828_s7 + $0x1a0] sm:$0xff] }
 0x51d   : > { %v8655_v52 = vshrl.u32 %v8649_v21, 16  ;;  %3347 = vmatmul.bf16.gmra.mxu1 %v8649_v21  ;;  %v9878_v6 = vrot.slane %v8649_v21, 1  ;;  %v8660_v59 = vshll.u32 %v8649_v21, 16  ;;  %3475 = vmatpush.bf16.msra.mxu0 %v6854_v48  ;;  %v6845_v48 = vld [vmem:[%s9828_s7 + $0x158] sm:$0xff] }
 0x51e   : > { %v2711_v42 = vshrl.u32 %v2691_v47, 16  ;;  %v2714_v23 = vshll.u32 %v2691_v47, 16  ;;  %6953 = vmatpush.bf16.msrb.mxu2 %v6845_v48  ;;  %3451 = vmatpush.bf16.msra.mxu1 %v8642_v19  ;;  %v6859_v19 = vld [vmem:[%s9828_s7 + $0x1c8] sm:$0xff] }
 0x51f   : > { %v2672_v26 = vpop.f32.mrf.mxu3  ;;  %v2754_v39 = vsel %vm9972_vm6, %v2752_v53, %v9878_v6  ;;  %v2735_v12 = vrot.slane %v8660_v59, 1  ;;  %v2763_v38 = vrot.slane %v8655_v52, 1  ;;  %v2764_v43 = vrot.slane %v8660_v59, 2 }
 0x520   : > { %v2713_v3 = vrot.slane %v2711_v42, 6  ;;  %v2716_v41 = vrot.slane %v2714_v23, 7  ;;  %3388 = vmatmul.bf16.vlgmr.msrb.gmra.mxu0 %v2754_v39  ;;  %v2762_v53 = vor.u32 %v2761_v33, %v2760_v37  ;;  %v6852_v37 = vld [vmem:[%s9828_s7 + $0x190] sm:$0xff]  ;;  %vm9977_vm6 = vcmask 1044480  }
 0x521   : > { %v2736_v47 = vsel %vm765_vm4, %v2731_v56, %v2735_v12  ;;  %v2765_v26 = vor.u32 %v2764_v43, %v2763_v38  ;;  %3476 = vmatpush.bf16.msra.mxu0 %v6853_v17  ;;  %v6844_v33 = vld [vmem:[%s9828_s7 + $0x150] sm:$0xff]  ;;  %v6851_v56 = vld [vmem:[%s9828_s7 + $0x188] sm:$0xff]  ;;  %v6850_v17 = vld [vmem:[%s9828_s7 + $0x180] sm:$0xff] }
 0x522   : > { %v2717_v6 = vor.u32 %v2716_v41, %v2713_v3  ;;  %3365 = vmatmul.bf16.vlgmr.msra.gmra.mxu2 %v2736_v47  ;;  %v6860_v39 = vld [vmem:[%s9828_s7 + $0x1d0] sm:$0xff]  ;;  %3452 = vmatpush.bf16.msra.mxu1 %v6846_v32  ;;  %v9973_v47 = vrot.slane %v8649_v21, 1 }
 0x523   : > { %v2766_v22 = vsel %vm890_vm3, %v2762_v53, %v2765_v26  ;;  %6954 = vmatpush.bf16.msrb.mxu2 %v6844_v33  ;;  %3500 = vmatpush.bf16.msrb.mxu3 %v6860_v39 }
 0x524   : > { %3411 = vmatmul.bf16.vlgmr.msra.gmra.mxu3 %v2766_v22  ;;  %v2718_v42 = vsel %vm2692_vm12, %v2708_v40, %v2717_v6  ;;  %v2739_v22 = vor.u32 %v8655_v52, %v2735_v12  ;;  %v2775_v12 = vrot.slane %v8649_v21, 2 }
 0x525   : > { %v8702_v23 = vsel %vm8040_vm9, %v2718_v42, 0  ;;  %3477 = vmatpush.bf16.msra.mxu0 %v6852_v37  ;;  %v6858_v37 = vld [vmem:[%s9828_s7 + $0x1c0] sm:$0xff] }
 0x526   : > { %v8706_v40 = vshll.u32 %v8702_v23, 16  ;;  %v8709_v6 = vshrl.u32 %v8702_v23, 16  ;;  %v2755_v38 = vrot.slane %v8702_v23, 1  ;;  %3453 = vmatpush.bf16.msra.mxu1 %v6845_v48  ;;  %v2777_v48 = vrot.slane %v8702_v23, 2 }
 0x527   : > { %6955 = vmatpush.bf16.msrb.mxu2 %v6843_v4  ;;  %3501 = vmatpush.bf16.msrb.mxu3 %v6859_v19  ;;  %v2808_v19 = vrot.slane %v8660_v59, 4 }
 0x528   : > { %v2767_v43 = vrot.slane %v8709_v6, 1  ;;  %v2768_v3 = vrot.slane %v8706_v40, 2  ;;  %v2743_v41 = vrot.slane %v8706_v40, 1  ;;  %v2756_v53 = vsel %vm9974_vm7, %v9973_v47, %v2755_v38 }
 0x529   : > { %3478 = vmatpush.bf16.msra.mxu0 %v6851_v56  ;;  %v2774_v56 = vrot.slane %v8593_v13, 2  ;;  %v2804_v47 = vrot.slane %v8600_v36, 3  ;;  %vm9978_vm7 = vsmask.f32 5376  ;;  %v2812_v36 = vrot.slane %v8706_v40, 4 }
 0x52a   : > { %v2769_v42 = vor.u32 %v2768_v3, %v2767_v43  ;;  %v2744_v16 = vsel %vm765_vm4, %v2739_v22, %v2743_v41  ;;  %3454 = vmatpush.bf16.msra.mxu1 %v6844_v33  ;;  %v2790_v3 = vrot.slane %v8706_v40, 3  ;;  %v2797_v33 = vrot.slane %v8649_v21, 3  ;;  %v6985_v40 = vld [vmem:[%s9829_s8] ss:$0 sm:$0xff] }
 0x52b   : > { %6956 = vmatpush.bf16.msrb.mxu2 %v6842_v61  ;;  %3502 = vmatpush.bf16.msrb.mxu3 %v6858_v37  ;;  %v2776_v39 = vsel %vm9975_vm14, %v2774_v56, %v2775_v12  ;;  %v2785_v41 = vrot.slane %v8655_v52, 2  ;;  %vm9979_vm14 = vsmask.f32 4352 }
 0x52c   : > { %v2770_v32 = vsel %vm890_vm3, %v2765_v26, %v2769_v42  ;;  %v2789_v26 = vrot.slane %v8709_v6, 2 }
 0x52d   : > { %3352 = vmatmul.bf16.gmra.mxu1 %v8702_v23  ;;  %3479 = vmatpush.bf16.msra.mxu0 %v6850_v17  ;;  %v2807_v17 = vrot.slane %v8655_v52, 3 }
 0x52e   : > { %3455 = vmatpush.bf16.msra.mxu1 %v6843_v4  ;;  %v2786_v4 = vrot.slane %v8660_v59, 3 }
 0x52f   : > { %v2809_v42 = vor.u32 %v2808_v19, %v2807_v17 }
 0x530   : > { %3393 = vmatmul.bf16.gmra.mxu0 %v2756_v53  ;;  %v2805_v53 = vrot.slane %v8596_v30, 4  ;;  %v2787_v22 = vor.u32 %v2786_v4, %v2785_v41 }
 0x532   : > { %3370 = vmatmul.bf16.gmra.mxu2 %v2744_v16  ;;  %3456 = vmatpush.bf16.msra.mxu1 %v6842_v61  ;;  %v2791_v61 = vor.u32 %v2790_v3, %v2789_v26  ;;  %v2806_v52 = vor.u32 %v2805_v53, %v2804_v47  ;;  %v2799_v16 = vrot.slane %v8702_v23, 3  ;;  %v2788_v56 = vsel %vm9978_vm7, %v8616_v25, %v2787_v22 }
 0x534   : > { %3416 = vmatmul.bf16.gmra.mxu3 %v2770_v32  ;;  %v2792_v37 = vsel %vm9978_vm7, %v2787_v22, %v2791_v61  ;;  %v2810_v59 = vsel %vm9979_vm14, %v2806_v52, %v2809_v42  ;;  %vm9983_vm7 = vcmp.gt.f32.partialorder %v8220_v54, %v8218_v18 }
 0x53d   : > { %3434 = vmatmul.bf16.vlgmr.msrb.gmra.mxu1 %v2776_v39 }
 0x540   : > { %3398 = vmatmul.bf16.gmra.mxu0 %v2755_v38  ;;  %v2778_v38 = vsel %vm9976_vm2, %v2775_v12, %v2777_v48  ;;  %vm9980_vm2 = vmmov %vm9977_vm6 }
 0x541   : > { %v2800_v30 = vsel %vm9980_vm2, %v2797_v33, %v2799_v16  ;;  %vm3574_vm2 = vcmask 269312  }
 0x542   : > { %3375 = vmatmul.bf16.gmra.mxu2 %v8709_v6 }
 0x544   : > { %3421 = vmatmul.bf16.gmra.mxu3 %v2767_v43  ;;  %v2796_v43 = vrot.slane %v8593_v13, 3  ;;  %v2811_v13 = vrot.slane %v8709_v6, 3 }
 0x546   : > { %v2798_v21 = vsel %vm9977_vm6, %v2796_v43, %v2797_v33  ;;  %v2813_v32 = vor.u32 %v2812_v36, %v2811_v13  ;;  %vm9981_vm6 = vmmov %vm9979_vm14  ;;  %vm3584_vm14 = vcmask 1040384  }
 0x548   : > { %v2814_v12 = vsel %vm9981_vm6, %v2809_v42, %v2813_v32  ;;  %vm9982_vm6 = vcmp.gt.f32.partialorder %v8210_v57, %v8208_v60 }
 0x54d   : > { %3439 = vmatmul.bf16.gmra.mxu1 %v2778_v38 }
 0x550   : > { %3480 = vmatmul.bf16.vlgmr.msra.gmra.mxu0 %v2798_v21 }
 0x552   : > { %3462 = vmatmul.bf16.vlgmr.msrb.gmra.mxu2 %v2792_v37 }
 0x554   : > { %3503 = vmatmul.bf16.vlgmr.msrb.gmra.mxu3 %v2810_v59 }
 0x55d   : > { %3444 = vmatmul.bf16.gmra.mxu1 %v2777_v48 }
 0x560   : > { %3485 = vmatmul.bf16.gmra.mxu0 %v2800_v30 }
 0x562   : > { %3467 = vmatmul.bf16.gmra.mxu2 %v2789_v26 }
 0x564   : > { %3508 = vmatmul.bf16.gmra.mxu3 %v2814_v12 }
 0x56d   : > { %3457 = vmatmul.bf16.vlgmr.msra.gmra.mxu1 %v2788_v56 }
 0x570   : > { %3490 = vmatmul.bf16.gmra.mxu0 %v2799_v16 }
 0x574   : > { %3513 = vmatmul.bf16.gmra.mxu3 %v2811_v13 }
 0x58a   : > { %v3343_v23 = vpop.f32.mrf.mxu1 }
 0x58b   : > { %v3344_v33 = vadd.f32 %v6985_v40, %v3343_v23 }
 0x592   : > { %v3345_v39 = vpop.f32.mrf.mxu1 }
 0x593   : > { %v3346_v7 = vadd.f32 %v6985_v40, %v3345_v39 }
 0x59a   : > { %v3348_v6 = vpop.f32.mrf.mxu1 }
 0x59b   : > { %v3349_v21 = vadd.f32 %v6985_v40, %v3348_v6 }
 0x59d   : > { %v3389_v3 = vpop.f32.mrf.mxu0 }
 0x5a2   : > { %v3350_v48 = vpop.f32.mrf.mxu1 }
 0x5a5   : > { %v3366_v26 = vpop.f32.mrf.mxu2  ;;  %v3391_v41 = vpop.f32.mrf.mxu0 }
 0x5a6   : > { %v3367_v4 = vadd.f32 %v3366_v26, %v3344_v33 }
 0x5a7   : > { %v3412_v17 = vpop.f32.mrf.mxu3 }
 0x5a8   : > { %v3390_v19 = vadd.f32 %v3389_v3, %v3367_v4 }
 0x5aa   : > { %v3413_v38 = vadd.f32 %v3412_v17, %v3390_v19  ;;  %v3353_v25 = vpop.f32.mrf.mxu1 }
 0x5ab   : > { %v3354_v0 = vadd.f32 %v6985_v40, %v3353_v25 }
 0x5ad   : > { %v3368_v43 = vpop.f32.mrf.mxu2  ;;  %v3394_v61 = vpop.f32.mrf.mxu0 }
 0x5ae   : > { %v3369_v1 = vadd.f32 %v3368_v43, %v3346_v7 }
 0x5af   : > { %v3414_v47 = vpop.f32.mrf.mxu3 }
 0x5b0   : > { %v3392_v58 = vadd.f32 %v3391_v41, %v3369_v1 }
 0x5b2   : > { %v3355_v53 = vpop.f32.mrf.mxu1  ;;  %v3415_v46 = vadd.f32 %v3414_v47, %v3392_v58 }
 0x5b5   : > { %v3371_v22 = vpop.f32.mrf.mxu2  ;;  %v3396_v42 = vpop.f32.mrf.mxu0 }
 0x5b6   : > { %v3372_v37 = vadd.f32 %v3371_v22, %v3349_v21 }
 0x5b7   : > { %v3417_v52 = vpop.f32.mrf.mxu3 }
 0x5b8   : > { %v3395_v59 = vadd.f32 %v3394_v61, %v3372_v37 }
 0x5ba   : > { %v3435_v16 = vpop.f32.mrf.mxu1  ;;  %v3418_v35 = vadd.f32 %v3417_v52, %v3395_v59  ;;  %v3533_v52 = vld [vmem:[%s9831_s10 + $0x10] sm:$0xff] }
 0x5bb   : > { %v3436_v13 = vadd.f32 %v3435_v16, %v3413_v38  ;;  %v7007_v38 = vmov 0  }
 0x5bc   : > { %6980 = vset.pattern.permute.xlu1 %v7007_v38  ;;  %6981 = vset.pattern.permute.xlu2 %v7007_v38  ;;  %v3586_v41 = vsel %vm3584_vm14, 65535, %v7007_v38 }
 0x5bd   : > { %v3373_v36 = vpop.f32.mrf.mxu2  ;;  %v3399_v30 = vpop.f32.mrf.mxu0  ;;  %6979 = vset.pattern.permute.xlu0 %v7007_v38 }
 0x5bf   : > { %v3419_v32 = vpop.f32.mrf.mxu3 }
 0x5c2   : > { %v3437_v12 = vpop.f32.mrf.mxu1 }
 0x5c3   : > { %v3438_v25 = vadd.f32 %v3437_v12, %v3415_v46  ;;  %v6866_v12 = vld [vmem:[%s9830_s9] sm:$0xff] }
 0x5c5   : > { %v3376_v56 = vpop.f32.mrf.mxu2  ;;  %v3401_v23 = vpop.f32.mrf.mxu0 }
 0x5c6   : > { %v3377_v27 = vadd.f32 %v3376_v56, %v3354_v0  ;;  %v3531_v56 = vld [vmem:[%s9831_s10] sm:$0xff] }
 0x5c7   : > { %v3422_v3 = vpop.f32.mrf.mxu3 }
 0x5c8   : > { %v3400_v15 = vadd.f32 %v3399_v30, %v3377_v27 }
 0x5ca   : > { %v3440_v33 = vpop.f32.mrf.mxu1  ;;  %v3423_v14 = vadd.f32 %v3422_v3, %v3400_v15  ;;  %v6867_v3 = vld [vmem:[%s9830_s9 + $0x8] sm:$0xff] }
 0x5cd   : > { %v3378_v26 = vpop.f32.mrf.mxu2  ;;  %v3481_v4 = vpop.f32.mrf.mxu0 }
 0x5cf   : > { %v3424_v17 = vpop.f32.mrf.mxu3 }
 0x5d0   : > { %v3351_v17 = vadd.f32 %v6985_v40, %v3350_v48  ;;  %v3441_v40 = vadd.f32 %v3440_v33, %v3418_v35  ;;  %v3535_v35 = vld [vmem:[%s9831_s10 + $0x20] sm:$0x3]  ;;  %v3527_v33 = vld [vmem:[%s9830_s9 + $0x10] sm:$0x1] }
 0x5d1   : > { %3558 = vperm.xlu1 %6980, %v3535_v35  }
 0x5d2   : > { %v3442_v19 = vpop.f32.mrf.mxu1  ;;  %v3374_v11 = vadd.f32 %v3373_v36, %v3351_v17 }
 0x5d4   : > { %v3397_v10 = vadd.f32 %v3396_v42, %v3374_v11 }
 0x5d5   : > { %v3463_v6 = vpop.f32.mrf.mxu2  ;;  %v3483_v53 = vpop.f32.mrf.mxu0 }
 0x5d6   : > { %v3420_v24 = vadd.f32 %v3419_v32, %v3397_v10  ;;  %v3464_v27 = vadd.f32 %v3463_v6, %v3441_v40 }
 0x5d7   : > { %v8773_v31 = vpop.f32.mrf.mxu3 }
 0x5d8   : > { %v3443_v49 = vadd.f32 %v3442_v19, %v3420_v24 }
 0x5d9   : > { %3548 = vperm.xlu1 %6980, %v3533_v52  }
 0x5da   : > { %v3445_v21 = vpop.f32.mrf.mxu1 }
 0x5dd   : > { %v3465_v61 = vpop.f32.mrf.mxu2  ;;  %v3486_v22 = vpop.f32.mrf.mxu0 }
 0x5de   : > { %v3466_v7 = vadd.f32 %v3465_v61, %v3443_v49  ;;  %v3487_v15 = vadd.f32 %v3486_v22, %v3464_v27 }
 0x5df   : > { %v3506_v37 = vpop.f32.mrf.mxu3 }
 0x5e2   : > { %v3447_v16 = vpop.f32.mrf.mxu1 }
 0x5e3   : > { %v3446_v16 = vadd.f32 %v3445_v21, %v3423_v14 }
 0x5e5   : > { %v3468_v23 = vpop.f32.mrf.mxu2  ;;  %v3488_v28 = vpop.f32.mrf.mxu0 }
 0x5e6   : > { %v3469_v39 = vadd.f32 %v3468_v23, %v3446_v16  ;;  %v3489_v36 = vadd.f32 %v3488_v28, %v3466_v7 }
 0x5e7   : > { %v3509_v26 = vpop.f32.mrf.mxu3 }
 0x5e8   : > { %v3510_v46 = vadd.f32 %v3509_v26, %v3487_v15 }
 0x5ea   : > { %v3458_v20 = vpop.f32.mrf.mxu1  ;;  %v3520_v47 = vmax.f32 %v3510_v46, 0.0  ;;  %v6871_v46 = vld [vmem:[%s9839_s18 + $0x18] sm:$0xff] }
 0x5eb   : > { %v3459_v1 = vadd.f32 %v3458_v20, %v3436_v13 }
 0x5ed   : > { %v3470_v9 = vpop.f32.mrf.mxu2  ;;  %v3491_v29 = vpop.f32.mrf.mxu0  ;;  %v3482_v24 = vadd.f32 %v3481_v4, %v3459_v1  ;;  %v3570_v4 = vunpack.c.l.b16 %v3527_v33 }
 0x5ee   : > { %v3492_v48 = vadd.f32 %v3491_v29, %v3469_v39 }
 0x5ef   : > { %v3511_v5 = vpop.f32.mrf.mxu3  ;;  %v3505_v42 = vadd.f32 %v8773_v31, %v3482_v24  ;;  %v3534_v31 = vld [vmem:[%s9831_s10 + $0x18] sm:$0xff]  ;;  %v3573_v19 = vpack.c.b16 %v3570_v4, %v3570_v4  ;;  %v3674_v24 = vunpack.c.l.b16 %v3651_v55 }
 0x5f0   : > { %v3512_v58 = vadd.f32 %v3511_v5, %v3489_v36  ;;  %3553 = vperm.xlu0 %6979, %v3534_v31  }
 0x5f1   : > { %v3518_v30 = vmax.f32 %v3505_v42, 0.0 }
 0x5f2   : > { %v3460_v34 = vpop.f32.mrf.mxu1  ;;  %v3521_v20 = vmax.f32 %v3512_v58, 0.0 }
 0x5f3   : > { %v3461_v43 = vadd.f32 %v3460_v34, %v3438_v25  ;;  %v3532_v34 = vld [vmem:[%s9831_s10 + $0x8] sm:$0xff] }
 0x5f4   : > { %3543 = vperm.xlu2 %6981, %v3532_v34   ;;  %v3529_v59 = vpack.c.bf16 %v3521_v20, %v3520_v47 }
 0x5f5   : > { %v3493_v0 = vpop.f32.mrf.mxu0  ;;  %v3484_v10 = vadd.f32 %v3483_v53, %v3461_v43 }
 0x5f7   : > { %v3514_v9 = vpop.f32.mrf.mxu3  ;;  %v3507_v28 = vadd.f32 %v3506_v37, %v3484_v10 }
 0x5f8   : > { %v3515_v11 = vadd.f32 %v3514_v9, %v3492_v48 }
 0x5f9   : > { %v3519_v13 = vmax.f32 %v3507_v28, 0.0 }
 0x5fa   : > { %v3522_v14 = vmax.f32 %v3515_v11, 0.0 }
 0x5fb   : > { %v3528_v32 = vpack.c.bf16 %v3519_v13, %v3518_v30 }
 0x5fc   : > { %v3530_v29 = vpack.c.bf16 %v3522_v14, %v3522_v14  ;;  %3538 = vperm.xlu2 %6981, %v3531_v56  }
 0x5fe   : > { %v3588_v5 = vand.u32 %v3586_v41, %v3530_v29  ;;  %v3679_v29 = vpack.c.b16 %v3674_v24, %v3674_v24 }
 0x5ff   : > { %v3516_v49 = vpop.f32.mrf.mxu3 }
 0x600   : > { %3595 = vmatpush.bf16.msrb.mxu1 %v3588_v5 }
 0x604   : > { %3596 = vmatpush.bf16.msrb.mxu1 %v3529_v59 }
 0x608   : > { %3597 = vmatpush.bf16.msrb.mxu1 %v3528_v32 }
 0x60b   : > { %6398 = vmatmul.msk.bf16.vlgmr.msrb.gmra.mxu1 %vm3574_vm2, %v6866_v12 }
 0x61b   : > { %6399 = vmatmul.msk.bf16.gmra.mxu1 %vm3574_vm2, %v6867_v3 }
 0x62b   : > { %6400 = vmatmul.msk.bf16.gmra.mxu1 %vm3574_vm2, %v3573_v19  ;;  %vm9984_vm2 = vcmp.gt.f32.partialorder %v8244_v44, %v8242_v8 }
 0x643   : > { %v3559_v61 = vpop.permute.xlu1 %3558 }
 0x64b   : > { %v3549_v25 = vpop.permute.xlu1 %3548 }
 0x64e   : > { %v3544_v6 = vpop.permute.xlu2 %3543 }
 0x656   : > { %v3539_v21 = vpop.permute.xlu2 %3538 }
 0x662   : > { %v3554_v43 = vpop.permute.xlu0 %3553 }
 0x688   : > { %v3599_v53 = vpop.f32.mrf.mxu1 }
 0x689   : > { %v3600_v22 = vadd.f32 %v3599_v53, %v3539_v21 }
 0x68b   : > { %v3618_v37 = vsel %vm9982_vm6, 0.0, %v3600_v22  ;;  %vm9985_vm6 = vcmp.gt.f32.partialorder %v8258_v62, %v8256_v50 }
 0x68c   : > { %v3628_v17 = vrot.slane %v3618_v37, 6 }
 0x690   : > { %v3601_v38 = vpop.f32.mrf.mxu1 }
 0x691   : > { %v3602_v23 = vadd.f32 %v3601_v38, %v3544_v6 }
 0x693   : > { %v3619_v26 = vsel %vm9983_vm7, 0.0, %v3602_v23  ;;  %vm9986_vm7 = vcmp.gt.f32.partialorder %v8282_v45, %v8280_v2  ;;  %v6421_v34 = vpack.c.bf16 %v3602_v23, %v3600_v22  ;;  %v6868_v2 = vld [vmem:[%s9839_s18] sm:$0xff]  ;;  %v6869_v45 = vld [vmem:[%s9839_s18 + $0x8] sm:$0xff] }
 0x694   : > { %v3629_v16 = vrot.slane %v3619_v26, 6 }
 0x696   : > { %v3630_v39 = vsel %vm743_vm0, %v3628_v17, %v3629_v16 }
 0x698   : > { %v3604_v40 = vpop.f32.mrf.mxu1 }
 0x699   : > { %v3605_v0 = vadd.f32 %v3604_v40, %v3549_v25 }
 0x69b   : > { %v3620_v7 = vsel %vm9984_vm2, 0.0, %v3605_v0  ;;  %vm9987_vm2 = vmmov %vm9986_vm7 }
 0x69c   : > { %v3631_v48 = vrot.slane %v3620_v7, 6 }
 0x69e   : > { %v3632_v60 = vsel %vm743_vm0, %v3629_v16, %v3631_v48 }
 0x6a0   : > { %v3606_v57 = vpop.f32.mrf.mxu1 }
 0x6a1   : > { %v3607_v27 = vadd.f32 %v3606_v57, %v3554_v43 }
 0x6a3   : > { %v3621_v18 = vsel %vm9985_vm6, 0.0, %v3607_v27  ;;  %v6418_v35 = vpack.c.bf16 %v3607_v27, %v3605_v0  ;;  %vm3680_vm6 = vcmask 556032  }
 0x6a4   : > { %v3633_v54 = vrot.slane %v3621_v18, 6 }
 0x6a6   : > { %v3634_v9 = vsel %vm743_vm0, %v3631_v48, %v3633_v54 }
 0x6a7   : > { %v3655_v36 = vpack.c.bf16 %v3634_v9, %v3632_v60 }
 0x6a8   : > { %v3609_v1 = vpop.f32.mrf.mxu1 }
 0x6a9   : > { %v3610_v11 = vadd.f32 %v3609_v1, %v3559_v61 }
 0x6ab   : > { %v3617_v8 = vsel %vm9986_vm7, %v3610_v11, 0.0  ;;  %v3622_v44 = vsel %vm9987_vm2, 0.0, %v3610_v11 }
 0x6ac   : > { %v3635_v15 = vrot.slane %v3622_v44, 6  ;;  %v3642_v58 = vsel %vm743_vm0, %v3617_v8, %v3628_v17 }
 0x6ad   : > { %v3654_v10 = vpack.c.bf16 %v3630_v39, %v3642_v58 }
 0x6ae   : > { %v3636_v50 = vsel %vm743_vm0, %v3633_v54, %v3635_v15 }
 0x6af   : > { %v3656_v62 = vpack.c.bf16 %v3636_v50, %v3636_v50 }
 0x6b0   : > { %v3611_v14 = vpop.f32.mrf.mxu1 }
 0x6b1   : > { %v3697_v41 = vsel %vm743_vm0, %v3656_v62, 0  ;;  %vm9989_vm0 = vsmask.f32 4352 }
 0x6b2   : > { %3702 = vmatpush.bf16.msra.mxu2 %v3697_v41  ;;  %vm9993_vm2 = vmmov %vm9989_vm0 }
 0x6b6   : > { %3703 = vmatpush.bf16.msra.mxu2 %v3655_v36 }
 0x6ba   : > { %3704 = vmatpush.bf16.msra.mxu2 %v3654_v10 }
 0x6be   : > { %6419 = vmatpush.bf16.msk.msra.mxu2 %vm8270_vm15, %v6418_v35  ;;  %vm9991_vm15 = vmmov %vm9989_vm0 }
 0x6c2   : > { %6422 = vmatpush.bf16.msk.msra.mxu2 %vm8232_vm5, %v6421_v34  ;;  %vm9990_vm5 = vsmask.f32 5376 }
 0x6c3   : > { %vm9992_vm7 = vmmov %vm9990_vm5 }
 0x6c5   : > { %6423 = vmatmul.msk.bf16.vlgmr.msra.gmra.mxu2 %vm3680_vm6, %v6868_v2 }
 0x6d5   : > { %6424 = vmatmul.msk.bf16.gmra.mxu2 %vm3680_vm6, %v6869_v45 }
 0x6e5   : > { %6425 = vmatmul.msk.bf16.gmra.mxu2 %vm3680_vm6, %v6870_v63 }
 0x6f5   : > { %6426 = vmatmul.msk.bf16.gmra.mxu2 %vm3680_vm6, %v6871_v46 }
 0x705   : > { %6427 = vmatmul.msk.bf16.gmra.mxu2 %vm3680_vm6, %v3679_v29  ;;  %vm9996_vm6 = vmmov %vm9989_vm0 }
 0x748   : > { %v3708_v20 = vpop.f32.mrf.mxu2 }
 0x749   : > { %v3732_v28 = vpack.c.bf16 %v3708_v20, %v3708_v20 }
 0x74b   : > { %v3750_v47 = vunpack.c.l.b16 %v3732_v28 }
 0x750   : > { %v3710_v5 = vpop.f32.mrf.mxu2 }
 0x751   : > { %v3733_v49 = vpack.c.bf16 %v3710_v5, %v3710_v5 }
 0x753   : > { %v3751_v42 = vunpack.c.l.b16 %v3733_v49 }
 0x755   : > { %v3759_v52 = vpack.c.b16 %v3751_v42, %v3750_v47 }
 0x757   : > { %v3765_v59 = vshrl.u32 %v3759_v52, 16  ;;  %v3768_v13 = vshll.u32 %v3759_v52, 16 }
 0x758   : > { %v3713_v30 = vpop.f32.mrf.mxu2 }
 0x759   : > { %v3767_v32 = vrot.slane %v3765_v59, 6  ;;  %v3770_v12 = vrot.slane %v3768_v13, 7  ;;  %v3734_v31 = vpack.c.bf16 %v3713_v30, %v3713_v30 }
 0x75b   : > { %v3771_v56 = vor.u32 %v3770_v12, %v3767_v32  ;;  %v3752_v4 = vunpack.c.l.b16 %v3734_v31 }
 0x75d   : > { %v8846_v6 = vsel %vm8584_vm1, 0, %v3771_v56 }
 0x75e   : > { %v3815_v22 = vshll.u32 %v8846_v6, 16  ;;  %v3813_v26 = vshrl.u32 %v8846_v6, 16 }
 0x760   : > { %v3715_v3 = vpop.f32.mrf.mxu2  ;;  %v3817_v16 = vrot.slane %v3815_v22, 1  ;;  %v3947_v0 = vrot.slane %v3813_v26, 3  ;;  %v3948_v7 = vrot.slane %v3815_v22, 4  ;;  %v3871_v60 = vrot.slane %v3813_v26, 1 }
 0x761   : > { %v3735_v33 = vpack.c.bf16 %v3715_v3, %v3715_v3  ;;  %v3872_v57 = vrot.slane %v3815_v22, 2  ;;  %v3909_v46 = vrot.slane %v3813_v26, 2  ;;  %v3910_v55 = vrot.slane %v3815_v22, 3 }
 0x762   : > { %v3818_v43 = vor.u32 %v3817_v16, %v3813_v26  ;;  %v3949_v44 = vor.u32 %v3948_v7, %v3947_v0 }
 0x763   : > { %v3753_v19 = vunpack.c.l.b16 %v3735_v33  ;;  %v3873_v50 = vor.u32 %v3872_v57, %v3871_v60  ;;  %v3911_v49 = vor.u32 %v3910_v55, %v3909_v46  ;;  %v6887_v46 = vld [vmem:[%s9832_s11 + $0x78] sm:$0xff] }
 0x764   : > { %4344 = vmatpush.bf16.msra.mxu3 %v6887_v46 }
 0x765   : > { %v3760_v53 = vpack.c.b16 %v3753_v19, %v3752_v4 }
 0x767   : > { %v3773_v21 = vshrl.u32 %v3760_v53, 16  ;;  %v3776_v61 = vshll.u32 %v3760_v53, 16 }
 0x768   : > { %v3718_v38 = vpop.f32.mrf.mxu2 }
 0x769   : > { %v3775_v37 = vrot.slane %v3773_v21, 6  ;;  %v3778_v23 = vrot.slane %v3776_v61, 7  ;;  %v3736_v48 = vpack.c.bf16 %v3718_v38, %v3718_v38 }
 0x76b   : > { %v3779_v17 = vor.u32 %v3778_v23, %v3775_v37  ;;  %v3754_v58 = vunpack.c.l.b16 %v3736_v48 }
 0x76d   : > { %v8851_v25 = vsel %vm2692_vm12, %v3771_v56, %v3779_v17 }
 0x76e   : > { %v3820_v39 = vshll.u32 %v8851_v25, 16  ;;  %v3824_v40 = vshrl.u32 %v8851_v25, 16 }
 0x770   : > { %v3720_v27 = vpop.f32.mrf.mxu2  ;;  %v3822_v18 = vrot.slane %v3820_v39, 1  ;;  %v3950_v54 = vrot.slane %v3824_v40, 3  ;;  %v3951_v9 = vrot.slane %v3820_v39, 4  ;;  %v3874_v36 = vrot.slane %v3824_v40, 1 }
 0x771   : > { %v3737_v1 = vpack.c.bf16 %v3720_v27, %v3720_v27  ;;  %v3875_v11 = vrot.slane %v3820_v39, 2  ;;  %v3912_v34 = vrot.slane %v3824_v40, 2  ;;  %v3913_v2 = vrot.slane %v3820_v39, 3 }
 0x772   : > { %v3823_v8 = vsel %vm765_vm4, %v3818_v43, %v3822_v18  ;;  %v3952_v15 = vor.u32 %v3951_v9, %v3950_v54  ;;  %v3826_v30 = vor.u32 %v3824_v40, %v3822_v18 }
 0x773   : > { %v3755_v10 = vunpack.c.l.b16 %v3737_v1  ;;  %3850 = vrot.lane.b32.xlu1 %v3823_v8, %s9988_s4  ;;  %v3876_v62 = vor.u32 %v3875_v11, %v3874_v36  ;;  %v3914_v28 = vor.u32 %v3913_v2, %v3912_v34  ;;  %v6902_v34 = vld [vmem:[%s9832_s11 + $0xf0] sm:$0xff]  ;;  %v6879_v2 = vld [vmem:[%s9832_s11 + $0x38] sm:$0xff] }
 0x774   : > { %v3953_v14 = vsel %vm9989_vm0, %v3949_v44, %v3952_v15  ;;  %v6903_v44 = vld [vmem:[%s9832_s11 + $0xf8] sm:$0xff]  ;;  %4311 = vmatpush.bf16.msrb.mxu0 %v6879_v2  ;;  %vm9997_vm0 = vmmov %vm9990_vm5  ;;  %v3939_v2 = vrot.slane %v8851_v25, 3 }
 0x775   : > { %v3761_v41 = vpack.c.b16 %v3755_v10, %v3754_v58  ;;  %3966 = vrot.lane.b32.xlu2 %v3953_v14, %s9988_s4  ;;  %v3877_v35 = vsel %vm890_vm3, %v3873_v50, %v3876_v62  ;;  %v3915_v42 = vsel %vm9990_vm5, %v3911_v49, %v3914_v28  ;;  %4410 = vmatpush.bf16.msrb.mxu2 %v6903_v44  ;;  %v6874_v44 = vld [vmem:[%s9832_s11 + $0x10] sm:$0xff] }
 0x776   : > { %3890 = vrot.lane.b32.xlu0 %v3877_v35, %s9988_s4 }
 0x777   : > { %v3782_v45 = vshrl.u32 %v3761_v41, 16  ;;  %v3785_v63 = vshll.u32 %v3761_v41, 16 }
 0x778   : > { %v3723_v24 = vpop.f32.mrf.mxu2 }
 0x779   : > { %v3784_v29 = vrot.slane %v3782_v45, 6  ;;  %v3787_v20 = vrot.slane %v3785_v63, 7  ;;  %v3738_v13 = vpack.c.bf16 %v3723_v24, %v3723_v24  ;;  %4411 = vmatpush.bf16.msrb.mxu2 %v6902_v34  ;;  %v6889_v34 = vld [vmem:[%s9832_s11 + $0x88] sm:$0xff] }
 0x77b   : > { %v3788_v5 = vor.u32 %v3787_v20, %v3784_v29  ;;  %v3756_v21 = vunpack.c.l.b16 %v3738_v13  ;;  %v6878_v29 = vld [vmem:[%s9832_s11 + $0x30] sm:$0xff]  ;;  %v3900_v13 = vrot.slane %v8846_v6, 2 }
 0x77c   : > { %4312 = vmatpush.bf16.msrb.mxu0 %v6878_v29  ;;  %v3863_v29 = vrot.slane %v8851_v25, 1 }
 0x77d   : > { %v8862_v47 = vsel %vm2692_vm12, %v3779_v17, %v3788_v5 }
 0x77e   : > { %3928 = vrot.lane.b32.xlu0 %v3915_v42, %s9988_s4  ;;  %v3828_v52 = vshll.u32 %v8862_v47, 16  ;;  %v3832_v59 = vshrl.u32 %v8862_v47, 16 }
 0x780   : > { %v3725_v32 = vpop.f32.mrf.mxu2  ;;  %v3830_v12 = vrot.slane %v3828_v52, 1  ;;  %v3954_v31 = vrot.slane %v3832_v59, 3  ;;  %v3955_v56 = vrot.slane %v3828_v52, 4  ;;  %v3878_v3 = vrot.slane %v3832_v59, 1 }
 0x781   : > { %v3739_v33 = vpack.c.bf16 %v3725_v32, %v3725_v32  ;;  %v3879_v4 = vrot.slane %v3828_v52, 2  ;;  %v3916_v26 = vrot.slane %v3832_v59, 2  ;;  %v3917_v17 = vrot.slane %v3828_v52, 3 }
 0x782   : > { %v3831_v19 = vsel %vm765_vm4, %v3826_v30, %v3830_v12  ;;  %v3956_v53 = vor.u32 %v3955_v56, %v3954_v31  ;;  %v3834_v8 = vor.u32 %v3832_v59, %v3830_v12  ;;  %v6901_v59 = vld [vmem:[%s9832_s11 + $0xe8] sm:$0xff] }
 0x783   : > { %v3757_v61 = vunpack.c.l.b16 %v3739_v33  ;;  %3852 = vrot.lane.b32.xlu2 %v3831_v19, %s9988_s4  ;;  %v3880_v22 = vor.u32 %v3879_v4, %v3878_v3  ;;  %v3918_v43 = vor.u32 %v3917_v17, %v3916_v26  ;;  %4412 = vmatpush.bf16.msrb.mxu2 %v6901_v59  ;;  %v6900_v19 = vld [vmem:[%s9832_s11 + $0xe0] sm:$0xff]  ;;  %v3901_v59 = vrot.slane %v8851_v25, 2 }
 0x784   : > { %v3957_v38 = vsel %vm9991_vm15, %v3952_v15, %v3956_v53  ;;  %vm9999_vm15 = vcmask 523264  }
 0x785   : > { %v3762_v37 = vpack.c.b16 %v3757_v61, %v3756_v21  ;;  %v3881_v23 = vsel %vm890_vm3, %v3876_v62, %v3880_v22  ;;  %v3919_v54 = vsel %vm9992_vm7, %v3914_v28, %v3918_v43  ;;  %v6886_v28 = vld [vmem:[%s9832_s11 + $0x70] sm:$0xff]  ;;  %vm10000_vm7 = vmmov %vm9999_vm15 }
 0x786   : > { %3968 = vrot.lane.b32.xlu0 %v3957_v38, %s9988_s4  ;;  %3892 = vrot.lane.b32.xlu1 %v3881_v23, %s9988_s4  ;;  %v6899_v23 = vld [vmem:[%s9832_s11 + $0xd8] sm:$0xff] }
 0x787   : > { %v3791_v16 = vshrl.u32 %v3762_v37, 16  ;;  %v3794_v39 = vshll.u32 %v3762_v37, 16  ;;  %4345 = vmatpush.bf16.msra.mxu3 %v6886_v28  ;;  %4413 = vmatpush.bf16.msrb.mxu2 %v6900_v19 }
 0x788   : > { %v3728_v40 = vpop.f32.mrf.mxu2 }
 0x789   : > { %v3793_v0 = vrot.slane %v3791_v16, 6  ;;  %v3796_v7 = vrot.slane %v3794_v39, 7  ;;  %v3740_v48 = vpack.c.bf16 %v3728_v40, %v3728_v40  ;;  %v6898_v39 = vld [vmem:[%s9832_s11 + $0xd0] sm:$0xff] }
 0x78b   : > { %v3797_v60 = vor.u32 %v3796_v7, %v3793_v0  ;;  %v3758_v57 = vunpack.c.l.b16 %v3740_v48  ;;  %4414 = vmatpush.bf16.msrb.mxu2 %v6899_v23  ;;  %v6897_v7 = vld [vmem:[%s9832_s11 + $0xc8] sm:$0xff] }
 0x78d   : > { %v8875_v27 = vsel %vm2692_vm12, %v3788_v5, %v3797_v60  ;;  %v3763_v18 = vpack.c.b16 %v3758_v57, %v3758_v57  ;;  %v6885_v57 = vld [vmem:[%s9832_s11 + $0x68] sm:$0xff] }
 0x78e   : > { %3930 = vrot.lane.b32.xlu1 %v3919_v54, %s9988_s4  ;;  %v3836_v9 = vshll.u32 %v8875_v27, 16  ;;  %v3840_v36 = vshrl.u32 %v8875_v27, 16  ;;  %v6876_v54 = vld [vmem:[%s9832_s11 + $0x20] sm:$0xff]  ;;  %4346 = vmatpush.bf16.msra.mxu3 %v6885_v57 }
 0x78f   : > { %v3800_v1 = vshrl.u32 %v3763_v18, 16  ;;  %v3803_v11 = vshll.u32 %v3763_v18, 16  ;;  %4415 = vmatpush.bf16.msrb.mxu2 %v6898_v39  ;;  %v6895_v18 = vld [vmem:[%s9832_s11 + $0xb8] sm:$0xff] }
 0x790   : > { %v3730_v15 = vpop.f32.mrf.mxu2  ;;  %v3838_v58 = vrot.slane %v3836_v9, 1  ;;  %v3958_v10 = vrot.slane %v3840_v36, 3  ;;  %v3959_v50 = vrot.slane %v3836_v9, 4  ;;  %v3882_v62 = vrot.slane %v3840_v36, 1  ;;  %4377 = vmatpush.bf16.msra.mxu1 %v6895_v18 }
 0x791   : > { %v3802_v14 = vrot.slane %v3800_v1, 6  ;;  %v3805_v41 = vrot.slane %v3803_v11, 7  ;;  %v3883_v35 = vrot.slane %v3836_v9, 2  ;;  %v3920_v42 = vrot.slane %v3840_v36, 2  ;;  %v6875_v1 = vld [vmem:[%s9832_s11 + $0x18] sm:$0xff]  ;;  %v6882_v15 = vld [vmem:[%s9832_s11 + $0x50] sm:$0xff] }
 0x792   : > { %v3839_v45 = vsel %vm765_vm4, %v3834_v8, %v3838_v58  ;;  %v3960_v63 = vor.u32 %v3959_v50, %v3958_v10  ;;  %v3921_v52 = vrot.slane %v3836_v9, 3  ;;  %v3842_v31 = vor.u32 %v3840_v36, %v3838_v58  ;;  %v6884_v9 = vld [vmem:[%s9832_s11 + $0x60] sm:$0xff]  ;;  %v6894_v36 = vld [vmem:[%s9832_s11 + $0xb0] sm:$0xff]  ;;  %v6883_v11 = vld [vmem:[%s9832_s11 + $0x58] sm:$0xff] }
 0x793   : > { %v3806_v55 = vor.u32 %v3805_v41, %v3802_v14  ;;  %3854 = vrot.lane.b32.xlu0 %v3839_v45, %s9988_s4  ;;  %v3884_v24 = vor.u32 %v3883_v35, %v3882_v62  ;;  %4416 = vmatpush.bf16.msrb.mxu2 %v6897_v7  ;;  %v6893_v8 = vld [vmem:[%s9832_s11 + $0xa8] sm:$0xff]  ;;  %v6892_v58 = vld [vmem:[%s9832_s11 + $0xa0] sm:$0xff]  ;;  %v6891_v62 = vld [vmem:[%s9832_s11 + $0x98] sm:$0xff]  ;;  %v3905_v18 = vrot.slane %v8875_v27, 2 }
 0x794   : > { %v3961_v20 = vsel %vm9993_vm2, %v3956_v53, %v3960_v63  ;;  %v3922_v56 = vor.u32 %v3921_v52, %v3920_v42  ;;  %4347 = vmatpush.bf16.msra.mxu3 %v6884_v9  ;;  %4378 = vmatpush.bf16.msra.mxu1 %v6894_v36  ;;  %v6873_v10 = vld [vmem:[%s9832_s11 + $0x8] sm:$0xff]  ;;  %v6872_v14 = vld [vmem:[%s9832_s11] sm:$0xff]  ;;  %v6890_v35 = vld [vmem:[%s9832_s11 + $0x90] sm:$0xff]  ;;  %vm10001_vm2 = vcmask 1046528  }
 0x795   : > { %v3807_v5 = vsel %vm2692_vm12, %v3797_v60, %v3806_v55  ;;  %v3885_v49 = vsel %vm890_vm3, %v3880_v22, %v3884_v24  ;;  %v6877_v60 = vld [vmem:[%s9832_s11 + $0x28] sm:$0xff]  ;;  %v6880_v41 = vld [vmem:[%s9832_s11 + $0x40] sm:$0xff] }
 0x796   : > { %v8909_v30 = vsel %vm8040_vm9, %v3807_v5, 0  ;;  %3970 = vrot.lane.b32.xlu1 %v3961_v20, %s9988_s4  ;;  %3894 = vrot.lane.b32.xlu2 %v3885_v49, %s9988_s4  ;;  %vm9995_vm9 = vmmov %vm9990_vm5  ;;  %v6881_v50 = vld [vmem:[%s9832_s11 + $0x48] sm:$0xff]  ;;  %v6888_v45 = vld [vmem:[%s9832_s11 + $0x80] sm:$0xff]  ;;  %vm9998_vm5 = vcmask 1044480   ;;  %v3862_v5 = vrot.slane %v8846_v6, 1 }
 0x797   : > { %v3844_v32 = vshll.u32 %v8909_v30, 16  ;;  %v3848_v12 = vshrl.u32 %v8909_v30, 16  ;;  %v3923_v61 = vsel %vm9995_vm9, %v3918_v43, %v3922_v56  ;;  %v6896_v43 = vld [vmem:[%s9832_s11 + $0xc0] sm:$0xff]  ;;  %4313 = vmatpush.bf16.msrb.mxu0 %v6877_v60  ;;  %vm10002_vm9 = vmmov %vm10000_vm7 }
 0x798   : > { %4417 = vmatpush.bf16.msrb.mxu2 %v6896_v43  ;;  %4348 = vmatpush.bf16.msra.mxu3 %v6883_v11  ;;  %v3864_v49 = vsel %vm10001_vm2, %v3862_v5, %v3863_v29  ;;  %v3945_v11 = vrot.slane %v8909_v30, 3 }
 0x799   : > { %v3846_v3 = vrot.slane %v3844_v32, 1  ;;  %v3886_v33 = vrot.slane %v3848_v12, 1  ;;  %v3887_v4 = vrot.slane %v3844_v32, 2  ;;  %v3962_v38 = vrot.slane %v3848_v12, 3  ;;  %4379 = vmatpush.bf16.msra.mxu1 %v6893_v8 }
 0x79a   : > { %v3963_v37 = vrot.slane %v3844_v32, 4  ;;  %v3924_v26 = vrot.slane %v3848_v12, 2  ;;  %v3925_v17 = vrot.slane %v3844_v32, 3 }
 0x79b   : > { %v3847_v53 = vsel %vm765_vm4, %v3842_v31, %v3846_v3  ;;  %v3888_v21 = vor.u32 %v3887_v4, %v3886_v33  ;;  %4314 = vmatpush.bf16.msrb.mxu0 %v6876_v54  ;;  %v3865_v3 = vrot.slane %v8862_v47, 1 }
 0x79c   : > { %v3964_v16 = vor.u32 %v3963_v37, %v3962_v38  ;;  %v3926_v40 = vor.u32 %v3925_v17, %v3924_v26  ;;  %4349 = vmatpush.bf16.msra.mxu3 %v6882_v15  ;;  %v3867_v17 = vrot.slane %v8875_v27, 1 }
 0x79d   : > { %v3889_v22 = vsel %vm890_vm3, %v3884_v24, %v3888_v21  ;;  %4380 = vmatpush.bf16.msra.mxu1 %v6892_v58 }
 0x79e   : > { %3932 = vrot.lane.b32.xlu2 %v3923_v61, %s9988_s4  ;;  %3856 = vrot.lane.b32.xlu1 %v3847_v53, %s9988_s4  ;;  %v3965_v0 = vsel %vm9996_vm6, %v3960_v63, %v3964_v16  ;;  %v3927_v48 = vsel %vm9997_vm0, %v3922_v56, %v3926_v40  ;;  %v3938_v63 = vrot.slane %v8846_v6, 3  ;;  %vm10003_vm6 = vcmask 1045504   ;;  %vm10004_vm0 = vmmov %vm10000_vm7 }
 0x79f   : > { %3896 = vrot.lane.b32.xlu0 %v3889_v22, %s9988_s4  ;;  %4315 = vmatpush.bf16.msrb.mxu0 %v6875_v1  ;;  %v3902_v32 = vsel %vm10003_vm6, %v3900_v13, %v3901_v59  ;;  %v3943_v16 = vrot.slane %v8875_v27, 3  ;;  %v3869_v1 = vrot.slane %v8909_v30, 1 }
 0x7a0   : > { %4350 = vmatpush.bf16.msra.mxu3 %v6881_v50  ;;  %v3940_v46 = vsel %vm9998_vm5, %v3938_v63, %v3939_v2  ;;  %vm10005_vm5 = vmmov %vm10004_vm0 }
 0x7a1   : > { %4381 = vmatpush.bf16.msra.mxu1 %v6891_v62 }
 0x7a3   : > { %4316 = vmatpush.bf16.msrb.mxu0 %v6874_v44 }
 0x7a4   : > { %4351 = vmatpush.bf16.msra.mxu3 %v6880_v41 }
 0x7a5   : > { %4382 = vmatpush.bf16.msra.mxu1 %v6890_v35 }
 0x7a6   : > { %3972 = vrot.lane.b32.xlu2 %v3965_v0, %s9988_s4  ;;  %3898 = vrot.lane.b32.xlu1 %v3886_v33, %s9988_s4  ;;  %v3941_v33 = vrot.slane %v8862_v47, 3 }
 0x7a7   : > { %3934 = vrot.lane.b32.xlu0 %v3927_v48, %s9988_s4  ;;  %4317 = vmatpush.bf16.msrb.mxu0 %v6873_v10 }
 0x7a9   : > { %4383 = vmatpush.bf16.msra.mxu1 %v6889_v34 }
 0x7ab   : > { %4318 = vmatpush.bf16.msrb.mxu0 %v6872_v14  ;;  %v3907_v14 = vrot.slane %v8909_v30, 2 }
 0x7ad   : > { %4384 = vmatpush.bf16.msra.mxu1 %v6888_v45  ;;  %v3908_v41 = vsel %vm10003_vm6, %v3905_v18, %v3907_v14 }
 0x7ae   : > { %3858 = vrot.lane.b32.xlu2 %v3848_v12, %s9988_s4  ;;  %3936 = vrot.lane.b32.xlu1 %v3924_v26, %s9988_s4 }
 0x7af   : > { %3974 = vrot.lane.b32.xlu0 %v3962_v38, %s9988_s4  ;;  %v3903_v38 = vrot.slane %v8862_v47, 2 }
 0x7b1   : > { %v3904_v23 = vsel %vm10003_vm6, %v3901_v59, %v3903_v38  ;;  %v3906_v54 = vsel %vm10003_vm6, %v3903_v38, %v3905_v18 }
 0x7cf   : > { %v3967_v55 = vpop.permute.xlu2 %3966 }
 0x7d0   : > { %v4033_v24 = vsel %vm9999_vm15, %v3940_v46, %v3967_v55  ;;  %vm10006_vm15 = vmmov %vm10001_vm2 }
 0x7d1   : > { %4418 = vmatmul.bf16.vlgmr.msrb.gmra.mxu2 %v4033_v24  ;;  %v3866_v21 = vsel %vm10006_vm15, %v3863_v29, %v3865_v3  ;;  %vm10008_vm2 = vmmov %vm10004_vm0  ;;  %v3868_v7 = vsel %vm10006_vm15, %v3865_v3, %v3867_v17  ;;  %v3870_v15 = vsel %vm10006_vm15, %v3867_v17, %v3869_v1  ;;  %v10024_v17 = vld [vmem:[#allocation7_spill] sm:$0xff] }
 0x7d2   : > { %vm10017_vm15 = vmmov %vm10004_vm0 }
 0x7dd   : > { %v3853_v56 = vpop.permute.xlu2 %3852 }
 0x7de   : > { %v3980_v4 = vsel %vm10005_vm5, %v8851_v25, %v3853_v56  ;;  %vm10010_vm5 = vmmov %vm10004_vm0 }
 0x7e5   : > { %v3851_v20 = vpop.permute.xlu1 %3850 }
 0x7e6   : > { %v3977_v28 = vsel %vm10000_vm7, %v8846_v6, %v3851_v20  ;;  %vm10007_vm7 = vcmask 1044480   ;;  %v9059_v20 = vld [vmem:[%s9833_s12] ss:$0 sm:$0xff] }
 0x7e7   : > { %4319 = vmatmul.bf16.vlgmr.msrb.gmra.mxu0 %v3977_v28  ;;  %v3942_v6 = vsel %vm10007_vm7, %v3939_v2, %v3941_v33  ;;  %v3944_v48 = vsel %vm10007_vm7, %v3941_v33, %v3943_v16  ;;  %v3946_v58 = vsel %vm10007_vm7, %v3943_v16, %v3945_v11  ;;  %vm10018_vm7 = vmmov %vm10004_vm0  ;;  %v10020_v33 = vld [vmem:[#allocation6_spill] sm:$0xff] }
 0x7e8   : > { %v3891_v42 = vpop.permute.xlu0 %3890 }
 0x7e9   : > { %v3993_v52 = vsel %vm10002_vm9, %v3864_v49, %v3891_v42  ;;  %vm10009_vm9 = vmmov %vm10004_vm0 }
 0x7ea   : > { %4352 = vmatmul.bf16.vlgmr.msra.gmra.mxu3 %v3993_v52 }
 0x7f0   : > { %v3929_v12 = vpop.permute.xlu0 %3928  ;;  %v3895_v26 = vpop.permute.xlu2 %3894 }
 0x7f1   : > { %v4013_v31 = vsel %vm10004_vm0, %v3902_v32, %v3929_v12 }
 0x7f2   : > { %4385 = vmatmul.bf16.vlgmr.msra.gmra.mxu1 %v4013_v31 }
 0x7f7   : > { %4324 = vmatmul.bf16.gmra.mxu0 %v3980_v4  ;;  %v10021_v4 = vld [vmem:[#allocation5_spill] sm:$0xff] }
 0x7f8   : > { %v3969_v19 = vpop.permute.xlu0 %3968  ;;  %v3893_v53 = vpop.permute.xlu1 %3892 }
 0x7f9   : > { %v3997_v61 = vsel %vm10008_vm2, %v3866_v21, %v3893_v53  ;;  %v4037_v22 = vsel %vm10009_vm9, %v3942_v6, %v3969_v19  ;;  %vm10011_vm2 = vmmov %vm10004_vm0  ;;  %v3933_v57 = vpop.permute.xlu2 %3932 }
 0x7fa   : > { %4357 = vmatmul.bf16.gmra.mxu3 %v3997_v61  ;;  %4423 = vmatmul.bf16.gmra.mxu2 %v4037_v22  ;;  %v4001_v43 = vsel %vm10011_vm2, %v3868_v7, %v3895_v26  ;;  %vm10012_vm9 = vmmov %vm10004_vm0  ;;  %v4021_v9 = vsel %vm10004_vm0, %v3906_v54, %v3933_v57  ;;  %v10023_v26 = vld [vmem:[#allocation8_spill] sm:$0xff] }
 0x7fb   : > { %vm10014_vm2 = vmmov %vm10004_vm0  ;;  %vm10025_vm6 = vcmp.gt.f32.partialorder %v10023_v26, %v10024_v17  ;;  %v10035_v17 = vld [vmem:[#allocation17_spill] sm:$0xff] }
 0x800   : > { %v3931_v37 = vpop.permute.xlu1 %3930 }
 0x801   : > { %v4017_v25 = vsel %vm10004_vm0, %v3904_v23, %v3931_v37  ;;  %v3973_v8 = vpop.permute.xlu2 %3972 }
 0x802   : > { %4390 = vmatmul.bf16.gmra.mxu1 %v4017_v25 }
 0x805   : > { %v3855_v39 = vpop.permute.xlu0 %3854 }
 0x806   : > { %v3983_v40 = vsel %vm10010_vm5, %v8862_v47, %v3855_v39  ;;  %vm10013_vm5 = vmmov %vm10004_vm0 }
 0x807   : > { %4329 = vmatmul.bf16.gmra.mxu0 %v3983_v40 }
 0x808   : > { %v3971_v0 = vpop.permute.xlu1 %3970 }
 0x809   : > { %v4041_v60 = vsel %vm10012_vm9, %v3944_v48, %v3971_v0  ;;  %vm10015_vm9 = vmmov %vm10004_vm0 }
 0x80a   : > { %4362 = vmatmul.bf16.gmra.mxu3 %v4001_v43  ;;  %4428 = vmatmul.bf16.gmra.mxu2 %v4041_v60  ;;  %v4045_v50 = vsel %vm10015_vm9, %v3946_v58, %v3973_v8  ;;  %vm10022_vm9 = vcmp.gt.f32.partialorder %v10020_v33, %v10021_v4 }
 0x810   : > { %v3857_v36 = vpop.permute.xlu1 %3856 }
 0x811   : > { %v3897_v47 = vpop.permute.xlu0 %3896  ;;  %v3986_v44 = vsel %vm10013_vm5, %v8875_v27, %v3857_v36  ;;  %v3859_v27 = vpop.permute.xlu2 %3858  ;;  %vm10016_vm5 = vmmov %vm10004_vm0  ;;  %v10026_v36 = vld [vmem:[#allocation11_spill] sm:$0xff] }
 0x812   : > { %4395 = vmatmul.bf16.gmra.mxu1 %v4021_v9  ;;  %v4005_v10 = vsel %vm10014_vm2, %v3870_v15, %v3897_v47  ;;  %v3989_v45 = vsel %vm10016_vm5, %v8909_v30, %v3859_v27  ;;  %vm10019_vm2 = vmmov %vm10004_vm0 }
 0x817   : > { %4334 = vmatmul.bf16.gmra.mxu0 %v3986_v44 }
 0x818   : > { %v3899_v34 = vpop.permute.xlu1 %3898 }
 0x819   : > { %v3935_v62 = vpop.permute.xlu0 %3934  ;;  %v4009_v63 = vsel %vm10017_vm15, %v3869_v1, %v3899_v34  ;;  %v10027_v1 = vld [vmem:[#allocation10_spill] sm:$0xff]  ;;  %v10029_v34 = vld [vmem:[#allocation13_spill] sm:$0xff] }
 0x81a   : > { %4367 = vmatmul.bf16.gmra.mxu3 %v4005_v10  ;;  %4433 = vmatmul.bf16.gmra.mxu2 %v4045_v50  ;;  %v4025_v35 = vsel %vm10004_vm0, %v3908_v41, %v3935_v62  ;;  %vm10028_vm0 = vcmp.gt.f32.partialorder %v10026_v36, %v10027_v1 }
 0x820   : > { %v3937_v55 = vpop.permute.xlu1 %3936 }
 0x821   : > { %v3975_v2 = vpop.permute.xlu0 %3974  ;;  %v4029_v24 = vsel %vm10019_vm2, %v3907_v14, %v3937_v55 }
 0x822   : > { %4400 = vmatmul.bf16.gmra.mxu1 %v4025_v35  ;;  %v4049_v46 = vsel %vm10018_vm7, %v3945_v11, %v3975_v2  ;;  %v10030_v2 = vld [vmem:[#allocation12_spill] sm:$0xff] }
 0x823   : > { %vm10031_vm5 = vcmp.gt.f32.partialorder %v10029_v34, %v10030_v2 }
 0x827   : > { %4339 = vmatmul.bf16.gmra.mxu0 %v3989_v45 }
 0x82a   : > { %4372 = vmatmul.bf16.gmra.mxu3 %v4009_v63  ;;  %4438 = vmatmul.bf16.gmra.mxu2 %v4049_v46 }
 0x832   : > { %4405 = vmatmul.bf16.gmra.mxu1 %v4029_v24 }
 0x854   : > { %v4419_v28 = vpop.f32.mrf.mxu2 }
 0x85c   : > { %v4421_v56 = vpop.f32.mrf.mxu2 }
 0x864   : > { %v4320_v29 = vpop.f32.mrf.mxu0 }
 0x865   : > { %v4321_v30 = vadd.f32 %v9059_v20, %v4320_v29 }
 0x86c   : > { %v4322_v5 = vpop.f32.mrf.mxu0 }
 0x86d   : > { %v4353_v49 = vpop.f32.mrf.mxu3  ;;  %v4323_v32 = vadd.f32 %v9059_v20, %v4322_v5 }
 0x86e   : > { %v4354_v42 = vadd.f32 %v4353_v49, %v4321_v30 }
 0x86f   : > { %v4386_v52 = vpop.f32.mrf.mxu1 }
 0x870   : > { %v4387_v59 = vadd.f32 %v4386_v52, %v4354_v42 }
 0x872   : > { %v9062_v13 = vadd.f32 %v4419_v28, %v4387_v59 }
 0x874   : > { %v4443_v12 = vmax.f32 %v9062_v13, 0.0  ;;  %v4325_v31 = vpop.f32.mrf.mxu0  ;;  %v6566_v13 = vld [vmem:[%s9840_s19 + $0x10] sm:$0xf] }
 0x875   : > { %v4355_v3 = vpop.f32.mrf.mxu3  ;;  %v4326_v22 = vadd.f32 %v9059_v20, %v4325_v31  ;;  %v10033_v31 = vld [vmem:[#allocation18_spill] sm:$0xff] }
 0x876   : > { %v9071_v19 = vsel %vm10022_vm9, 0.0, %v4443_v12  ;;  %v4356_v53 = vadd.f32 %v4355_v3, %v4323_v32  ;;  %v10032_v32 = vld [vmem:[#allocation20_spill] sm:$0xff] }
 0x877   : > { %v4388_v21 = vpop.f32.mrf.mxu1  ;;  %v4479_v40 = vrot.slane %v9071_v19, 7  ;;  %vm10034_vm15 = vcmp.gt.f32.partialorder %v10032_v32, %v10033_v31 }
 0x878   : > { %v4389_v6 = vadd.f32 %v4388_v21, %v4356_v53 }
 0x87a   : > { %v9073_v61 = vadd.f32 %v4421_v56, %v4389_v6 }
 0x87c   : > { %v4444_v38 = vmax.f32 %v9073_v61, 0.0  ;;  %v4327_v37 = vpop.f32.mrf.mxu0 }
 0x87d   : > { %v4358_v23 = vpop.f32.mrf.mxu3  ;;  %v4424_v25 = vpop.f32.mrf.mxu2  ;;  %v4328_v57 = vadd.f32 %v9059_v20, %v4327_v37 }
 0x87e   : > { %v4462_v16 = vsel %vm10025_vm6, 0.0, %v4444_v38  ;;  %v4359_v39 = vadd.f32 %v4358_v23, %v4326_v22 }
 0x87f   : > { %v4480_v0 = vrot.slane %v4462_v16, 7  ;;  %v4391_v7 = vpop.f32.mrf.mxu1  ;;  %v10036_v16 = vld [vmem:[#allocation19_spill] sm:$0xff] }
 0x880   : > { %v4392_v48 = vadd.f32 %v4391_v7, %v4359_v39  ;;  %vm10037_vm7 = vcmp.gt.f32.partialorder %v10035_v17, %v10036_v16 }
 0x881   : > { %v9086_v43 = vsel %vm3584_vm14, %v4479_v40, %v4480_v0 }
 0x882   : > { %v9088_v60 = vadd.f32 %v4424_v25, %v4392_v48 }
 0x884   : > { %v4445_v18 = vmax.f32 %v9088_v60, 0.0  ;;  %v4330_v54 = vpop.f32.mrf.mxu0  ;;  %v6630_v60 = vpack.c.bf16 %v4444_v38, %v4443_v12  ;;  %v6907_v12 = vld [vmem:[%s9840_s19 + $0x14] sm:$0xf0] }
 0x885   : > { %v4360_v9 = vpop.f32.mrf.mxu3  ;;  %v4426_v47 = vpop.f32.mrf.mxu2  ;;  %v4331_v62 = vadd.f32 %v9059_v20, %v4330_v54  ;;  %v6567_v38 = vor.u32 %v6907_v12, %v6566_v13 }
 0x886   : > { %v4463_v11 = vsel %vm10028_vm0, 0.0, %v4445_v18  ;;  %v4361_v8 = vadd.f32 %v4360_v9, %v4328_v57 }
 0x887   : > { %v4482_v44 = vrot.slane %v4463_v11, 7  ;;  %v4393_v15 = vpop.f32.mrf.mxu1 }
 0x888   : > { %v4394_v58 = vadd.f32 %v4393_v15, %v4361_v8  ;;  %v10038_v15 = vld [vmem:[#allocation16_spill] sm:$0xff] }
 0x889   : > { %v9098_v10 = vsel %vm3584_vm14, %v4480_v0, %v4482_v44 }
 0x88a   : > { %v9100_v50 = vadd.f32 %v4426_v47, %v4394_v58  ;;  %v10039_v58 = vld [vmem:[#allocation15_spill] sm:$0xff] }
 0x88b   : > { %vm10040_vm2 = vcmp.gt.f32.partialorder %v10038_v15, %v10039_v58  ;;  %v6574_v15 = vld [vmem:[%s9840_s19 + $0x20] sm:$0xf]  ;;  %v6909_v58 = vld [vmem:[%s9840_s19 + $0x24] sm:$0xf0] }
 0x88c   : > { %v4446_v14 = vmax.f32 %v9100_v50, 0.0  ;;  %v4332_v41 = vpop.f32.mrf.mxu0 }
 0x88d   : > { %v4363_v35 = vpop.f32.mrf.mxu3  ;;  %v4429_v27 = vpop.f32.mrf.mxu2  ;;  %v4333_v5 = vadd.f32 %v9059_v20, %v4332_v41 }
 0x88e   : > { %v4464_v45 = vsel %vm10031_vm5, 0.0, %v4446_v14  ;;  %v4364_v63 = vadd.f32 %v4363_v35, %v4331_v62  ;;  %vm4603_vm5 = vcmask 15360  }
 0x88f   : > { %v4484_v46 = vrot.slane %v4464_v45, 7  ;;  %v4396_v55 = vpop.f32.mrf.mxu1 }
 0x890   : > { %v4397_v24 = vadd.f32 %v4396_v55, %v4364_v63 }
 0x891   : > { %v9110_v29 = vsel %vm3584_vm14, %v4482_v44, %v4484_v46 }
 0x892   : > { %v9112_v28 = vadd.f32 %v4429_v27, %v4397_v24  ;;  %v4527_v30 = vpack.c.bf16 %v9110_v29, %v9098_v10  ;;  %v6906_v10 = vld [vmem:[%s9840_s19 + $0x14] sm:$0xf]  ;;  %v6568_v29 = vld [vmem:[%s9840_s19 + $0x18] sm:$0xf0] }
 0x894   : > { %v4447_v49 = vmax.f32 %v9112_v28, 0.0  ;;  %v4335_v42 = vpop.f32.mrf.mxu0  ;;  %v6558_v28 = vld [vmem:[%s9840_s19] sm:$0xf] }
 0x895   : > { %v4365_v52 = vpop.f32.mrf.mxu3  ;;  %v4431_v59 = vpop.f32.mrf.mxu2  ;;  %v4336_v22 = vadd.f32 %v9059_v20, %v4335_v42  ;;  %v10041_v42 = vld [vmem:[#allocation23_spill] sm:$0xff] }
 0x896   : > { %v4465_v56 = vsel %vm10034_vm15, 0.0, %v4447_v49  ;;  %v4366_v3 = vadd.f32 %v4365_v52, %v4333_v5  ;;  %v10042_v52 = vld [vmem:[#allocation22_spill] sm:$0xff] }
 0x897   : > { %v4486_v33 = vrot.slane %v4465_v56, 7  ;;  %v4398_v4 = vpop.f32.mrf.mxu1  ;;  %vm10043_vm9 = vcmp.gt.f32.partialorder %v10041_v42, %v10042_v52 }
 0x898   : > { %v4399_v53 = vadd.f32 %v4398_v4, %v4366_v3 }
 0x899   : > { %v4487_v21 = vsel %vm3584_vm14, %v4484_v46, %v4486_v33 }
 0x89a   : > { %v9124_v6 = vadd.f32 %v4431_v59, %v4399_v53 }
 0x89c   : > { %v4448_v37 = vmax.f32 %v9124_v6, 0.0  ;;  %v4337_v23 = vpop.f32.mrf.mxu0 }
 0x89d   : > { %v4368_v25 = vpop.f32.mrf.mxu3  ;;  %v4434_v26 = vpop.f32.mrf.mxu2  ;;  %v4338_v36 = vadd.f32 %v9059_v20, %v4337_v23  ;;  %v10045_v23 = vld [vmem:[#allocation25_spill] sm:$0xff] }
 0x89e   : > { %v4466_v39 = vsel %vm10037_vm7, 0.0, %v4448_v37  ;;  %v4369_v0 = vadd.f32 %v4368_v25, %v4336_v22  ;;  %v10044_v22 = vld [vmem:[#allocation26_spill] sm:$0xff] }
 0x89f   : > { %v4488_v7 = vrot.slane %v4466_v39, 7  ;;  %v4401_v48 = vpop.f32.mrf.mxu1  ;;  %vm10046_vm6 = vcmp.gt.f32.partialorder %v10044_v22, %v10045_v23  ;;  %v6614_v23 = vld [vmem:[%s9840_s19 + $0x70] sm:$0xf] }
 0x8a0   : > { %v4402_v57 = vadd.f32 %v4401_v48, %v4369_v0  ;;  %vm10047_vm0 = vmmov %vm10046_vm6  ;;  %v6904_v48 = vld [vmem:[%s9840_s19 + $0x4] sm:$0xf] }
 0x8a1   : > { %v4489_v54 = vsel %vm3584_vm14, %v4486_v33, %v4488_v7 }
 0x8a2   : > { %v4435_v9 = vadd.f32 %v4434_v26, %v4402_v57  ;;  %v4528_v47 = vpack.c.bf16 %v4489_v54, %v4487_v21  ;;  %v6560_v57 = vld [vmem:[%s9840_s19 + $0x8] sm:$0xf0] }
 0x8a4   : > { %v4449_v1 = vmax.f32 %v4435_v9, 0.0  ;;  %v4340_v11 = vpop.f32.mrf.mxu0 }
 0x8a5   : > { %v4370_v8 = vpop.f32.mrf.mxu3  ;;  %v4436_v44 = vpop.f32.mrf.mxu2  ;;  %v4341_v63 = vadd.f32 %v9059_v20, %v4340_v11 }
 0x8a6   : > { %v4467_v62 = vsel %vm10040_vm2, 0.0, %v4449_v1  ;;  %v4371_v41 = vadd.f32 %v4370_v8, %v4338_v36  ;;  %v6910_v8 = vld [vmem:[%s9840_s19 + $0x34] sm:$0xf] }
 0x8a7   : > { %v4490_v35 = vrot.slane %v4467_v62, 7  ;;  %v4403_v27 = vpop.f32.mrf.mxu1 }
 0x8a8   : > { %v4404_v34 = vadd.f32 %v4403_v27, %v4371_v41  ;;  %v6575_v41 = vor.u32 %v6909_v58, %v6574_v15  ;;  %v6592_v27 = vld [vmem:[%s9840_s19 + $0x48] sm:$0xf0] }
 0x8a9   : > { %v4491_v2 = vsel %vm3584_vm14, %v4488_v7, %v4490_v35 }
 0x8aa   : > { %v4437_v45 = vadd.f32 %v4436_v44, %v4404_v34  ;;  %v6584_v44 = vld [vmem:[%s9840_s19 + $0x38] sm:$0xf0]  ;;  %v6582_v34 = vld [vmem:[%s9840_s19 + $0x30] sm:$0xf] }
 0x8ab   : > { %v6587_v62 = vor.u32 %v6910_v8, %v6584_v44 }
 0x8ac   : > { %v4450_v46 = vmax.f32 %v4437_v45, 0.0  ;;  %v4342_v55 = vpop.f32.mrf.mxu0 }
 0x8ad   : > { %v4373_v24 = vpop.f32.mrf.mxu3  ;;  %v4439_v5 = vpop.f32.mrf.mxu2  ;;  %v6600_v55 = vld [vmem:[%s9840_s19 + $0x58] sm:$0xf0] }
 0x8ae   : > { %v4468_v59 = vsel %vm10043_vm9, 0.0, %v4450_v46  ;;  %v4374_v32 = vadd.f32 %v4373_v24, %v4341_v63  ;;  %v6590_v24 = vld [vmem:[%s9840_s19 + $0x40] sm:$0xf] }
 0x8af   : > { %v4492_v31 = vrot.slane %v4468_v59, 7  ;;  %v4406_v56 = vpop.f32.mrf.mxu1  ;;  %v6916_v59 = vld [vmem:[%s9840_s19 + $0x64] sm:$0xf] }
 0x8b0   : > { %v4407_v3 = vadd.f32 %v4406_v56, %v4374_v32  ;;  %v6608_v32 = vld [vmem:[%s9840_s19 + $0x68] sm:$0xf0]  ;;  %v6915_v56 = vld [vmem:[%s9840_s19 + $0x54] sm:$0xf0] }
 0x8b1   : > { %v4493_v33 = vsel %vm3584_vm14, %v4490_v35, %v4492_v31  ;;  %v6912_v35 = vld [vmem:[%s9840_s19 + $0x44] sm:$0xf] }
 0x8b2   : > { %v4440_v4 = vadd.f32 %v4439_v5, %v4407_v3  ;;  %v4529_v53 = vpack.c.bf16 %v4493_v33, %v4491_v2  ;;  %v6911_v2 = vld [vmem:[%s9840_s19 + $0x34] sm:$0xf0]  ;;  %v6595_v45 = vor.u32 %v6912_v35, %v6592_v27  ;;  %v6913_v5 = vld [vmem:[%s9840_s19 + $0x44] sm:$0xf0]  ;;  %v6611_v3 = vor.u32 %v6916_v59, %v6608_v32 }
 0x8b3   : > { %v6583_v63 = vor.u32 %v6911_v2, %v6582_v34  ;;  %v6591_v52 = vor.u32 %v6913_v5, %v6590_v24 }
 0x8b4   : > { %v4451_v21 = vmax.f32 %v4440_v4, 0.0  ;;  %4631 = vmatpush.bf16.msra.mxu0 %v4529_v53  ;;  %v6918_v4 = vld [vmem:[%s9840_s19 + $0x74] sm:$0xf]  ;;  %v6616_v53 = vld [vmem:[%s9840_s19 + $0x78] sm:$0xf0] }
 0x8b5   : > { %v4375_v6 = vpop.f32.mrf.mxu3  ;;  %v4441_v20 = vpop.f32.mrf.mxu2 }
 0x8b6   : > { %v4460_v25 = vsel %vm10046_vm6, %v4451_v21, 0.0  ;;  %v4469_v26 = vsel %vm10047_vm0, 0.0, %v4451_v21  ;;  %v6606_v21 = vld [vmem:[%s9840_s19 + $0x60] sm:$0xf]  ;;  %v6917_v6 = vld [vmem:[%s9840_s19 + $0x64] sm:$0xf0]  ;;  %v6619_v20 = vor.u32 %v6918_v4, %v6616_v53 }
 0x8b7   : > { %v4494_v17 = vrot.slane %v4469_v26, 7  ;;  %v4408_v16 = vpop.f32.mrf.mxu1  ;;  %v4505_v39 = vsel %vm3584_vm14, %v4460_v25, %v4479_v40  ;;  %v6563_v40 = vor.u32 %v6904_v48, %v6560_v57  ;;  %v6607_v22 = vor.u32 %v6917_v6, %v6606_v21  ;;  %v6919_v25 = vld [vmem:[%s9840_s19 + $0x74] sm:$0xf0] }
 0x8b8   : > { %4632 = vmatpush.bf16.msra.mxu0 %v4528_v47  ;;  %v4526_v0 = vpack.c.bf16 %v9086_v43, %v4505_v39  ;;  %v6621_v43 = vpack.c.bf16 %v4450_v46, %v4449_v1  ;;  %v6624_v47 = vpack.c.bf16 %v4448_v37, %v4447_v49  ;;  %v6905_v49 = vld [vmem:[%s9840_s19 + $0x4] sm:$0xf0]  ;;  %v6571_v37 = vor.u32 %v6906_v10, %v6568_v29  ;;  %v6914_v46 = vld [vmem:[%s9840_s19 + $0x54] sm:$0xf] }
 0x8b9   : > { %v4495_v7 = vsel %vm3584_vm14, %v4492_v31, %v4494_v17  ;;  %v6559_v11 = vor.u32 %v6905_v49, %v6558_v28  ;;  %v6603_v42 = vor.u32 %v6914_v46, %v6600_v55  ;;  %v6598_v31 = vld [vmem:[%s9840_s19 + $0x50] sm:$0xf]  ;;  %v6615_v26 = vor.u32 %v6919_v25, %v6614_v23 }
 0x8ba   : > { %v4530_v54 = vpack.c.bf16 %v4495_v7, %v4495_v7  ;;  %v6599_v33 = vor.u32 %v6915_v56, %v6598_v31 }
 0x8bc   : > { %4633 = vmatpush.bf16.msra.mxu0 %v4527_v30  ;;  %v4629_v19 = vsel %vm3584_vm14, %v4530_v54, 0  ;;  %v6627_v30 = vpack.c.bf16 %v4446_v14, %v4445_v18  ;;  %v6908_v18 = vld [vmem:[%s9840_s19 + $0x24] sm:$0xf]  ;;  %v6576_v14 = vld [vmem:[%s9840_s19 + $0x28] sm:$0xf0] }
 0x8bd   : > { %4687 = vmatpush.bf16.msrb.mxu3 %v4629_v19  ;;  %v6579_v61 = vor.u32 %v6908_v18, %v6576_v14 }
 0x8c0   : > { %4634 = vmatpush.bf16.msra.mxu0 %v4526_v0  ;;  %6632 = vmatmul.msk.bf16.vlgmr.msrb.gmra.mxu3 %vm4603_vm5, %v6563_v40 }
 0x8c4   : > { %6622 = vmatpush.bf16.msk.msra.mxu0 %vm7989_vm10, %v6621_v43  ;;  %vm10052_vm10 = vcmask 1044480  }
 0x8c5   : > { %vm10058_vm14 = vmmov %vm10052_vm10 }
 0x8c6   : > { %vm10062_vm9 = vmmov %vm10052_vm10 }
 0x8c8   : > { %6625 = vmatpush.bf16.msk.msra.mxu0 %vm7921_vm11, %v6624_v47  ;;  %vm10053_vm11 = vsmask.f32 4352 }
 0x8c9   : > { %vm10059_vm15 = vmmov %vm10053_vm11 }
 0x8ca   : > { %vm10063_vm6 = vmmov %vm10053_vm11 }
 0x8cc   : > { %6628 = vmatpush.bf16.msk.msra.mxu0 %vm7825_vm8, %v6627_v30  ;;  %vm10057_vm8 = vcmask 1046528  }
 0x8cd   : > { %vm10061_vm2 = vmmov %vm10057_vm8 }
 0x8d0   : > { %6631 = vmatpush.bf16.msk.msra.mxu0 %vm7785_vm13, %v6630_v60  ;;  %6633 = vmatmul.msk.bf16.gmra.mxu3 %vm4603_vm5, %v6571_v37  ;;  %vm10055_vm13 = vsmask.f32 5376 }
 0x8d1   : > { %vm10060_vm7 = vmmov %vm10055_vm13 }
 0x8d2   : > { %vm10064_vm0 = vmmov %vm10060_vm7 }
 0x8d3   : > { %4639 = vmatmul.bf16.vlgmr.msra.gmra.mxu0 %v6559_v11 }
 0x8e0   : > { %6634 = vmatmul.msk.bf16.gmra.mxu3 %vm4603_vm5, %v6579_v61 }
 0x8e3   : > { %4644 = vmatmul.bf16.gmra.mxu0 %v6567_v38 }
 0x8f0   : > { %6635 = vmatmul.msk.bf16.gmra.mxu3 %vm4603_vm5, %v6587_v62 }
 0x8f3   : > { %4649 = vmatmul.bf16.gmra.mxu0 %v6575_v41 }
 0x900   : > { %6636 = vmatmul.msk.bf16.gmra.mxu3 %vm4603_vm5, %v6595_v45 }
 0x903   : > { %4654 = vmatmul.bf16.gmra.mxu0 %v6583_v63 }
 0x910   : > { %6637 = vmatmul.msk.bf16.gmra.mxu3 %vm4603_vm5, %v6603_v42 }
 0x913   : > { %4659 = vmatmul.bf16.gmra.mxu0 %v6591_v52 }
 0x920   : > { %6638 = vmatmul.msk.bf16.gmra.mxu3 %vm4603_vm5, %v6611_v3 }
 0x923   : > { %4664 = vmatmul.bf16.gmra.mxu0 %v6599_v33 }
 0x930   : > { %6639 = vmatmul.msk.bf16.gmra.mxu3 %vm4603_vm5, %v6619_v20  ;;  %vm10065_vm5 = vmmov %vm10061_vm2 }
 0x933   : > { %4669 = vmatmul.bf16.gmra.mxu0 %v6607_v22 }
 0x943   : > { %4674 = vmatmul.bf16.gmra.mxu0 %v6615_v26  ;;  %v4689_v17 = vpop.f32.mrf.mxu3 }
 0x94b   : > { %v4691_v16 = vpop.f32.mrf.mxu3 }
 0x950   : > { %v4640_v39 = vpop.f32.mrf.mxu0 }
 0x951   : > { %v4690_v7 = vadd.f32 %v4689_v17, %v4640_v39 }
 0x953   : > { %v4694_v0 = vpop.f32.mrf.mxu3  ;;  %v4729_v54 = vpack.c.bf16 %v4690_v7, %v4690_v7 }
 0x955   : > { %v4761_v9 = vunpack.c.l.b16 %v4729_v54 }
 0x958   : > { %v4642_v48 = vpop.f32.mrf.mxu0 }
 0x959   : > { %v4692_v57 = vadd.f32 %v4691_v16, %v4642_v48 }
 0x95b   : > { %v4730_v19 = vpack.c.bf16 %v4692_v57, %v4692_v57  ;;  %v4696_v40 = vpop.f32.mrf.mxu3 }
 0x95d   : > { %v4762_v43 = vunpack.c.l.b16 %v4730_v19 }
 0x95f   : > { %v4777_v47 = vpack.c.b16 %v4762_v43, %v4761_v9 }
 0x960   : > { %v4645_v36 = vpop.f32.mrf.mxu0 }
 0x961   : > { %v4786_v29 = vshrl.u32 %v4777_v47, 16  ;;  %v4789_v30 = vshll.u32 %v4777_v47, 16  ;;  %v4695_v1 = vadd.f32 %v4694_v0, %v4645_v36 }
 0x963   : > { %v4699_v10 = vpop.f32.mrf.mxu3  ;;  %v4788_v28 = vrot.slane %v4786_v29, 6  ;;  %v4791_v49 = vrot.slane %v4789_v30, 7  ;;  %v4731_v60 = vpack.c.bf16 %v4695_v1, %v4695_v1 }
 0x965   : > { %v4792_v14 = vor.u32 %v4791_v49, %v4788_v28  ;;  %v4763_v13 = vunpack.c.l.b16 %v4731_v60 }
 0x967   : > { %v9281_v38 = vsel %vm8584_vm1, 0, %v4792_v14 }
 0x968   : > { %v4647_v37 = vpop.f32.mrf.mxu0  ;;  %v4861_v35 = vshrl.u32 %v9281_v38, 16  ;;  %v4863_v27 = vshll.u32 %v9281_v38, 16  ;;  %v5098_v63 = vrot.slane %v9281_v38, 3 }
 0x969   : > { %v4697_v11 = vadd.f32 %v4696_v40, %v4647_v37  ;;  %v4941_v40 = vrot.slane %v9281_v38, 1 }
 0x96a   : > { %v5131_v46 = vrot.slane %v4861_v35, 3  ;;  %v5132_v52 = vrot.slane %v4863_v27, 4  ;;  %v5047_v31 = vrot.slane %v4861_v35, 2  ;;  %v5048_v56 = vrot.slane %v4863_v27, 3 }
 0x96b   : > { %v4732_v50 = vpack.c.bf16 %v4697_v11, %v4697_v11  ;;  %v4701_v18 = vpop.f32.mrf.mxu3  ;;  %v4974_v43 = vrot.slane %v4861_v35, 1  ;;  %v4975_v9 = vrot.slane %v4863_v27, 2 }
 0x96c   : > { %v5133_v22 = vor.u32 %v5132_v52, %v5131_v46  ;;  %v5049_v17 = vor.u32 %v5048_v56, %v5047_v31 }
 0x96d   : > { %v4764_v12 = vunpack.c.l.b16 %v4732_v50  ;;  %v4976_v60 = vor.u32 %v4975_v9, %v4974_v43 }
 0x96f   : > { %v4778_v61 = vpack.c.b16 %v4764_v12, %v4763_v13 }
 0x970   : > { %v4650_v8 = vpop.f32.mrf.mxu0 }
 0x971   : > { %v4794_v44 = vshrl.u32 %v4778_v61, 16  ;;  %v4797_v15 = vshll.u32 %v4778_v61, 16  ;;  %v4700_v2 = vadd.f32 %v4699_v10, %v4650_v8  ;;  %v4865_v10 = vrot.slane %v4863_v27, 1 }
 0x973   : > { %v4796_v58 = vrot.slane %v4794_v44, 6  ;;  %v4799_v62 = vrot.slane %v4797_v15, 7  ;;  %v4704_v41 = vpop.f32.mrf.mxu3  ;;  %v4733_v59 = vpack.c.bf16 %v4700_v2, %v4700_v2 }
 0x975   : > { %v4800_v34 = vor.u32 %v4799_v62, %v4796_v58  ;;  %v4765_v25 = vunpack.c.l.b16 %v4733_v59 }
 0x977   : > { %v9286_v45 = vsel %vm2692_vm12, %v4792_v14, %v4800_v34 }
 0x978   : > { %v4652_v55 = vpop.f32.mrf.mxu0  ;;  %v5099_v24 = vrot.slane %v9286_v45, 3  ;;  %v9291_v5 = vshll.u32 %v9286_v45, 16  ;;  %v9294_v42 = vshrl.u32 %v9286_v45, 16  ;;  %v4942_v0 = vrot.slane %v9286_v45, 1 }
 0x979   : > { %v4702_v32 = vadd.f32 %v4701_v18, %v4652_v55  ;;  %v4866_v18 = vor.u32 %v4865_v10, %v4861_v35 }
 0x97a   : > { %v5100_v3 = vsel %vm10052_vm10, %v5098_v63, %v5099_v24  ;;  %v5134_v33 = vrot.slane %v9294_v42, 3  ;;  %v5135_v4 = vrot.slane %v9291_v5, 4  ;;  %v5050_v53 = vrot.slane %v9294_v42, 2  ;;  %vm10066_vm10 = vmmov %vm10062_vm9 }
 0x97b   : > { %v4734_v21 = vpack.c.bf16 %v4702_v32, %v4702_v32  ;;  %5115 = vrot.lane.b32.xlu0 %v5100_v3, %s9988_s4  ;;  %v5051_v6 = vrot.slane %v9291_v5, 3  ;;  %v4706_v20 = vpop.f32.mrf.mxu3  ;;  %v4977_v7 = vrot.slane %v9294_v42, 1  ;;  %v4978_v48 = vrot.slane %v9291_v5, 2 }
 0x97c   : > { %v5136_v23 = vor.u32 %v5135_v4, %v5134_v33  ;;  %v4943_v29 = vsel %vm10057_vm8, %v4941_v40, %v4942_v0  ;;  %v4870_v49 = vrot.slane %v9291_v5, 1  ;;  %vm10069_vm8 = vmmov %vm10061_vm2 }
 0x97d   : > { %v4766_v26 = vunpack.c.l.b16 %v4734_v21  ;;  %v5052_v16 = vor.u32 %v5051_v6, %v5050_v53  ;;  %v4979_v30 = vor.u32 %v4978_v48, %v4977_v7 }
 0x97e   : > { %v5137_v39 = vsel %vm10053_vm11, %v5133_v22, %v5136_v23  ;;  %v4871_v12 = vsel %vm765_vm4, %v4866_v18, %v4870_v49  ;;  %vm10067_vm11 = vmmov %vm10063_vm6 }
 0x97f   : > { %v4779_v57 = vpack.c.b16 %v4766_v26, %v4765_v25  ;;  %5166 = vrot.lane.b32.xlu1 %v5137_v39, %s10054_s28  ;;  %v5053_v54 = vsel %vm10055_vm13, %v5049_v17, %v5052_v16  ;;  %v4980_v14 = vsel %vm890_vm3, %v4976_v60, %v4979_v30  ;;  %v4874_v39 = vor.u32 %v9294_v42, %v4870_v49  ;;  %vm10068_vm13 = vmmov %vm10064_vm0 }
 0x980   : > { %5082 = vrot.lane.b32.xlu2 %v5053_v54, %s10056_s5  ;;  %v4655_v19 = vpop.f32.mrf.mxu0 }
 0x981   : > { %v4803_v47 = vshrl.u32 %v4779_v57, 16  ;;  %v4806_v36 = vshll.u32 %v4779_v57, 16  ;;  %v4705_v50 = vadd.f32 %v4704_v41, %v4655_v19 }
 0x983   : > { %v4805_v1 = vrot.slane %v4803_v47, 6  ;;  %v4808_v28 = vrot.slane %v4806_v36, 7  ;;  %4958 = vrot.lane.b32.xlu0 %v4943_v29, %s9988_s4  ;;  %v4709_v37 = vpop.f32.mrf.mxu3  ;;  %v4735_v58 = vpack.c.bf16 %v4705_v50, %v4705_v50 }
 0x985   : > { %v4809_v11 = vor.u32 %v4808_v28, %v4805_v1  ;;  %v4767_v5 = vunpack.c.l.b16 %v4735_v58 }
 0x987   : > { %v9315_v13 = vsel %vm2692_vm12, %v4800_v34, %v4809_v11  ;;  %5014 = vrot.lane.b32.xlu1 %v4980_v14, %s10054_s28 }
 0x988   : > { %4923 = vrot.lane.b32.xlu2 %v4871_v12, %s10056_s5  ;;  %v4657_v61 = vpop.f32.mrf.mxu0  ;;  %v5101_v8 = vrot.slane %v9315_v13, 3  ;;  %v9322_v44 = vshll.u32 %v9315_v13, 16  ;;  %v9325_v15 = vshrl.u32 %v9315_v13, 16 }
 0x989   : > { %v4707_v62 = vadd.f32 %v4706_v20, %v4657_v61 }
 0x98a   : > { %v5102_v41 = vsel %vm10058_vm14, %v5099_v24, %v5101_v8  ;;  %v5138_v35 = vrot.slane %v9325_v15, 3  ;;  %v5139_v27 = vrot.slane %v9322_v44, 4  ;;  %v5054_v34 = vrot.slane %v9325_v15, 2  ;;  %vm10070_vm14 = vmmov %vm10062_vm9 }
 0x98b   : > { %v4736_v2 = vpack.c.bf16 %v4707_v62, %v4707_v62  ;;  %5117 = vrot.lane.b32.xlu0 %v5102_v41, %s9988_s4  ;;  %v5055_v63 = vrot.slane %v9322_v44, 3  ;;  %v4711_v55 = vpop.f32.mrf.mxu3  ;;  %v4944_v24 = vrot.slane %v9315_v13, 1  ;;  %v4981_v31 = vrot.slane %v9325_v15, 1 }
 0x98c   : > { %v5140_v46 = vor.u32 %v5139_v27, %v5138_v35  ;;  %v4982_v56 = vrot.slane %v9322_v44, 2  ;;  %v4878_v25 = vrot.slane %v9322_v44, 1 }
 0x98d   : > { %v4768_v52 = vunpack.c.l.b16 %v4736_v2  ;;  %v5056_v59 = vor.u32 %v5055_v63, %v5054_v34  ;;  %v4945_v6 = vsel %vm10061_vm2, %v4942_v0, %v4944_v24 }
 0x98e   : > { %v5141_v32 = vsel %vm10059_vm15, %v5136_v23, %v5140_v46  ;;  %v4983_v20 = vor.u32 %v4982_v56, %v4981_v31  ;;  %v4879_v0 = vsel %vm765_vm4, %v4874_v39, %v4878_v25  ;;  %vm10071_vm15 = vmmov %vm10063_vm6 }
 0x98f   : > { %v4780_v3 = vpack.c.b16 %v4768_v52, %v4767_v5  ;;  %5168 = vrot.lane.b32.xlu1 %v5141_v32, %s10054_s28  ;;  %v5057_v33 = vsel %vm10060_vm7, %v5052_v16, %v5056_v59  ;;  %vm10072_vm7 = vmmov %vm10064_vm0 }
 0x990   : > { %5084 = vrot.lane.b32.xlu2 %v5057_v33, %s10056_s5  ;;  %v4660_v4 = vpop.f32.mrf.mxu0  ;;  %v4984_v16 = vsel %vm890_vm3, %v4979_v30, %v4983_v20 }
 0x991   : > { %v4812_v53 = vshrl.u32 %v4780_v3, 16  ;;  %v4815_v21 = vshll.u32 %v4780_v3, 16  ;;  %v4710_v17 = vadd.f32 %v4709_v37, %v4660_v4 }
 0x993   : > { %v4814_v22 = vrot.slane %v4812_v53, 6  ;;  %v4817_v23 = vrot.slane %v4815_v21, 7  ;;  %4960 = vrot.lane.b32.xlu0 %v4945_v6, %s9988_s4  ;;  %v4714_v7 = vpop.f32.mrf.mxu3  ;;  %v4737_v40 = vpack.c.bf16 %v4710_v17, %v4710_v17 }
 0x995   : > { %v4818_v26 = vor.u32 %v4817_v23, %v4814_v22  ;;  %v4769_v28 = vunpack.c.l.b16 %v4737_v40 }
 0x997   : > { %v9346_v48 = vsel %vm2692_vm12, %v4809_v11, %v4818_v26  ;;  %5016 = vrot.lane.b32.xlu1 %v4984_v16, %s10054_s28 }
 0x998   : > { %4925 = vrot.lane.b32.xlu2 %v4879_v0, %s10056_s5  ;;  %v4662_v57 = vpop.f32.mrf.mxu0  ;;  %v5103_v54 = vrot.slane %v9346_v48, 3  ;;  %v9353_v19 = vshll.u32 %v9346_v48, 16  ;;  %v9356_v42 = vshrl.u32 %v9346_v48, 16  ;;  %v4946_v11 = vrot.slane %v9346_v48, 1 }
 0x999   : > { %v4712_v43 = vadd.f32 %v4711_v55, %v4662_v57 }
 0x99a   : > { %v5104_v9 = vsel %vm10062_vm9, %v5101_v8, %v5103_v54  ;;  %v5142_v47 = vrot.slane %v9356_v42, 3  ;;  %v5143_v36 = vrot.slane %v9353_v19, 4  ;;  %v5058_v10 = vrot.slane %v9356_v42, 2 }
 0x99b   : > { %v4738_v29 = vpack.c.bf16 %v4712_v43, %v4712_v43  ;;  %5119 = vrot.lane.b32.xlu0 %v5104_v9, %s9988_s4  ;;  %v5059_v30 = vrot.slane %v9353_v19, 3  ;;  %v4985_v50 = vrot.slane %v9356_v42, 1  ;;  %v4986_v18 = vrot.slane %v9353_v19, 2  ;;  %v4716_v8 = vpop.f32.mrf.mxu3 }
 0x99c   : > { %v5144_v1 = vor.u32 %v5143_v36, %v5142_v47  ;;  %v4947_v62 = vsel %vm10065_vm5, %v4944_v24, %v4946_v11  ;;  %v4886_v34 = vrot.slane %v9353_v19, 1  ;;  %vm10073_vm5 = vmmov %vm10061_vm2 }
 0x99d   : > { %v4770_v49 = vunpack.c.l.b16 %v4738_v29  ;;  %v5060_v37 = vor.u32 %v5059_v30, %v5058_v10  ;;  %v4987_v41 = vor.u32 %v4986_v18, %v4985_v50 }
 0x99e   : > { %v5145_v60 = vsel %vm10063_vm6, %v5140_v46, %v5144_v1  ;;  %v4882_v46 = vor.u32 %v9325_v15, %v4878_v25 }
 0x99f   : > { %v4781_v14 = vpack.c.b16 %v4770_v49, %v4769_v28  ;;  %5170 = vrot.lane.b32.xlu1 %v5145_v60, %s10054_s28  ;;  %v5061_v12 = vsel %vm10064_vm0, %v5056_v59, %v5060_v37  ;;  %v4988_v55 = vsel %vm890_vm3, %v4983_v20, %v4987_v41  ;;  %v4890_v28 = vor.u32 %v9356_v42, %v4886_v34  ;;  %v6935_v49 = vld [vmem:[%s9834_s13 + $0x78] sm:$0xff] }
 0x9a0   : > { %5086 = vrot.lane.b32.xlu2 %v5061_v12, %s10056_s5  ;;  %v4665_v61 = vpop.f32.mrf.mxu0  ;;  %v4887_v52 = vsel %vm765_vm4, %v4882_v46, %v4886_v34  ;;  %5483 = vmatpush.bf16.msra.mxu2 %v6935_v49  ;;  %v6934_v12 = vld [vmem:[%s9834_s13 + $0x70] sm:$0xff]  ;;  %v6927_v34 = vld [vmem:[%s9834_s13 + $0x38] sm:$0xff] }
 0x9a1   : > { %v4821_v44 = vshrl.u32 %v4781_v14, 16  ;;  %v4824_v58 = vshll.u32 %v4781_v14, 16  ;;  %v4715_v63 = vadd.f32 %v4714_v7, %v4665_v61  ;;  %5434 = vmatpush.bf16.msrb.mxu1 %v6927_v34 }
 0x9a3   : > { %v4823_v35 = vrot.slane %v4821_v44, 6  ;;  %v4826_v27 = vrot.slane %v4824_v58, 7  ;;  %4962 = vrot.lane.b32.xlu0 %v4947_v62, %s9988_s4  ;;  %v4739_v15 = vpack.c.bf16 %v4715_v63, %v4715_v63  ;;  %v4719_v3 = vpop.f32.mrf.mxu3 }
 0x9a4   : > { %5484 = vmatpush.bf16.msra.mxu2 %v6934_v12  ;;  %v6923_v12 = vld [vmem:[%s9834_s13 + $0x18] sm:$0xff] }
 0x9a5   : > { %v4827_v2 = vor.u32 %v4826_v27, %v4823_v35  ;;  %v4771_v23 = vunpack.c.l.b16 %v4739_v15 }
 0x9a7   : > { %v9377_v5 = vsel %vm2692_vm12, %v4818_v26, %v4827_v2  ;;  %5018 = vrot.lane.b32.xlu1 %v4988_v55, %s10054_s28 }
 0x9a8   : > { %4927 = vrot.lane.b32.xlu2 %v4887_v52, %s10056_s5  ;;  %v4667_v59 = vpop.f32.mrf.mxu0  ;;  %v5105_v32 = vrot.slane %v9377_v5, 3  ;;  %v9384_v24 = vshll.u32 %v9377_v5, 16  ;;  %v9387_v31 = vshrl.u32 %v9377_v5, 16  ;;  %v4948_v39 = vrot.slane %v9377_v5, 1 }
 0x9a9   : > { %v4717_v56 = vadd.f32 %v4716_v8, %v4667_v59 }
 0x9aa   : > { %v5106_v33 = vsel %vm10066_vm10, %v5103_v54, %v5105_v32  ;;  %v5146_v4 = vrot.slane %v9387_v31, 3  ;;  %v5147_v53 = vrot.slane %v9384_v24, 4  ;;  %v5062_v21 = vrot.slane %v9387_v31, 2  ;;  %vm10075_vm10 = vmmov %vm10063_vm6 }
 0x9ab   : > { %v4740_v6 = vpack.c.bf16 %v4717_v56, %v4717_v56  ;;  %5121 = vrot.lane.b32.xlu0 %v5106_v33, %s9988_s4  ;;  %v5063_v20 = vrot.slane %v9384_v24, 3  ;;  %v4989_v16 = vrot.slane %v9387_v31, 1  ;;  %v4990_v7 = vrot.slane %v9384_v24, 2  ;;  %v4721_v29 = vpop.f32.mrf.mxu3 }
 0x9ac   : > { %v5148_v22 = vor.u32 %v5147_v53, %v5146_v4  ;;  %v4949_v43 = vsel %vm10069_vm8, %v4946_v11, %v4948_v39  ;;  %v4894_v10 = vrot.slane %v9384_v24, 1  ;;  %v6926_v53 = vld [vmem:[%s9834_s13 + $0x30] sm:$0xff]  ;;  %vm10079_vm8 = vmmov %vm10063_vm6 }
 0x9ad   : > { %v4772_v25 = vunpack.c.l.b16 %v4740_v6  ;;  %v5064_v26 = vor.u32 %v5063_v20, %v5062_v21  ;;  %v9405_v9 = vor.u32 %v4990_v7, %v4989_v16  ;;  %v6932_v21 = vld [vmem:[%s9834_s13 + $0x60] sm:$0xff]  ;;  %5435 = vmatpush.bf16.msrb.mxu1 %v6926_v53  ;;  %v6925_v16 = vld [vmem:[%s9834_s13 + $0x28] sm:$0xff]  ;;  %v6931_v7 = vld [vmem:[%s9834_s13 + $0x58] sm:$0xff] }
 0x9ae   : > { %v5149_v17 = vsel %vm10067_vm11, %v5144_v1, %v5148_v22  ;;  %v4895_v11 = vsel %vm765_vm4, %v4890_v28, %v4894_v10  ;;  %vm10076_vm11 = vmmov %vm10064_vm0 }
 0x9af   : > { %v4782_v0 = vpack.c.b16 %v4772_v25, %v4771_v23  ;;  %5172 = vrot.lane.b32.xlu1 %v5149_v17, %s10054_s28  ;;  %v5065_v57 = vsel %vm10068_vm13, %v5060_v37, %v5064_v26  ;;  %v4992_v37 = vsel %vm890_vm3, %v4987_v41, %v9405_v9  ;;  %vm10077_vm13 = vmmov %vm10061_vm2 }
 0x9b0   : > { %5088 = vrot.lane.b32.xlu2 %v5065_v57, %s10056_s5  ;;  %v4670_v54 = vpop.f32.mrf.mxu0  ;;  %v4898_v57 = vor.u32 %v9387_v31, %v4894_v10  ;;  %v6924_v10 = vld [vmem:[%s9834_s13 + $0x20] sm:$0xff] }
 0x9b1   : > { %v4830_v19 = vshrl.u32 %v4782_v0, 16  ;;  %v4833_v40 = vshll.u32 %v4782_v0, 16  ;;  %v4720_v1 = vadd.f32 %v4719_v3, %v4670_v54  ;;  %5436 = vmatpush.bf16.msrb.mxu1 %v6925_v16 }
 0x9b3   : > { %v4832_v47 = vrot.slane %v4830_v19, 6  ;;  %v4835_v36 = vrot.slane %v4833_v40, 7  ;;  %4964 = vrot.lane.b32.xlu0 %v4949_v43, %s9988_s4  ;;  %v4741_v61 = vpack.c.bf16 %v4720_v1, %v4720_v1  ;;  %v4724_v59 = vpop.f32.mrf.mxu3 }
 0x9b5   : > { %v9409_v30 = vor.u32 %v4835_v36, %v4832_v47  ;;  %v4773_v46 = vunpack.c.l.b16 %v4741_v61  ;;  %5437 = vmatpush.bf16.msrb.mxu1 %v6924_v10 }
 0x9b7   : > { %v9419_v60 = vsel %vm2692_vm12, %v4827_v2, %v9409_v30  ;;  %5020 = vrot.lane.b32.xlu1 %v4992_v37, %s10054_s28  ;;  %v6933_v2 = vld [vmem:[%s9834_s13 + $0x68] sm:$0xff] }
 0x9b8   : > { %4929 = vrot.lane.b32.xlu2 %v4895_v11, %s10056_s5  ;;  %v4672_v50 = vpop.f32.mrf.mxu0  ;;  %v5107_v42 = vrot.slane %v9419_v60, 3  ;;  %v9426_v18 = vshll.u32 %v9419_v60, 16  ;;  %v9429_v14 = vshrl.u32 %v9419_v60, 16  ;;  %v4950_v24 = vrot.slane %v9419_v60, 1  ;;  %5485 = vmatpush.bf16.msra.mxu2 %v6933_v2 }
 0x9b9   : > { %v4722_v8 = vadd.f32 %v4721_v29, %v4672_v50  ;;  %v6930_v29 = vld [vmem:[%s9834_s13 + $0x50] sm:$0xff]  ;;  %5438 = vmatpush.bf16.msrb.mxu1 %v6923_v12 }
 0x9ba   : > { %v5108_v44 = vsel %vm10070_vm14, %v5105_v32, %v5107_v42  ;;  %v5150_v58 = vrot.slane %v9429_v14, 3  ;;  %v5151_v62 = vrot.slane %v9426_v18, 4  ;;  %v5066_v41 = vrot.slane %v9429_v14, 2  ;;  %vm10081_vm14 = vmmov %vm10064_vm0 }
 0x9bb   : > { %v4742_v35 = vpack.c.bf16 %v4722_v8, %v4722_v8  ;;  %5123 = vrot.lane.b32.xlu0 %v5108_v44, %s9988_s4  ;;  %v5067_v27 = vrot.slane %v9426_v18, 3  ;;  %v4993_v15 = vrot.slane %v9429_v14, 1  ;;  %v4994_v56 = vrot.slane %v9426_v18, 2  ;;  %v4726_v43 = vpop.f32.mrf.mxu3 }
 0x9bc   : > { %v9448_v63 = vor.u32 %v5151_v62, %v5150_v58  ;;  %v4902_v17 = vrot.slane %v9426_v18, 1  ;;  %5486 = vmatpush.bf16.msra.mxu2 %v6932_v21 }
 0x9bd   : > { %v4774_v55 = vunpack.c.l.b16 %v4742_v35  ;;  %v9450_v52 = vor.u32 %v5067_v27, %v5066_v41  ;;  %v9472_v23 = vor.u32 %v4994_v56, %v4993_v15 }
 0x9be   : > { %v5153_v32 = vsel %vm10071_vm15, %v5148_v22, %v9448_v63  ;;  %v4951_v22 = vsel %vm10061_vm2, %v4948_v39, %v4950_v24  ;;  %v4903_v40 = vsel %vm765_vm4, %v4898_v57, %v4902_v17  ;;  %v4906_v53 = vor.u32 %v9429_v14, %v4902_v17 }
 0x9bf   : > { %v4783_v3 = vpack.c.b16 %v4774_v55, %v4773_v46  ;;  %5174 = vrot.lane.b32.xlu1 %v5153_v32, %s10054_s28  ;;  %v5069_v33 = vsel %vm10072_vm7, %v5064_v26, %v9450_v52  ;;  %v4996_v54 = vsel %vm890_vm3, %v9405_v9, %v9472_v23  ;;  %v6928_v46 = vld [vmem:[%s9834_s13 + $0x40] sm:$0xff]  ;;  %vm10082_vm15 = vcmask 261120  }
 0x9c0   : > { %5090 = vrot.lane.b32.xlu2 %v5069_v33, %s10056_s5  ;;  %v4675_v4 = vpop.f32.mrf.mxu0  ;;  %5487 = vmatpush.bf16.msra.mxu2 %v6931_v7  ;;  %v6921_v33 = vld [vmem:[%s9834_s13 + $0x8] sm:$0xff]  ;;  %vm10083_vm7 = vcmask 523264   ;;  %vm10084_vm2 = vcmask 785408  }
 0x9c1   : > { %v4839_v6 = vshrl.u32 %v4783_v3, 16  ;;  %v4842_v20 = vshll.u32 %v4783_v3, 16  ;;  %v4725_v39 = vadd.f32 %v4724_v59, %v4675_v4 }
 0x9c3   : > { %v4841_v25 = vrot.slane %v4839_v6, 6  ;;  %v4844_v26 = vrot.slane %v4842_v20, 7  ;;  %4966 = vrot.lane.b32.xlu0 %v4951_v22, %s9988_s4 }
 0x9c4   : > { %5488 = vmatpush.bf16.msra.mxu2 %v6930_v29 }
 0x9c5   : > { %v4845_v0 = vor.u32 %v4844_v26, %v4841_v25 }
 0x9c7   : > { %v9488_v19 = vsel %vm2692_vm12, %v9409_v30, %v4845_v0  ;;  %5022 = vrot.lane.b32.xlu1 %v4996_v54, %s10054_s28  ;;  %v4743_v30 = vpack.c.bf16 %v4725_v39, %v4725_v39 }
 0x9c8   : > { %4931 = vrot.lane.b32.xlu2 %v4903_v40, %s10056_s5  ;;  %v4677_v47 = vpop.f32.mrf.mxu0  ;;  %v5109_v31 = vrot.slane %v9488_v19, 3  ;;  %v9495_v36 = vshll.u32 %v9488_v19, 16  ;;  %v9498_v9 = vshrl.u32 %v9488_v19, 16  ;;  %v4952_v41 = vrot.slane %v9488_v19, 1 }
 0x9c9   : > { %v4727_v1 = vadd.f32 %v4726_v43, %v4677_v47  ;;  %v4775_v8 = vunpack.c.l.b16 %v4743_v30 }
 0x9ca   : > { %v5110_v28 = vsel %vm10062_vm9, %v5107_v42, %v5109_v31  ;;  %v5154_v49 = vrot.slane %v9498_v9, 3  ;;  %v5155_v37 = vrot.slane %v9495_v36, 4  ;;  %v5070_v11 = vrot.slane %v9498_v9, 2  ;;  %v6929_v42 = vld [vmem:[%s9834_s13 + $0x48] sm:$0xff] }
 0x9cb   : > { %v4744_v50 = vpack.c.bf16 %v4727_v1, %v4727_v1  ;;  %5125 = vrot.lane.b32.xlu0 %v5110_v28, %s9988_s4  ;;  %v5071_v18 = vrot.slane %v9495_v36, 3  ;;  %v4997_v35 = vrot.slane %v9498_v9, 1  ;;  %v4998_v27 = vrot.slane %v9495_v36, 2  ;;  %5489 = vmatpush.bf16.msra.mxu2 %v6929_v42 }
 0x9cc   : > { %v5156_v61 = vor.u32 %v5155_v37, %v5154_v49  ;;  %v4953_v32 = vsel %vm10073_vm5, %v4950_v24, %v4952_v41  ;;  %v4910_v3 = vrot.slane %v9495_v36, 1 }
 0x9cd   : > { %v4776_v44 = vunpack.c.l.b16 %v4744_v50  ;;  %v5072_v58 = vor.u32 %v5071_v18, %v5070_v11  ;;  %v4999_v15 = vor.u32 %v4998_v27, %v4997_v35 }
 0x9ce   : > { %v5157_v62 = vsel %vm10063_vm6, %v9448_v63, %v5156_v61  ;;  %v6922_v63 = vld [vmem:[%s9834_s13 + $0x10] sm:$0xff]  ;;  %v4911_v6 = vsel %vm765_vm4, %v4906_v53, %v4910_v3  ;;  %v4914_v49 = vor.u32 %v9498_v9, %v4910_v3  ;;  %v5031_v9 = vrot.slane %v9286_v45, 2  ;;  %vm10086_vm6 = vmmov %vm10082_vm15 }
 0x9cf   : > { %v4784_v34 = vpack.c.b16 %v4776_v44, %v4775_v8  ;;  %5176 = vrot.lane.b32.xlu1 %v5157_v62, %s10054_s28  ;;  %v5073_v2 = vsel %vm10064_vm0, %v9450_v52, %v5072_v58  ;;  %5439 = vmatpush.bf16.msrb.mxu1 %v6922_v63  ;;  %v5000_v21 = vsel %vm890_vm3, %v9472_v23, %v4999_v15  ;;  %v6920_v23 = vld [vmem:[%s9834_s13] sm:$0xff]  ;;  %vm10087_vm0 = vmmov %vm10083_vm7 }
 0x9d0   : > { %5092 = vrot.lane.b32.xlu2 %v5073_v2, %s10056_s5  ;;  %5490 = vmatpush.bf16.msra.mxu2 %v6928_v46 }
 0x9d1   : > { %v4848_v55 = vshrl.u32 %v4784_v34, 16  ;;  %v4851_v59 = vshll.u32 %v4784_v34, 16 }
 0x9d3   : > { %v4850_v52 = vrot.slane %v4848_v55, 6  ;;  %v4853_v56 = vrot.slane %v4851_v59, 7  ;;  %4968 = vrot.lane.b32.xlu0 %v4953_v32, %s9988_s4  ;;  %5440 = vmatpush.bf16.msrb.mxu1 %v6921_v33 }
 0x9d5   : > { %v4854_v4 = vor.u32 %v4853_v56, %v4850_v52 }
 0x9d7   : > { %v9547_v24 = vsel %vm2692_vm12, %v4845_v0, %v4854_v4  ;;  %5024 = vrot.lane.b32.xlu1 %v5000_v21, %s10054_s28  ;;  %vm10074_vm12 = vmmov %vm10062_vm9  ;;  %5441 = vmatpush.bf16.msrb.mxu1 %v6920_v23 }
 0x9d8   : > { %4933 = vrot.lane.b32.xlu2 %v4911_v6, %s10056_s5  ;;  %v5111_v20 = vrot.slane %v9547_v24, 3  ;;  %v9554_v22 = vshll.u32 %v9547_v24, 16  ;;  %v9557_v14 = vshrl.u32 %v9547_v24, 16  ;;  %v4954_v40 = vrot.slane %v9547_v24, 1 }
 0x9da   : > { %v5083_v25 = vpop.permute.xlu2 %5082  ;;  %v5112_v26 = vsel %vm10074_vm12, %v5109_v31, %v5111_v20  ;;  %v5158_v17 = vrot.slane %v9557_v14, 3  ;;  %v5159_v16 = vrot.slane %v9554_v22, 4  ;;  %v5074_v7 = vrot.slane %v9557_v14, 2  ;;  %vm10090_vm12 = vmmov %vm10086_vm6 }
 0x9db   : > { %5127 = vrot.lane.b32.xlu0 %v5112_v26, %s9988_s4  ;;  %v5075_v0 = vrot.slane %v9554_v22, 3  ;;  %v5001_v43 = vrot.slane %v9557_v14, 1  ;;  %v5002_v47 = vrot.slane %v9554_v22, 2  ;;  %v9574_v31 = vsel %vm8584_vm1, %v4854_v4, 0  ;;  %vm10078_vm1 = vmmov %vm10062_vm9 }
 0x9dc   : > { %v5160_v39 = vor.u32 %v5159_v16, %v5158_v17  ;;  %v4955_v29 = vsel %vm10077_vm13, %v4952_v41, %v4954_v40  ;;  %v5006_v1 = vshrl.u32 %v9574_v31, 16  ;;  %v5009_v28 = vshll.u32 %v9574_v31, 16  ;;  %vm10085_vm9 = vmmov %vm10073_vm5  ;;  %v5572_v16 = vld [vmem:[%s9837_s16] sm:$0xff] }
 0x9dd   : > { %v5076_v57 = vor.u32 %v5075_v0, %v5074_v7  ;;  %v5003_v30 = vor.u32 %v5002_v47, %v5001_v43  ;;  %v4918_v51 = vrot.slane %v9554_v22, 1  ;;  %v5113_v11 = vrot.slane %v9574_v31, 3  ;;  %vm10088_vm5 = vmmov %vm10084_vm2  ;;  %v5577_v47 = vld [vmem:[%s9837_s16 + $0x28] sm:$0xff] }
 0x9de   : > { %v5161_v54 = vsel %vm10075_vm10, %v5156_v61, %v5160_v39  ;;  %v5162_v50 = vrot.slane %v5006_v1, 3  ;;  %v5163_v18 = vrot.slane %v5009_v28, 4  ;;  %v5078_v42 = vrot.slane %v5006_v1, 2  ;;  %vm10091_vm10 = vmmov %vm10087_vm0 }
 0x9df   : > { %5178 = vrot.lane.b32.xlu1 %v5161_v54, %s10054_s28  ;;  %v5077_v36 = vsel %vm10076_vm11, %v5072_v58, %v5076_v57  ;;  %v5004_v37 = vsel %vm890_vm3, %v4999_v15, %v5003_v30  ;;  %v4919_v12 = vsel %vm765_vm4, %v4914_v49, %v4918_v51  ;;  %v5079_v61 = vrot.slane %v5009_v28, 3  ;;  %vm10092_vm11 = vmmov %vm10084_vm2 }
 0x9e0   : > { %5094 = vrot.lane.b32.xlu2 %v5077_v36, %s10056_s5  ;;  %v5114_v44 = vsel %vm10078_vm1, %v5111_v20, %v5113_v11  ;;  %v5164_v58 = vor.u32 %v5163_v18, %v5162_v50  ;;  %v5030_v41 = vrot.slane %v9281_v38, 2  ;;  %v4956_v34 = vrot.slane %v9574_v31, 1  ;;  %v5573_v20 = vld [vmem:[%s9837_s16 + $0x8] sm:$0xff]  ;;  %vm10093_vm13 = vmmov %vm10086_vm6  ;;  %v5580_v11 = vld [vmem:[%s9837_s16 + $0x40] sm:$0xff] }
 0x9e1   : > { %v5080_v62 = vor.u32 %v5079_v61, %v5078_v42  ;;  %v5008_v2 = vrot.slane %v5006_v1, 1  ;;  %v5011_v63 = vrot.slane %v5009_v28, 2  ;;  %vm10080_vm4 = vcmask 1045504   ;;  %vm10094_vm1 = vmmov %vm10087_vm0  ;;  %v5578_v50 = vld [vmem:[%s9837_s16 + $0x30] sm:$0xff] }
 0x9e2   : > { %v4924_v10 = vpop.permute.xlu2 %4923  ;;  %v5165_v27 = vsel %vm10079_vm8, %v5160_v39, %v5164_v58  ;;  %v5032_v46 = vsel %vm10080_vm4, %v5030_v41, %v5031_v9  ;;  %v4957_v3 = vsel %vm10085_vm9, %v4954_v40, %v4956_v34  ;;  %v4922_v21 = vor.u32 %v9557_v14, %v4918_v51  ;;  %v5576_v39 = vld [vmem:[%s9837_s16 + $0x20] sm:$0xff]  ;;  %vm10095_vm8 = vmmov %vm10084_vm2  ;;  %v5582_v42 = vld [vmem:[%s9837_s16 + $0x50] sm:$0xff] }
 0x9e3   : > { %4970 = vrot.lane.b32.xlu0 %v4955_v29, %s9988_s4  ;;  %v5081_v55 = vsel %vm10081_vm14, %v5076_v57, %v5080_v62  ;;  %v5240_v59 = vsel %vm10082_vm15, %v5032_v46, %v5083_v25  ;;  %v5012_v33 = vor.u32 %v5011_v63, %v5008_v2  ;;  %v5183_v6 = vsel %vm10086_vm6, %v9281_v38, %v4924_v10  ;;  %v5574_v38 = vld [vmem:[%s9837_s16 + $0x10] sm:$0xff]  ;;  %v5575_v10 = vld [vmem:[%s9837_s16 + $0x18] sm:$0xff]  ;;  %vm10097_vm14 = vmmov %vm10086_vm6 }
 0x9e4   : > { %v5033_v17 = vrot.slane %v9315_v13, 2  ;;  %v5035_v49 = vrot.slane %v9346_v48, 2  ;;  %vm10098_vm15 = vmmov %vm10087_vm0  ;;  %v5583_v58 = vld [vmem:[%s9837_s16 + $0x58] sm:$0xff]  ;;  %v5581_v41 = vld [vmem:[%s9837_s16 + $0x48] sm:$0xff]  ;;  %v5037_v46 = vrot.slane %v9377_v5, 2 }
 0x9e5   : > { %v5013_v53 = vsel %vm890_vm3, %v5003_v30, %v5012_v33  ;;  %vm10089_vm3 = vmmov %vm10080_vm4  ;;  %v5579_v30 = vld [vmem:[%s9837_s16 + $0x38] sm:$0xff] }
 0x9e6   : > { %v5034_v7 = vsel %vm10089_vm3, %v5031_v9, %v5033_v17  ;;  %vm10096_vm4 = vmmov %vm10089_vm3 }
 0x9e7   : > { %5026 = vrot.lane.b32.xlu1 %v5004_v37, %s10054_s28  ;;  %v5036_v18 = vsel %vm10096_vm4, %v5033_v17, %v5035_v49  ;;  %vm10101_vm9 = vmmov %vm10087_vm0 }
 0x9e8   : > { %4935 = vrot.lane.b32.xlu2 %v4919_v12, %s10056_s5 }
 0x9ea   : > { %v5085_v8 = vpop.permute.xlu2 %5084 }
 0x9eb   : > { %5129 = vrot.lane.b32.xlu0 %v5114_v44, %s9988_s4  ;;  %v5243_v0 = vsel %vm10090_vm12, %v5034_v7, %v5085_v8 }
 0x9ed   : > { %v5116_v35 = vpop.permute.xlu0 %5115 }
 0x9ee   : > { %v5263_v32 = vsel %vm10083_vm7, %v5240_v59, %v5116_v35  ;;  %vm10099_vm7 = vmmov %vm10084_vm2 }
 0x9ef   : > { %5180 = vrot.lane.b32.xlu1 %v5165_v27, %s10054_s28  ;;  %v5585_v27 = vld [vmem:[%s9837_s16 + $0x68] sm:$0xff] }
 0x9f0   : > { %5096 = vrot.lane.b32.xlu2 %v5081_v55, %s10056_s5  ;;  %v5586_v55 = vld [vmem:[%s9837_s16 + $0x70] sm:$0xff] }
 0x9f1   : > { %v5167_v15 = vpop.permute.xlu1 %5166 }
 0x9f2   : > { %v5279_v52 = vsel %vm10084_vm2, %v5263_v32, %v5167_v15  ;;  %v4926_v56 = vpop.permute.xlu2 %4925  ;;  %vm10100_vm2 = vmmov %vm10086_vm6 }
 0x9f3   : > { %5491 = vmatmul.bf16.vlgmr.msra.gmra.mxu2 %v5279_v52  ;;  %4972 = vrot.lane.b32.xlu0 %v4957_v3, %s9988_s4  ;;  %v5185_v29 = vsel %vm10093_vm13, %v9286_v45, %v4926_v56  ;;  %vm10102_vm6 = vmmov %vm10088_vm5 }
 0x9f4   : > { %vm10106_vm12 = vmmov %vm10102_vm6 }
 0x9f5   : > { %v4959_v4 = vpop.permute.xlu0 %4958  ;;  %vm10109_vm13 = vmmov %vm10102_vm6 }
 0x9f6   : > { %v5199_v22 = vsel %vm10087_vm0, %v5183_v6, %v4959_v4  ;;  %vm10103_vm0 = vmmov %vm10089_vm3 }
 0x9f7   : > { %5028 = vrot.lane.b32.xlu1 %v5013_v53, %s10054_s28  ;;  %v5038_v32 = vsel %vm10103_vm0, %v5035_v49, %v5037_v46  ;;  %vm10105_vm3 = vmmov %vm10094_vm1  ;;  %v5587_v53 = vld [vmem:[%s9837_s16 + $0x78] sm:$0xff] }
 0x9f8   : > { %4937 = vrot.lane.b32.xlu2 %v4922_v21, %s10056_s5  ;;  %vm10112_vm4 = vmmov %vm10105_vm3 }
 0x9f9   : > { %v5015_v23 = vpop.permute.xlu1 %5014 }
 0x9fa   : > { %v5215_v25 = vsel %vm10088_vm5, %v5199_v22, %v5015_v23  ;;  %v5087_v26 = vpop.permute.xlu2 %5086  ;;  %vm10104_vm5 = vmmov %vm10100_vm2 }
 0x9fb   : > { %5442 = vmatmul.bf16.vlgmr.msrb.gmra.mxu1 %v5215_v25  ;;  %5595 = vperm.xlu0 %6979, %v5573_v20   ;;  %v5246_v12 = vsel %vm10097_vm14, %v5036_v18, %v5087_v26  ;;  %v5039_v25 = vrot.slane %v9419_v60, 2  ;;  %vm10113_vm14 = vmmov %vm10102_vm6 }
 0x9fd   : > { %v5118_v14 = vpop.permute.xlu0 %5117 }
 0x9fe   : > { %v5265_v57 = vsel %vm10091_vm10, %v5243_v0, %v5118_v14  ;;  %vm10107_vm10 = vmmov %vm10100_vm2 }
 0x9ff   : > { %5600 = vperm.xlu1 %6980, %v5574_v38  }
 0xa00   : > { %5590 = vperm.xlu2 %6981, %v5572_v16  }
 0xa01   : > { %v5169_v54 = vpop.permute.xlu1 %5168 }
 0xa02   : > { %v4928_v40 = vpop.permute.xlu2 %4927  ;;  %v5282_v43 = vsel %vm10092_vm11, %v5265_v57, %v5169_v54  ;;  %vm10108_vm11 = vmmov %vm10094_vm1 }
 0xa03   : > { %5496 = vmatmul.bf16.gmra.mxu2 %v5282_v43  ;;  %5610 = vperm.xlu0 %6979, %v5576_v39   ;;  %v5187_v35 = vsel %vm10100_vm2, %v9315_v13, %v4928_v40  ;;  %v5584_v13 = vld [vmem:[%s9837_s16 + $0x60] sm:$0xff]  ;;  %v5041_v43 = vrot.slane %v9488_v19, 2 }
 0xa05   : > { %v4961_v36 = vpop.permute.xlu0 %4960 }
 0xa06   : > { %v5201_v1 = vsel %vm10094_vm1, %v5185_v29, %v4961_v36  ;;  %vm10110_vm1 = vmmov %vm10103_vm0 }
 0xa07   : > { %5615 = vperm.xlu1 %6980, %v5577_v47   ;;  %v5040_v17 = vsel %vm10110_vm1, %v5037_v46, %v5039_v25 }
 0xa08   : > { %5605 = vperm.xlu2 %6981, %v5575_v10  }
 0xa09   : > { %v5017_v28 = vpop.permute.xlu1 %5016 }
 0xa0a   : > { %v5218_v51 = vsel %vm10095_vm8, %v5201_v1, %v5017_v28  ;;  %v5089_v37 = vpop.permute.xlu2 %5088  ;;  %vm10111_vm8 = vmmov %vm10100_vm2 }
 0xa0b   : > { %5447 = vmatmul.bf16.gmra.mxu1 %v5218_v51  ;;  %5625 = vperm.xlu0 %6979, %v5579_v30   ;;  %v5249_v52 = vsel %vm10104_vm5, %v5038_v32, %v5089_v37 }
 0xa0d   : > { %v5120_v45 = vpop.permute.xlu0 %5119 }
 0xa0e   : > { %v5267_v61 = vsel %vm10098_vm15, %v5246_v12, %v5120_v45  ;;  %vm10114_vm15 = vmmov %vm10100_vm2 }
 0xa0f   : > { %5630 = vperm.xlu1 %6980, %v5580_v11   ;;  %vm10116_vm2 = vmmov %vm10102_vm6 }
 0xa10   : > { %5620 = vperm.xlu2 %6981, %v5578_v50   ;;  %v5043_v50 = vrot.slane %v9547_v24, 2 }
 0xa11   : > { %v5171_v8 = vpop.permute.xlu1 %5170 }
 0xa12   : > { %v5285_v44 = vsel %vm10099_vm7, %v5267_v61, %v5171_v8  ;;  %v4930_v9 = vpop.permute.xlu2 %4929  ;;  %vm10115_vm7 = vmmov %vm10105_vm3 }
 0xa13   : > { %5501 = vmatmul.bf16.gmra.mxu2 %v5285_v44  ;;  %5640 = vperm.xlu0 %6979, %v5582_v42   ;;  %v5189_v21 = vsel %vm10107_vm10, %v9346_v48, %v4930_v9  ;;  %vm10123_vm10 = vmmov %vm10116_vm2 }
 0xa15   : > { %v4963_v62 = vpop.permute.xlu0 %4962 }
 0xa16   : > { %v5203_v34 = vsel %vm10101_vm9, %v5187_v35, %v4963_v62  ;;  %vm10117_vm9 = vmmov %vm10103_vm0 }
 0xa17   : > { %5645 = vperm.xlu1 %6980, %v5583_v58   ;;  %v5042_v10 = vsel %vm10117_vm9, %v5039_v25, %v5041_v43  ;;  %vm10119_vm0 = vmmov %vm10105_vm3 }
 0xa18   : > { %5635 = vperm.xlu2 %6981, %v5581_v41  }
 0xa19   : > { %v5019_v2 = vpop.permute.xlu1 %5018 }
 0xa1a   : > { %v5221_v63 = vsel %vm10102_vm6, %v5203_v34, %v5019_v2  ;;  %v5091_v15 = vpop.permute.xlu2 %5090  ;;  %vm10118_vm6 = vmmov %vm10104_vm5 }
 0xa1b   : > { %5452 = vmatmul.bf16.gmra.mxu1 %v5221_v63  ;;  %5655 = vperm.xlu0 %6979, %v5585_v27   ;;  %v5252_v38 = vsel %vm10111_vm8, %v5040_v17, %v5091_v15  ;;  %vm10120_vm5 = vmmov %vm10116_vm2  ;;  %v5045_v27 = vrot.slane %v9574_v31, 2 }
 0xa1c   : > { %vm10127_vm8 = vmmov %vm10116_vm2 }
 0xa1d   : > { %v5122_v59 = vpop.permute.xlu0 %5121 }
 0xa1e   : > { %v5269_v56 = vsel %vm10105_vm3, %v5249_v52, %v5122_v59  ;;  %vm10121_vm3 = vmmov %vm10118_vm6 }
 0xa1f   : > { %5660 = vperm.xlu1 %6980, %v5586_v55  }
 0xa20   : > { %5650 = vperm.xlu2 %6981, %v5584_v13  }
 0xa21   : > { %v5173_v3 = vpop.permute.xlu1 %5172 }
 0xa22   : > { %v5288_v33 = vsel %vm10106_vm12, %v5269_v56, %v5173_v3  ;;  %v4932_v6 = vpop.permute.xlu2 %4931  ;;  %vm10122_vm12 = vmmov %vm10119_vm0  ;;  %v9727_v3 = vld [vmem:[%s9835_s14] ss:$0 sm:$0xff] }
 0xa23   : > { %5506 = vmatmul.bf16.gmra.mxu2 %v5288_v33  ;;  %v5191_v39 = vsel %vm10114_vm15, %v9377_v5, %v4932_v6  ;;  %vm10130_vm15 = vmmov %vm10116_vm2 }
 0xa25   : > { %v4965_v4 = vpop.permute.xlu0 %4964 }
 0xa26   : > { %v5205_v20 = vsel %vm10108_vm11, %v5189_v21, %v4965_v4  ;;  %vm10124_vm11 = vmmov %vm10110_vm1 }
 0xa27   : > { %v5044_v12 = vsel %vm10124_vm11, %v5041_v43, %v5043_v50  ;;  %vm10126_vm1 = vmmov %vm10119_vm0  ;;  %vm5708_vm11 = vcmask 1039360  }
 0xa28   : > { %5665 = vperm.xlu2 %6981, %v5587_v53  }
 0xa29   : > { %v5021_v22 = vpop.permute.xlu1 %5020 }
 0xa2a   : > { %v5224_v23 = vsel %vm10109_vm13, %v5205_v20, %v5021_v22  ;;  %v5093_v7 = vpop.permute.xlu2 %5092  ;;  %vm10125_vm13 = vmmov %vm10121_vm3 }
 0xa2b   : > { %5457 = vmatmul.bf16.gmra.mxu1 %v5224_v23  ;;  %v5255_v29 = vsel %vm10118_vm6, %v5042_v10, %v5093_v7  ;;  %vm10134_vm6 = vmmov %vm10120_vm5 }
 0xa2d   : > { %v5124_v26 = vpop.permute.xlu0 %5123 }
 0xa2e   : > { %v5271_v14 = vsel %vm10112_vm4, %v5252_v38, %v5124_v26  ;;  %vm10128_vm4 = vmmov %vm10121_vm3 }
 0xa31   : > { %v5175_v16 = vpop.permute.xlu1 %5174 }
 0xa32   : > { %v5291_v48 = vsel %vm10113_vm14, %v5271_v14, %v5175_v16  ;;  %v4934_v47 = vpop.permute.xlu2 %4933  ;;  %vm10129_vm14 = vmmov %vm10119_vm0 }
 0xa33   : > { %5511 = vmatmul.bf16.gmra.mxu2 %v5291_v48  ;;  %v5193_v49 = vsel %vm10121_vm3, %v9419_v60, %v4934_v47 }
 0xa35   : > { %v4967_v0 = vpop.permute.xlu0 %4966 }
 0xa36   : > { %v5207_v57 = vsel %vm10115_vm7, %v5191_v39, %v4967_v0  ;;  %vm10131_vm7 = vmmov %vm10117_vm9 }
 0xa37   : > { %v5046_v63 = vsel %vm10131_vm7, %v5043_v50, %v5045_v27  ;;  %vm10133_vm9 = vmmov %vm10119_vm0 }
 0xa39   : > { %v5023_v54 = vpop.permute.xlu1 %5022 }
 0xa3a   : > { %v5227_v40 = vsel %vm10116_vm2, %v5207_v57, %v5023_v54  ;;  %v5095_v51 = vpop.permute.xlu2 %5094  ;;  %vm10132_vm2 = vmmov %vm10121_vm3 }
 0xa3b   : > { %5462 = vmatmul.bf16.gmra.mxu1 %v5227_v40  ;;  %v5258_v42 = vsel %vm10125_vm13, %v5044_v12, %v5095_v51  ;;  %vm10137_vm3 = vmmov %vm10134_vm6  ;;  %vm10140_vm13 = vcmask 72704  }
 0xa3d   : > { %v5126_v36 = vpop.permute.xlu0 %5125 }
 0xa3e   : > { %v5273_v30 = vsel %vm10119_vm0, %v5255_v29, %v5126_v36  ;;  %vm10135_vm0 = vmmov %vm10132_vm2 }
 0xa41   : > { %v5177_v1 = vpop.permute.xlu1 %5176 }
 0xa42   : > { %v5294_v28 = vsel %vm10120_vm5, %v5273_v30, %v5177_v1  ;;  %v4936_v61 = vpop.permute.xlu2 %4935  ;;  %vm10136_vm5 = vmmov %vm10126_vm1 }
 0xa43   : > { %5516 = vmatmul.bf16.gmra.mxu2 %v5294_v28  ;;  %v5195_v9 = vsel %vm10128_vm4, %v9488_v19, %v4936_v61 }
 0xa45   : > { %v4969_v5 = vpop.permute.xlu0 %4968 }
 0xa46   : > { %v5209_v37 = vsel %vm10122_vm12, %v5193_v49, %v4969_v5  ;;  %vm5734_vm12 = vcmask 1047552  }
 0xa49   : > { %v5025_v11 = vpop.permute.xlu1 %5024 }
 0xa4a   : > { %v5230_v45 = vsel %vm10123_vm10, %v5209_v37, %v5025_v11  ;;  %v5097_v34 = vpop.permute.xlu2 %5096  ;;  %vm10138_vm10 = vcmask 1046528  }
 0xa4b   : > { %5467 = vmatmul.bf16.gmra.mxu1 %v5230_v45  ;;  %v5261_v46 = vsel %vm10132_vm2, %v5046_v63, %v5097_v34 }
 0xa4d   : > { %v5128_v18 = vpop.permute.xlu0 %5127 }
 0xa4e   : > { %v5275_v8 = vsel %vm10126_vm1, %v5258_v42, %v5128_v18  ;;  %vm10141_vm1 = vmmov %vm10140_vm13 }
 0xa4f   : > { %vm10143_vm4 = vmmov %vm10141_vm1 }
 0xa50   : > { %vm10146_vm7 = vmmov %vm10141_vm1 }
 0xa51   : > { %v5179_v44 = vpop.permute.xlu1 %5178  ;;  %vm10147_vm2 = vmmov %vm10141_vm1 }
 0xa52   : > { %v5297_v58 = vsel %vm10127_vm8, %v5275_v8, %v5179_v44  ;;  %v4938_v19 = vpop.permute.xlu2 %4937  ;;  %vm10142_vm8 = vmmov %vm10141_vm1 }
 0xa53   : > { %5521 = vmatmul.bf16.gmra.mxu2 %v5297_v58  ;;  %v5197_v15 = vsel %vm10135_vm0, %v9547_v24, %v4938_v19  ;;  %vm10150_vm0 = vmmov %vm10141_vm1 }
 0xa55   : > { %v4971_v60 = vpop.permute.xlu0 %4970 }
 0xa56   : > { %v5211_v62 = vsel %vm10129_vm14, %v5195_v9, %v4971_v60  ;;  %vm10144_vm14 = vmmov %vm10141_vm1 }
 0xa59   : > { %v5027_v41 = vpop.permute.xlu1 %5026 }
 0xa5a   : > { %v5233_v35 = vsel %vm10130_vm15, %v5211_v62, %v5027_v41  ;;  %vm10145_vm15 = vmmov %vm10141_vm1 }
 0xa5b   : > { %5472 = vmatmul.bf16.gmra.mxu1 %v5233_v35 }
 0xa5d   : > { %v5130_v2 = vpop.permute.xlu0 %5129 }
 0xa5e   : > { %v5277_v55 = vsel %vm10133_vm9, %v5261_v46, %v5130_v2  ;;  %vm10148_vm9 = vmmov %vm10141_vm1 }
 0xa61   : > { %v5181_v59 = vpop.permute.xlu1 %5180 }
 0xa62   : > { %v5300_v13 = vsel %vm10134_vm6, %v5277_v55, %v5181_v59  ;;  %vm10149_vm6 = vmmov %vm10141_vm1 }
 0xa63   : > { %5526 = vmatmul.bf16.gmra.mxu2 %v5300_v13 }
 0xa65   : > { %v4973_v32 = vpop.permute.xlu0 %4972 }
 0xa66   : > { %v5213_v31 = vsel %vm10136_vm5, %v5197_v15, %v4973_v32  ;;  %vm10151_vm5 = vmmov %vm10150_vm0 }
 0xa69   : > { %v5029_v52 = vpop.permute.xlu1 %5028 }
 0xa6a   : > { %v5236_v56 = vsel %vm10137_vm3, %v5213_v31, %v5029_v52  ;;  %vm10152_vm3 = vmmov %vm10150_vm0 }
 0xa6b   : > { %5477 = vmatmul.bf16.gmra.mxu1 %v5236_v56 }
 0xa76   : > { %v5492_v33 = vpop.f32.mrf.mxu2 }
 0xa78   : > { %v5443_v4 = vpop.f32.mrf.mxu1 }
 0xa79   : > { %v5444_v53 = vadd.f32 %v9727_v3, %v5443_v4 }
 0xa7b   : > { %v5493_v21 = vadd.f32 %v5492_v33, %v5444_v53 }
 0xa7d   : > { %v5532_v23 = vmax.f32 %v5493_v21, 0.0 }
 0xa7e   : > { %v5494_v6 = vpop.f32.mrf.mxu2 }
 0xa80   : > { %v5445_v20 = vpop.f32.mrf.mxu1 }
 0xa81   : > { %v5446_v24 = vadd.f32 %v9727_v3, %v5445_v20  ;;  %v7008_v20 = vmov 65535  }
 0xa83   : > { %v5495_v22 = vadd.f32 %v5494_v6, %v5446_v24  ;;  %v5735_v24 = vsel %vm10138_vm10, 4294967295, %v7008_v20  ;;  %vm10154_vm10 = vmmov %vm10150_vm0 }
 0xa85   : > { %v5533_v25 = vmax.f32 %v5495_v22, 0.0 }
 0xa86   : > { %v5497_v26 = vpop.f32.mrf.mxu2 }
 0xa87   : > { %v9731_v17 = vpack.c.bf16 %v5533_v25, %v5532_v23 }
 0xa88   : > { %v5448_v38 = vpop.f32.mrf.mxu1 }
 0xa89   : > { %v5449_v14 = vadd.f32 %v9727_v3, %v5448_v38  ;;  %v5736_v38 = vsel %vm5734_vm12, %v5735_v24, 0  ;;  %vm10153_vm12 = vmmov %vm10150_vm0 }
 0xa8b   : > { %v5498_v16 = vadd.f32 %v5497_v26, %v5449_v14 }
 0xa8d   : > { %v5534_v57 = vmax.f32 %v5498_v16, 0.0 }
 0xa8e   : > { %v5499_v48 = vpop.f32.mrf.mxu2 }
 0xa90   : > { %v5450_v7 = vpop.f32.mrf.mxu1 }
 0xa91   : > { %v5451_v0 = vadd.f32 %v9727_v3, %v5450_v7 }
 0xa93   : > { %v5500_v39 = vadd.f32 %v5499_v48, %v5451_v0 }
 0xa95   : > { %v5535_v54 = vmax.f32 %v5500_v39, 0.0 }
 0xa96   : > { %v5502_v40 = vpop.f32.mrf.mxu2 }
 0xa97   : > { %v9735_v43 = vpack.c.bf16 %v5535_v54, %v5534_v57 }
 0xa98   : > { %v5453_v47 = vpop.f32.mrf.mxu1 }
 0xa99   : > { %v5454_v36 = vadd.f32 %v9727_v3, %v5453_v47 }
 0xa9b   : > { %v5503_v10 = vadd.f32 %v5502_v40, %v5454_v36 }
 0xa9d   : > { %v5536_v5 = vmax.f32 %v5503_v10, 0.0 }
 0xa9e   : > { %v5504_v29 = vpop.f32.mrf.mxu2 }
 0xaa0   : > { %v5455_v30 = vpop.f32.mrf.mxu1 }
 0xaa1   : > { %v5456_v1 = vadd.f32 %v9727_v3, %v5455_v30 }
 0xaa3   : > { %v5505_v28 = vadd.f32 %v5504_v29, %v5456_v1 }
 0xaa5   : > { %v5537_v51 = vmax.f32 %v5505_v28, 0.0 }
 0xaa6   : > { %v5507_v49 = vpop.f32.mrf.mxu2 }
 0xaa7   : > { %v9739_v37 = vpack.c.bf16 %v5537_v51, %v5536_v5  ;;  %v6937_v51 = vld [vmem:[%s9836_s15 + $0x8] sm:$0xff] }
 0xaa8   : > { %v5458_v11 = vpop.f32.mrf.mxu1 }
 0xaa9   : > { %v5459_v45 = vadd.f32 %v9727_v3, %v5458_v11  ;;  %v6942_v11 = vld [vmem:[%s9836_s15 + $0x30] sm:$0xff] }
 0xaab   : > { %v5508_v50 = vadd.f32 %v5507_v49, %v5459_v45  ;;  %v6938_v49 = vld [vmem:[%s9836_s15 + $0x10] sm:$0xff]  ;;  %v6943_v45 = vld [vmem:[%s9836_s15 + $0x38] sm:$0xff] }
 0xaad   : > { %v5538_v8 = vmax.f32 %v5508_v50, 0.0  ;;  %v5591_v50 = vpop.permute.xlu2 %5590 }
 0xaae   : > { %v5509_v18 = vpop.f32.mrf.mxu2 }
 0xab0   : > { %v5460_v12 = vpop.f32.mrf.mxu1 }
 0xab1   : > { %v5461_v42 = vadd.f32 %v9727_v3, %v5460_v12 }
 0xab3   : > { %v5510_v61 = vadd.f32 %v5509_v18, %v5461_v42  ;;  %v5596_v42 = vpop.permute.xlu0 %5595 }
 0xab5   : > { %v5539_v44 = vmax.f32 %v5510_v61, 0.0 }
 0xab6   : > { %v5512_v58 = vpop.f32.mrf.mxu2 }
 0xab7   : > { %v5567_v60 = vpack.c.bf16 %v5539_v44, %v5538_v8  ;;  %v5601_v44 = vpop.permute.xlu1 %5600 }
 0xab8   : > { %v5463_v9 = vpop.f32.mrf.mxu1 }
 0xab9   : > { %v5464_v62 = vadd.f32 %v9727_v3, %v5463_v9  ;;  %v5606_v9 = vpop.permute.xlu2 %5605 }
 0xabb   : > { %v5513_v41 = vadd.f32 %v5512_v58, %v5464_v62 }
 0xabd   : > { %v5540_v28 = vmax.f32 %v5513_v41, 0.0 }
 0xabe   : > { %v5514_v35 = vpop.f32.mrf.mxu2 }
 0xac0   : > { %v5465_v27 = vpop.f32.mrf.mxu1 }
 0xac1   : > { %v5466_v7 = vadd.f32 %v9727_v3, %v5465_v27 }
 0xac3   : > { %v5515_v47 = vadd.f32 %v5514_v35, %v5466_v7  ;;  %v5611_v35 = vpop.permute.xlu0 %5610 }
 0xac5   : > { %v5541_v30 = vmax.f32 %v5515_v47, 0.0 }
 0xac6   : > { %v5517_v34 = vpop.f32.mrf.mxu2 }
 0xac7   : > { %v5568_v5 = vpack.c.bf16 %v5541_v30, %v5540_v28 }
 0xac8   : > { %v5468_v2 = vpop.f32.mrf.mxu1 }
 0xac9   : > { %v5469_v14 = vadd.f32 %v9727_v3, %v5468_v2  ;;  %v5616_v2 = vpop.permute.xlu1 %5615 }
 0xacb   : > { %v5518_v54 = vadd.f32 %v5517_v34, %v5469_v14 }
 0xacd   : > { %v5542_v29 = vmax.f32 %v5518_v54, 0.0 }
 0xace   : > { %v5519_v63 = vpop.f32.mrf.mxu2 }
 0xad0   : > { %v5470_v46 = vpop.f32.mrf.mxu1 }
 0xad1   : > { %v5471_v22 = vadd.f32 %v9727_v3, %v5470_v46 }
 0xad3   : > { %v5520_v0 = vadd.f32 %v5519_v63, %v5471_v22 }
 0xad5   : > { %v5543_v36 = vmax.f32 %v5520_v0, 0.0 }
 0xad6   : > { %v5522_v55 = vpop.f32.mrf.mxu2 }
 0xad7   : > { %v5569_v1 = vpack.c.bf16 %v5543_v36, %v5542_v29 }
 0xad8   : > { %v5473_v59 = vpop.f32.mrf.mxu1 }
 0xad9   : > { %v5474_v21 = vadd.f32 %v9727_v3, %v5473_v59 }
 0xadb   : > { %v5523_v16 = vadd.f32 %v5522_v55, %v5474_v21  ;;  %v5621_v55 = vpop.permute.xlu2 %5620 }
 0xadd   : > { %v5544_v40 = vmax.f32 %v5523_v16, 0.0 }
 0xade   : > { %v5524_v13 = vpop.f32.mrf.mxu2 }
 0xae0   : > { %v5475_v19 = vpop.f32.mrf.mxu1 }
 0xae1   : > { %v5476_v56 = vadd.f32 %v9727_v3, %v5475_v19  ;;  %v5626_v19 = vpop.permute.xlu0 %5625 }
 0xae3   : > { %v5525_v23 = vadd.f32 %v5524_v13, %v5476_v56 }
 0xae5   : > { %v5545_v39 = vmax.f32 %v5525_v23, 0.0 }
 0xae6   : > { %v5527_v32 = vpop.f32.mrf.mxu2 }
 0xae7   : > { %v5570_v10 = vpack.c.bf16 %v5545_v39, %v5544_v40 }
 0xae8   : > { %v5478_v15 = vpop.f32.mrf.mxu1 }
 0xae9   : > { %v5479_v31 = vadd.f32 %v9727_v3, %v5478_v15  ;;  %v5641_v21 = vpop.permute.xlu0 %5640 }
 0xaeb   : > { %v5528_v33 = vadd.f32 %v5527_v32, %v5479_v31  ;;  %v5631_v31 = vpop.permute.xlu1 %5630 }
 0xaed   : > { %v5546_v25 = vmax.f32 %v5528_v33, 0.0  ;;  %v5636_v33 = vpop.permute.xlu2 %5635 }
 0xaee   : > { %v5529_v53 = vpop.f32.mrf.mxu2 }
 0xaf0   : > { %v5480_v52 = vpop.f32.mrf.mxu1 }
 0xaf1   : > { %v5481_v4 = vadd.f32 %v9727_v3, %v5480_v52  ;;  %v6936_v3 = vld [vmem:[%s9836_s15] sm:$0xff]  ;;  %v5656_v14 = vpop.permute.xlu0 %5655 }
 0xaf3   : > { %v5530_v6 = vadd.f32 %v5529_v53, %v5481_v4  ;;  %v5646_v24 = vpop.permute.xlu1 %5645 }
 0xaf5   : > { %v5547_v26 = vmax.f32 %v5530_v6, 0.0 }
 0xaf7   : > { %v5571_v48 = vpack.c.bf16 %v5547_v26, %v5546_v25  ;;  %v5651_v25 = vpop.permute.xlu2 %5650 }
 0xaf9   : > { %v5738_v57 = vand.u32 %v5736_v38, %v5571_v48 }
 0xafb   : > { %5740 = vmatpush.bf16.msrb.mxu0 %v5738_v57  ;;  %v5661_v7 = vpop.permute.xlu1 %5660 }
 0xaff   : > { %5741 = vmatpush.bf16.msrb.mxu0 %v5570_v10  ;;  %v5666_v57 = vpop.permute.xlu2 %5665 }
 0xb03   : > { %5742 = vmatpush.bf16.msrb.mxu0 %v5569_v1 }
 0xb07   : > { %5743 = vmatpush.bf16.msrb.mxu0 %v5568_v5 }
 0xb0b   : > { %5744 = vmatpush.bf16.msrb.mxu0 %v5567_v60 }
 0xb0f   : > { %5745 = vmatpush.bf16.msrb.mxu0 %v9739_v37  ;;  %v6941_v37 = vld [vmem:[%s9836_s15 + $0x28] sm:$0xff] }
 0xb13   : > { %5746 = vmatpush.bf16.msrb.mxu0 %v9735_v43  ;;  %v6939_v43 = vld [vmem:[%s9836_s15 + $0x18] sm:$0xff] }
 0xb17   : > { %5747 = vmatpush.bf16.msrb.mxu0 %v9731_v17  ;;  %v6940_v17 = vld [vmem:[%s9836_s15 + $0x20] sm:$0xff] }
 0xb1a   : > { %6736 = vmatmul.msk.bf16.vlgmr.msrb.gmra.mxu0 %vm5708_vm11, %v6936_v3 }
 0xb2a   : > { %6737 = vmatmul.msk.bf16.gmra.mxu0 %vm5708_vm11, %v6937_v51 }
 0xb3a   : > { %6738 = vmatmul.msk.bf16.gmra.mxu0 %vm5708_vm11, %v6938_v49 }
 0xb4a   : > { %6739 = vmatmul.msk.bf16.gmra.mxu0 %vm5708_vm11, %v6939_v43 }
 0xb5a   : > { %6740 = vmatmul.msk.bf16.gmra.mxu0 %vm5708_vm11, %v6940_v17 }
 0xb6a   : > { %6741 = vmatmul.msk.bf16.gmra.mxu0 %vm5708_vm11, %v6941_v37 }
 0xb7a   : > { %6742 = vmatmul.msk.bf16.gmra.mxu0 %vm5708_vm11, %v6942_v11 }
 0xb8a   : > { %6743 = vmatmul.msk.bf16.gmra.mxu0 %vm5708_vm11, %v6943_v45  ;;  %vm10155_vm11 = vmmov %vm10150_vm0 }
 0xb97   : > { %v5749_v18 = vpop.f32.mrf.mxu0 }
 0xb98   : > { %v5750_v12 = vadd.f32 %v5749_v18, %v5591_v50 }
 0xb9a   : > { %5789 = vst.msk [vmem:[%s9784_s1] sm:$0xff] %vm10140_vm13, %v5750_v12 }
 0xb9f   : > { %v5751_v61 = vpop.f32.mrf.mxu0 }
 0xba0   : > { %v5752_v8 = vadd.f32 %v5751_v61, %v5596_v42 }
 0xba2   : > { %5790 = vst.msk [vmem:[%s9784_s1 + $0x8] sm:$0xff] %vm10141_vm1, %v5752_v8 }
 0xba7   : > { %v5754_v58 = vpop.f32.mrf.mxu0 }
 0xba8   : > { %v5755_v60 = vadd.f32 %v5754_v58, %v5601_v44 }
 0xbaa   : > { %5791 = vst.msk [vmem:[%s9784_s1 + $0x10] sm:$0xff] %vm10142_vm8, %v5755_v60 }
 0xbaf   : > { %v5756_v62 = vpop.f32.mrf.mxu0 }
 0xbb0   : > { %v5757_v41 = vadd.f32 %v5756_v62, %v5606_v9 }
 0xbb2   : > { %5792 = vst.msk [vmem:[%s9784_s1 + $0x18] sm:$0xff] %vm10143_vm4, %v5757_v41 }
 0xbb7   : > { %v5759_v27 = vpop.f32.mrf.mxu0 }
 0xbb8   : > { %v5760_v34 = vadd.f32 %v5759_v27, %v5611_v35 }
 0xbba   : > { %5793 = vst.msk [vmem:[%s9784_s1 + $0x20] sm:$0xff] %vm10144_vm14, %v5760_v34 }
 0xbbf   : > { %v5761_v63 = vpop.f32.mrf.mxu0 }
 0xbc0   : > { %v5762_v46 = vadd.f32 %v5761_v63, %v5616_v2 }
 0xbc2   : > { %5794 = vst.msk [vmem:[%s9784_s1 + $0x28] sm:$0xff] %vm10145_vm15, %v5762_v46 }
 0xbc7   : > { %v5764_v59 = vpop.f32.mrf.mxu0 }
 0xbc8   : > { %v5765_v13 = vadd.f32 %v5764_v59, %v5621_v55 }
 0xbca   : > { %5795 = vst.msk [vmem:[%s9784_s1 + $0x30] sm:$0xff] %vm10146_vm7, %v5765_v13 }
 0xbcf   : > { %v5766_v32 = vpop.f32.mrf.mxu0 }
 0xbd0   : > { %v5767_v15 = vadd.f32 %v5766_v32, %v5626_v19 }
 0xbd2   : > { %5796 = vst.msk [vmem:[%s9784_s1 + $0x38] sm:$0xff] %vm10147_vm2, %v5767_v15 }
 0xbd7   : > { %v5769_v52 = vpop.f32.mrf.mxu0 }
 0xbd8   : > { %v5770_v56 = vadd.f32 %v5769_v52, %v5631_v31 }
 0xbda   : > { %5797 = vst.msk [vmem:[%s9784_s1 + $0x40] sm:$0xff] %vm10148_vm9, %v5770_v56 }
 0xbdf   : > { %v5771_v4 = vpop.f32.mrf.mxu0 }
 0xbe0   : > { %v5772_v53 = vadd.f32 %v5771_v4, %v5636_v33 }
 0xbe2   : > { %5798 = vst.msk [vmem:[%s9784_s1 + $0x48] sm:$0xff] %vm10149_vm6, %v5772_v53 }
 0xbe7   : > { %v5774_v6 = vpop.f32.mrf.mxu0 }
 0xbe8   : > { %v5775_v20 = vadd.f32 %v5774_v6, %v5641_v21 }
 0xbea   : > { %5799 = vst.msk [vmem:[%s9784_s1 + $0x50] sm:$0xff] %vm10150_vm0, %v5775_v20 }
 0xbef   : > { %v5776_v22 = vpop.f32.mrf.mxu0 }
 0xbf0   : > { %v5777_v23 = vadd.f32 %v5776_v22, %v5646_v24 }
 0xbf2   : > { %5800 = vst.msk [vmem:[%s9784_s1 + $0x58] sm:$0xff] %vm10151_vm5, %v5777_v23 }
 0xbf7   : > { %v5779_v26 = vpop.f32.mrf.mxu0 }
 0xbf8   : > { %v5780_v38 = vadd.f32 %v5779_v26, %v5651_v25 }
 0xbfa   : > { %5801 = vst.msk [vmem:[%s9784_s1 + $0x60] sm:$0xff] %vm10152_vm3, %v5780_v38 }
 0xbff   : > { %v5781_v16 = vpop.f32.mrf.mxu0 }
 0xc00   : > { %v5782_v48 = vadd.f32 %v5781_v16, %v5656_v14 }
 0xc02   : > { %5802 = vst.msk [vmem:[%s9784_s1 + $0x68] sm:$0xff] %vm10153_vm12, %v5782_v48 }
 0xc07   : > { %v5784_v0 = vpop.f32.mrf.mxu0 }
 0xc08   : > { %v5785_v39 = vadd.f32 %v5784_v0, %v5661_v7 }
 0xc0a   : > { %5803 = vst.msk [vmem:[%s9784_s1 + $0x70] sm:$0xff] %vm10154_vm10, %v5785_v39 }
 0xc0f   : > { %v5786_v54 = vpop.f32.mrf.mxu0 }
 0xc10   : > { %v5787_v40 = vadd.f32 %v5786_v54, %v5666_v57 }
 0xc12   : > { %5804 = vst.msk [vmem:[%s9784_s1 + $0x78] sm:$0xff] %vm10155_vm11, %v5787_v40 }
 0xc13 PF: > { %s32_s2 = sadd.s32 1, %s6994_s2  }
 0xc14   : > { %p29_p4 = scmp.ge.s32.totalorder %s32_s2, 4  }
 0xc16   :  { %31 = sbr.rel (!%p29_p4) target bundleno = 7 (0x7), region = 173 }

</bundles_post_ra>
